<compile_context>
chip_gen: v7x
topology: tpu7x:2x2x1
jax: 0.10.0
libtpu: 0.0.40
codegen_flags: <defaults>
</compile_context>

<pallas_src>
import functools

import jax
import jax.numpy as jnp
from jax.experimental import pallas as pl
from jax.experimental.pallas import tpu as pltpu

LANE = 128


def _round_up(v, m):
    return ((v + m - 1) // m) * m


# ----------------------------- fused kernel ----------------------------------
def _fused_gcn_kernel(a_ref, x_ref, w1_ref, b1_ref, wcat_ref, bl_ref, b2_ref,
                      ws_ref, bs_ref, logits_ref, xout_ref, lsm_ref,
                      *, hid2, lp):
    a = a_ref[...]                        # [Np, Np]    bf16, VMEM-resident
    x = x_ref[...]                        # [Np, in_dim] bf16

    # gnn1 (reordered GraphConv): feature transform once, then aggregate.
    xw1 = jnp.dot(x, w1_ref[...], preferred_element_type=jnp.float32)
    h1 = jnp.maximum(
        jnp.dot(a, xw1.astype(jnp.bfloat16), preferred_element_type=jnp.float32)
        + b1_ref[...], 0.0)               # f32 [Np, h1p]

    # Fused epilogue matmul: [Wl | W2] in a single 256-wide MXU pass.
    t = jnp.dot(h1.astype(jnp.bfloat16), wcat_ref[...],
                preferred_element_type=jnp.float32)   # f32 [Np, lp + h2p]
    logits_ref[...] = t[:, :lp] + bl_ref[...]

    # TODO(synk): training-mode dropout on h1 (random mask + 1/(1-p)) omitted
    # (eval-mode identity).

    # gnn2: aggregate the pre-transformed h1 @ W2, then add the skip branch.
    h1w2 = t[:, lp:].astype(jnp.bfloat16)
    h2 = jnp.dot(a, h1w2, preferred_element_type=jnp.float32) + b2_ref[...]
    skip = (jnp.dot(x, ws_ref[...], preferred_element_type=jnp.float32)
            + bs_ref[...])
    x_out = skip + h2                     # f32 [Np, h2p]
    xout_ref[...] = x_out

    # Stable log_softmax over the first `hid2` (valid) lanes only.
    col = jax.lax.broadcasted_iota(jnp.int32, x_out.shape, 1)
    valid = col < hid2
    xm = jnp.where(valid, x_out, jnp.float32(-1e30))
    m = jnp.max(xm, axis=1, keepdims=True)
    e = jnp.exp(xm - m)                   # padded lanes -> exp(-huge) == 0
    s = jnp.sum(e, axis=1, keepdims=True)
    lsm = x_out - m - jnp.log(s)
    lsm_ref[...] = jnp.where(valid, lsm, 0.0)


# --------------------------------- wrapper ------------------------------------
def gcn_classifier_forward(a_hat, x, params):
    N, in_dim = x.shape
    hid1 = params["w1"].shape[1]
    hid2 = params["w2"].shape[1]
    nlin = params["wl"].shape[1]

    n_pad = _round_up(N, LANE)            # 300 -> 384
    h1p = _round_up(hid1, LANE)           # 32  -> 128
    h2p = _round_up(hid2, LANE)           # 8   -> 128
    lp = _round_up(nlin, LANE)            # 64  -> 128

    f32, bf16 = jnp.float32, jnp.bfloat16

    a_p = jnp.zeros((n_pad, n_pad), bf16).at[:N, :N].set(a_hat.astype(bf16))
    x_p = jnp.zeros((n_pad, in_dim), bf16).at[:N, :].set(x.astype(bf16))

    w1p = jnp.zeros((in_dim, h1p), bf16).at[:, :hid1].set(params["w1"].astype(bf16))
    b1p = jnp.zeros((1, h1p), f32).at[:, :hid1].set(params["b1"].astype(f32))
    wcat = (jnp.zeros((h1p, lp + h2p), bf16)
            .at[:hid1, :nlin].set(params["wl"].astype(bf16))
            .at[:hid1, lp:lp + hid2].set(params["w2"].astype(bf16)))
    blp = jnp.zeros((1, lp), f32).at[:, :nlin].set(params["bl"].astype(f32))
    b2p = jnp.zeros((1, h2p), f32).at[:, :hid2].set(params["b2"].astype(f32))
    wsp = jnp.zeros((in_dim, h2p), bf16).at[:, :hid2].set(params["ws"].astype(bf16))
    bsp = jnp.zeros((1, h2p), f32).at[:, :hid2].set(params["bs"].astype(f32))

    # Rough VMEM need of the fully-resident fused kernel (inputs + outputs +
    # large f32 intermediates), used both for the limit and a safety guard.
    resident = (a_p.size * 2 + x_p.size * 2
                + (w1p.size + wcat.size + wsp.size) * 2
                + (b1p.size + blp.size + b2p.size + bsp.size) * 4
                + n_pad * (lp + 2 * h2p) * 4                 # outputs
                + n_pad * (h1p + lp + 4 * h2p) * 4)          # intermediates
    vmem_limit = int(min(max(2 * resident, 16 * 1024 * 1024), 48 * 1024 * 1024))
    if 2 * resident > vmem_limit:
        # TODO(synk): large graphs need the tiled two-pass streaming variant
        # (A_hat row panels + BlockSpec pipelining) instead of full residency.
        raise ValueError(f"graph too large for fused VMEM-resident kernel: N={N}")

    cost = pl.CostEstimate(
        flops=2 * n_pad * (n_pad * (h1p + h2p)               # both aggregations
                           + in_dim * (h1p + h2p)            # X@W1, X@Ws
                           + h1p * (lp + h2p)),              # [Wl | W2]
        transcendentals=n_pad * (h2p + 1),
        bytes_accessed=(a_p.size + x_p.size + w1p.size + wcat.size + wsp.size) * 2
                       + n_pad * (lp + 2 * h2p) * 4,
    )

    vspec = pl.BlockSpec(memory_space=pltpu.MemorySpace.VMEM)
    logits_p, xout_p, lsm_p = pl.pallas_call(
        functools.partial(_fused_gcn_kernel, hid2=hid2, lp=lp),
        out_shape=(jax.ShapeDtypeStruct((n_pad, lp), f32),    # logits (padded)
                   jax.ShapeDtypeStruct((n_pad, h2p), f32),   # x_out  (padded)
                   jax.ShapeDtypeStruct((n_pad, h2p), f32)),  # lsm    (padded)
        in_specs=[vspec] * 9,
        out_specs=(vspec, vspec, vspec),
        compiler_params=pltpu.CompilerParams(vmem_limit_bytes=vmem_limit),
        cost_estimate=cost,
    )(a_p, x_p, w1p, b1p, wcat, blp, b2p, wsp, bsp)

    return (xout_p[:N, :hid2], logits_p[:N, :nlin], lsm_p[:N, :hid2])


# ------------------------------ host utilities --------------------------------
def xavier_normal(key, shape):
    fan_in, fan_out = shape
    std = (2.0 / (fan_in + fan_out)) ** 0.5
    return std * jax.random.normal(key, shape, dtype=jnp.float32)


def make_params(key, in_dim, hid1, hid2):
    k1, k2, k3, k4 = jax.random.split(key, 4)
    # weights stored [in, out]; biases [1, out]
    return {
        "w1": xavier_normal(k1, (in_dim, hid1)),
        "b1": jnp.full((1, hid1), 0.1, jnp.float32),
        "wl": xavier_normal(k2, (hid1, 64)),
        "bl": jnp.full((1, 64), 0.1, jnp.float32),
        "w2": xavier_normal(k3, (hid1, hid2)),
        "b2": jnp.full((1, hid2), 0.1, jnp.float32),
        "ws": xavier_normal(k4, (in_dim, hid2)),
        "bs": jnp.full((1, hid2), 0.1, jnp.float32),
    }


def make_norm_adj(N):
    # ring graph with self loops, symmetric-normalized (DGL norm='both')
    a = jnp.eye(N, dtype=jnp.float32)
    idx = jnp.arange(N)
    a = a.at[idx, (idx + 1) % N].set(1.0)
    a = a.at[(idx + 1) % N, idx].set(1.0)
    deg = jnp.sum(a, axis=1)
    d_inv_sqrt = 1.0 / jnp.sqrt(deg)
    return a * d_inv_sqrt[:, None] * d_inv_sqrt[None, :]


def reference_forward(a_hat, x, params):
    h1 = jnp.maximum(a_hat @ (x @ params["w1"]) + params["b1"], 0.0)
    logits = h1 @ params["wl"] + params["bl"]
    h2 = a_hat @ (h1 @ params["w2"]) + params["b2"]
    x_out = x @ params["ws"] + params["bs"] + h2
    return x_out, logits, jax.nn.log_softmax(x_out, axis=1)


if __name__ == "__main__":
    key = jax.random.PRNGKey(0)
    N, in_dim, hid1, hid2 = 300, 16, 32, 8   # N pads to 384 (single fused call)

    kx, kp = jax.random.split(key)
    x = jax.random.normal(kx, (N, in_dim), dtype=jnp.float32)
    a_hat = make_norm_adj(N)
    params = make_params(kp, in_dim, hid1, hid2)

    x_out, logits, lsm = gcn_classifier_forward(a_hat, x, params)
    jax.block_until_ready((x_out, logits, lsm))

    assert x_out.shape == (N, hid2)
    assert logits.shape == (N, 64)
    assert lsm.shape == (N, hid2)

    # sanity check vs pure-JAX f32 reference (bf16 streaming => loose tolerance)
    rx, rl, rs = reference_forward(a_hat, x, params)
    assert float(jnp.max(jnp.abs(x_out - rx))) < 0.25
    assert float(jnp.max(jnp.abs(logits - rl))) < 0.25
    assert float(jnp.max(jnp.abs(lsm - rs))) < 0.25

    print("KERNEL_OK")
</pallas_src>

<mosaic_0001>
module attributes {stable_mosaic.version = 11 : i64} {
  func.func @_fused_gcn_kernel(%arg0: memref<384x384xbf16, #tpu.memory_space<vmem>>, %arg1: memref<384x16xbf16, #tpu.memory_space<vmem>>, %arg2: memref<16x128xbf16, #tpu.memory_space<vmem>>, %arg3: memref<1x128xf32, #tpu.memory_space<vmem>>, %arg4: memref<128x256xbf16, #tpu.memory_space<vmem>>, %arg5: memref<1x128xf32, #tpu.memory_space<vmem>>, %arg6: memref<1x128xf32, #tpu.memory_space<vmem>>, %arg7: memref<16x128xbf16, #tpu.memory_space<vmem>>, %arg8: memref<1x128xf32, #tpu.memory_space<vmem>>, %arg9: memref<384x128xf32, #tpu.memory_space<vmem>>, %arg10: memref<384x128xf32, #tpu.memory_space<vmem>>, %arg11: memref<384x128xf32, #tpu.memory_space<vmem>>) attributes {dimension_semantics = [], scalar_prefetch = 0 : i64, scratch_operands = 0 : i64, tpu.core_type = #tpu.core_type<tc>} {
    %c0 = arith.constant 0 : index
    %c0_0 = arith.constant 0 : index
    %0 = vector.load %arg0[%c0, %c0_0] : memref<384x384xbf16, #tpu.memory_space<vmem>>, vector<384x384xbf16>
    %c0_1 = arith.constant 0 : index
    %c0_2 = arith.constant 0 : index
    %1 = vector.load %arg1[%c0_1, %c0_2] : memref<384x16xbf16, #tpu.memory_space<vmem>>, vector<384x16xbf16>
    %c0_3 = arith.constant 0 : index
    %c0_4 = arith.constant 0 : index
    %2 = vector.load %arg2[%c0_3, %c0_4] : memref<16x128xbf16, #tpu.memory_space<vmem>>, vector<16x128xbf16>
    %cst = arith.constant dense<0.000000e+00> : vector<384x128xf32>
    %3 = tpu.matmul %1, %2, %cst {dimension_numbers = #tpu.dot_dimension_numbers<[1], [0], [0], [1], [0, 0, 1, 1], [], []>} : vector<384x16xbf16>, vector<16x128xbf16>, vector<384x128xf32> -> vector<384x128xf32>
    %4 = arith.truncf %3 : vector<384x128xf32> to vector<384x128xbf16>
    %cst_5 = arith.constant dense<0.000000e+00> : vector<384x128xf32>
    %5 = tpu.matmul %0, %4, %cst_5 {dimension_numbers = #tpu.dot_dimension_numbers<[1], [0], [0], [1], [0, 0, 1, 1], [], []>} : vector<384x384xbf16>, vector<384x128xbf16>, vector<384x128xf32> -> vector<384x128xf32>
    %c0_6 = arith.constant 0 : index
    %c0_7 = arith.constant 0 : index
    %6 = vector.load %arg3[%c0_6, %c0_7] : memref<1x128xf32, #tpu.memory_space<vmem>>, vector<1x128xf32>
    %7 = vector.broadcast %6 : vector<1x128xf32> to vector<384x128xf32>
    %8 = arith.addf %5, %7 : vector<384x128xf32>
    %cst_8 = arith.constant 0.000000e+00 : f32
    %9 = vector.broadcast %cst_8 : f32 to vector<384x128xf32>
    %10 = arith.maximumf %8, %9 : vector<384x128xf32>
    %11 = arith.truncf %10 : vector<384x128xf32> to vector<384x128xbf16>
    %c0_9 = arith.constant 0 : index
    %c0_10 = arith.constant 0 : index
    %12 = vector.load %arg4[%c0_9, %c0_10] : memref<128x256xbf16, #tpu.memory_space<vmem>>, vector<128x256xbf16>
    %cst_11 = arith.constant dense<0.000000e+00> : vector<384x256xf32>
    %13 = tpu.matmul %11, %12, %cst_11 {dimension_numbers = #tpu.dot_dimension_numbers<[1], [0], [0], [1], [0, 0, 1, 1], [], []>} : vector<384x128xbf16>, vector<128x256xbf16>, vector<384x256xf32> -> vector<384x256xf32>
    %14 = vector.extract_strided_slice %13 {offsets = [0, 0], sizes = [384, 128], strides = [1, 1]} : vector<384x256xf32> to vector<384x128xf32>
    %c0_12 = arith.constant 0 : index
    %c0_13 = arith.constant 0 : index
    %15 = vector.load %arg5[%c0_12, %c0_13] : memref<1x128xf32, #tpu.memory_space<vmem>>, vector<1x128xf32>
    %16 = vector.broadcast %15 : vector<1x128xf32> to vector<384x128xf32>
    %17 = arith.addf %14, %16 : vector<384x128xf32>
    %c0_14 = arith.constant 0 : index
    %c0_15 = arith.constant 0 : index
    %18 = vector.load %arg9[%c0_14, %c0_15] : memref<384x128xf32, #tpu.memory_space<vmem>>, vector<384x128xf32>
    tpu.vector_store %arg9[%c0_14, %c0_15], %17 {strides = array<i32>} : memref<384x128xf32, #tpu.memory_space<vmem>>, vector<384x128xf32>,
    %19 = vector.extract_strided_slice %13 {offsets = [0, 128], sizes = [384, 128], strides = [1, 1]} : vector<384x256xf32> to vector<384x128xf32>
    %20 = arith.truncf %19 : vector<384x128xf32> to vector<384x128xbf16>
    %cst_16 = arith.constant dense<0.000000e+00> : vector<384x128xf32>
    %21 = tpu.matmul %0, %20, %cst_16 {dimension_numbers = #tpu.dot_dimension_numbers<[1], [0], [0], [1], [0, 0, 1, 1], [], []>} : vector<384x384xbf16>, vector<384x128xbf16>, vector<384x128xf32> -> vector<384x128xf32>
    %c0_17 = arith.constant 0 : index
    %c0_18 = arith.constant 0 : index
    %22 = vector.load %arg6[%c0_17, %c0_18] : memref<1x128xf32, #tpu.memory_space<vmem>>, vector<1x128xf32>
    %23 = vector.broadcast %22 : vector<1x128xf32> to vector<384x128xf32>
    %24 = arith.addf %21, %23 : vector<384x128xf32>
    %c0_19 = arith.constant 0 : index
    %c0_20 = arith.constant 0 : index
    %25 = vector.load %arg7[%c0_19, %c0_20] : memref<16x128xbf16, #tpu.memory_space<vmem>>, vector<16x128xbf16>
    %cst_21 = arith.constant dense<0.000000e+00> : vector<384x128xf32>
    %26 = tpu.matmul %1, %25, %cst_21 {dimension_numbers = #tpu.dot_dimension_numbers<[1], [0], [0], [1], [0, 0, 1, 1], [], []>} : vector<384x16xbf16>, vector<16x128xbf16>, vector<384x128xf32> -> vector<384x128xf32>
    %c0_22 = arith.constant 0 : index
    %c0_23 = arith.constant 0 : index
    %27 = vector.load %arg8[%c0_22, %c0_23] : memref<1x128xf32, #tpu.memory_space<vmem>>, vector<1x128xf32>
    %28 = vector.broadcast %27 : vector<1x128xf32> to vector<384x128xf32>
    %29 = arith.addf %26, %28 : vector<384x128xf32>
    %30 = arith.addf %29, %24 : vector<384x128xf32>
    %c0_24 = arith.constant 0 : index
    %c0_25 = arith.constant 0 : index
    %31 = vector.load %arg10[%c0_24, %c0_25] : memref<384x128xf32, #tpu.memory_space<vmem>>, vector<384x128xf32>
    tpu.vector_store %arg10[%c0_24, %c0_25], %30 {strides = array<i32>} : memref<384x128xf32, #tpu.memory_space<vmem>>, vector<384x128xf32>,
    %32 = tpu.iota {dimensions = array<i32: 1>} : vector<384x128xi32>
    %c8_i32 = arith.constant 8 : i32
    %33 = vector.broadcast %c8_i32 : i32 to vector<384x128xi32>
    %34 = arith.cmpi slt, %32, %33 : vector<384x128xi32>
    %cst_26 = arith.constant -1.000000e+30 : f32
    %35 = vector.broadcast %cst_26 : f32 to vector<384x128xf32>
    %36 = arith.select %34, %30, %35 : vector<384x128xi1>, vector<384x128xf32>
    %cst_27 = arith.constant dense<0xFF800000> : vector<384xf32>
    %37 = vector.multi_reduction <maximumf>, %36, %cst_27 [1] : vector<384x128xf32> to vector<384xf32>
    %38 = vector.shape_cast %37 : vector<384xf32> to vector<384x1xf32>
    %39 = vector.broadcast %38 : vector<384x1xf32> to vector<384x128xf32>
    %40 = arith.subf %36, %39 : vector<384x128xf32>
    %41 = math.exp %40 : vector<384x128xf32>
    %cst_28 = arith.constant dense<0.000000e+00> : vector<384xf32>
    %42 = vector.multi_reduction <add>, %41, %cst_28 [1] : vector<384x128xf32> to vector<384xf32>
    %43 = vector.shape_cast %42 : vector<384xf32> to vector<384x1xf32>
    %44 = vector.broadcast %38 : vector<384x1xf32> to vector<384x128xf32>
    %45 = arith.subf %30, %44 : vector<384x128xf32>
    %46 = math.log %43 : vector<384x1xf32>
    %47 = vector.broadcast %46 : vector<384x1xf32> to vector<384x128xf32>
    %48 = arith.subf %45, %47 : vector<384x128xf32>
    %cst_29 = arith.constant 0.000000e+00 : f32
    %49 = vector.broadcast %cst_29 : f32 to vector<384x128xf32>
    %50 = arith.select %34, %48, %49 : vector<384x128xi1>, vector<384x128xf32>
    %c0_30 = arith.constant 0 : index
    %c0_31 = arith.constant 0 : index
    %51 = vector.load %arg11[%c0_30, %c0_31] : memref<384x128xf32, #tpu.memory_space<vmem>>, vector<384x128xf32>
    tpu.vector_store %arg11[%c0_30, %c0_31], %50 {strides = array<i32>} : memref<384x128xf32, #tpu.memory_space<vmem>>, vector<384x128xf32>,
    return
  }
}

</mosaic_0001>

<bundles_post_ra>
// kernel: tpu_custom_call.1
= control target key start
LH: loop header
LB: loop body
LE: loop exit
PB: predicated region body
PF: predicated region fallthrough
CT: control target
= control target key end

     0   :  { %17 = vsyncpa [#allocation3], 0  ;;  %s6335_s0 = inlined_call_operand.hbm [shape: bf16[384,384], index: 0, kind: input, shape index: {}]   ;;  %s6336_s1 = inlined_call_operand.vmem [shape: bf16[384,16], index: 1, kind: input, shape index: {}]   ;;  %s6337_s2 = inlined_call_operand.vmem [shape: bf16[16,128], index: 2, kind: input, shape index: {}]   ;;  %s6338_s3 = inlined_call_operand.vmem [shape: f32[1,128], index: 3, kind: input, shape index: {}]   ;;  %s6339_s4 = inlined_call_operand.vmem [shape: bf16[128,256], index: 4, kind: input, shape index: {}]   ;;  %s6340_s5 = inlined_call_operand.vmem [shape: f32[1,128], index: 5, kind: input, shape index: {}]   ;;  %s6341_s6 = inlined_call_operand.vmem [shape: f32[1,128], index: 6, kind: input, shape index: {}]   ;;  %s6342_s7 = inlined_call_operand.vmem [shape: bf16[16,128], index: 7, kind: input, shape index: {}]   ;;  %s6343_s8 = inlined_call_operand.vmem [shape: f32[1,128], index: 8, kind: input, shape index: {}]   ;;  %s6344_s9 = inlined_call_operand.hbm [shape: f32[384,128], index: 9, kind: output, shape index: {0}]   ;;  %s6345_s10 = inlined_call_operand.hbm [shape: f32[384,128], index: 10, kind: output, shape index: {1}]   ;;  %s6346_s11 = inlined_call_operand.hbm [shape: f32[384,128], index: 11, kind: output, shape index: {2}]  }
   0x1   :  { %18 = vsyncpa [#allocation4], 0 }
   0x2   :  { %19 = vsyncpa [#allocation7], 0  ;;  %s4617_s17 = smov [#allocation2]   ;;  %s4523_s21 = scalar_lea.hbm %s6335_s0, 9216 }
   0x3   :  { %s25_s18 = sshll.u32 %s4617_s17, 4  ;;  %p4524_p0 = scmp.ne.s32.totalorder %s6335_s0, %s4523_s21  ;;  %s26_s18 = int_to_ptr.vmem [resolvable:$true] %s25_s18 }
   0x4   :  { %p4527_p1 = scmp.lt.u32.totalorder %s4523_s21, %s6335_s0 }
   0x6   :  { %p4529_p2 = pnand %p4527_p1, %p4524_p0 }
   0x8   :  { %4532 = shalt.err (!%p4529_p2)
}
   0x9   :  { %s4533_s26 = scalar_lea.vmem %s26_s18, 9216  ;;  %p4538_p4 = scmp.lt.s32.totalorder %s26_s18, %s26_s18 }
   0xa   :  { %p4534_p3 = scmp.ne.s32.totalorder %s26_s18, %s4533_s26  ;;  %p4539_p5 = scmp.lt.s32.totalorder %s4533_s26, %s4533_s26 }
   0xc   :  { %p4540_p6 = por %p4539_p5, %p4538_p4 }
   0xe   :  { %p4541_p7 = pnand %p4540_p6, %p4534_p3 }
  0x10   :  { %4544 = shalt.err (!%p4541_p7)
}
  0x11   :  { %s4618_s27 = smov 192   ;;  %s4619_s28 = smov 12  }
  0x12   :  { %31 = dma.hbm_to_vmem [thread:$0]  %s6335_s0, 9216, %s26_s18, [#allocation3], %s4618_s27, %s4618_s27, %s4619_s28  }
  0x13   :  { %4611 = dma.done.wait [#allocation3], 9216  }
  0x14   :  { %4612 = vsyncadd [#allocation3], 4294958080  ;;  %v4090_v0 = vld [vmem:[%s6337_s2] sm:$0xff]   ;;  %vm324_vm0 = vcmask 130048   ;;  %v4092_v2 = vld [vmem:[%s6336_s1 + $0x8] sm:$0xff]   ;;  %v4620_v25 = vmov 0  }
  0x15   :  { %v4091_v1 = vld [vmem:[%s6336_s1] sm:$0xff]   ;;  %3851 = vmatprep.subr.bf16.mxu0 %v4090_v0  ;;  %v4093_v3 = vld [vmem:[%s6336_s1 + $0x10] sm:$0xff]   ;;  %v4094_v4 = vld [vmem:[%s6336_s1 + $0x18] sm:$0xff]   ;;  %1037 = vmatprep.subr.bf16.mxu1 %v4620_v25  ;;  %s4622_s13 = smov [#allocation5]  }
  0x16   :  { %3852 = vmatpush3.bf16.msra.mxu0 %v4090_v0  ;;  %3853 = vmatprep.mubr.msk.bf16.mxu0 %vm324_vm0, %v4091_v1  ;;  %v4095_v5 = vld [vmem:[%s6336_s1 + $0x20] sm:$0xff]   ;;  %v4096_v6 = vld [vmem:[%s6336_s1 + $0x28] sm:$0xff]   ;;  %v4097_v7 = vld [vmem:[%s6336_s1 + $0x30] sm:$0xff]   ;;  %s3528_s14 = sshll.u32 %s4622_s13, 4  ;;  %s3529_s14 = int_to_ptr.vmem [resolvable:$true] %s3528_s14 }
  0x17   :  { %v4098_v8 = vld [vmem:[%s6336_s1 + $0x38] sm:$0xff]   ;;  %v4099_v9 = vld [vmem:[%s6336_s1 + $0x40] sm:$0xff]   ;;  %v4100_v10 = vld [vmem:[%s6336_s1 + $0x48] sm:$0xff]  }
  0x18   :  { %v4101_v11 = vld [vmem:[%s6336_s1 + $0x50] sm:$0xff]   ;;  %v4102_v12 = vld [vmem:[%s6336_s1 + $0x58] sm:$0xff]   ;;  %v4103_v13 = vld [vmem:[%s6336_s1 + $0x60] sm:$0xff]  }
  0x19   :  { %3854 = vmatmul.mubr.msk.bf16.vlgmr.msra.gmra.mrb[0].mxu0 %vm324_vm0, %v4092_v2  ;;  %v4104_v14 = vld [vmem:[%s6336_s1 + $0x68] sm:$0xff]   ;;  %v4105_v15 = vld [vmem:[%s6336_s1 + $0x70] sm:$0xff]   ;;  %v4106_v16 = vld [vmem:[%s6336_s1 + $0x78] sm:$0xff]  }
  0x1a   :  { %3857 = vmatprep.mubr.msk.bf16.mxu0 %vm324_vm0, %v4093_v3  ;;  %v4107_v17 = vld [vmem:[%s6336_s1 + $0x80] sm:$0xff]   ;;  %v4108_v18 = vld [vmem:[%s6336_s1 + $0x88] sm:$0xff]   ;;  %v4109_v19 = vld [vmem:[%s6336_s1 + $0x90] sm:$0xff]  }
  0x1b   :  { %v4110_v20 = vld [vmem:[%s6336_s1 + $0x98] sm:$0xff]   ;;  %v4111_v21 = vld [vmem:[%s6336_s1 + $0xa0] sm:$0xff]   ;;  %v4112_v22 = vld [vmem:[%s6336_s1 + $0xa8] sm:$0xff]  }
  0x1c   :  { %v4113_v23 = vld [vmem:[%s6336_s1 + $0xb0] sm:$0xff]   ;;  %v4114_v24 = vld [vmem:[%s6336_s1 + $0xb8] sm:$0xff]  }
  0x1d   :  { %v4798_v26 = vld [vmem:[#allocation2 + $0x4] ss:$12 sps:$4 sm:$0xff]   ;;  %v4121_v27 = vld [vmem:[#allocation2 + $0x8] ss:$12 sps:$4 sm:$0xff]  }
  0x1e   :  { %1069 = vmatprep.mubr.bf16.mxu1 %v4798_v26 }
  0x21   :  { %3858 = vmatmul.mubr.msk.bf16.gmra.mrb[4].mxu0 %vm324_vm0, %v4094_v4 }
  0x22   :  { %3861 = vmatprep.mubr.msk.bf16.mxu0 %vm324_vm0, %v4095_v5 }
  0x29   :  { %3862 = vmatmul.mubr.msk.bf16.gmra.mrb[8].mxu0 %vm324_vm0, %v4096_v6 }
  0x2a   :  { %3865 = vmatprep.mubr.msk.bf16.mxu0 %vm324_vm0, %v4097_v7 }
  0x31   :  { %3866 = vmatmul.mubr.msk.bf16.gmra.mrb[12].mxu0 %vm324_vm0, %v4098_v8 }
  0x32   :  { %3869 = vmatprep.mubr.msk.bf16.mxu0 %vm324_vm0, %v4099_v9 }
  0x39   :  { %3870 = vmatmul.mubr.msk.bf16.gmra.mrb[16].mxu0 %vm324_vm0, %v4100_v10 }
  0x3a   :  { %3873 = vmatprep.mubr.msk.bf16.mxu0 %vm324_vm0, %v4101_v11 }
  0x41   :  { %3874 = vmatmul.mubr.msk.bf16.gmra.mrb[20].mxu0 %vm324_vm0, %v4102_v12 }
  0x42   :  { %3877 = vmatprep.mubr.msk.bf16.mxu0 %vm324_vm0, %v4103_v13 }
  0x49   :  { %3878 = vmatmul.mubr.msk.bf16.gmra.mrb[24].mxu0 %vm324_vm0, %v4104_v14  ;;  %v4115_v14 = vld [vmem:[#allocation2] ss:$12 sps:$4 sm:$0xff]  }
  0x4a   :  { %3881 = vmatprep.mubr.msk.bf16.mxu0 %vm324_vm0, %v4105_v15 }
  0x51   :  { %3882 = vmatmul.mubr.msk.bf16.gmra.mrb[28].mxu0 %vm324_vm0, %v4106_v16  ;;  %v4118_v16 = vld [vmem:[#allocation2 + $0x1c] ss:$12 sps:$4 sm:$0xff]  }
  0x52   :  { %3885 = vmatprep.mubr.msk.bf16.mxu0 %vm324_vm0, %v4107_v17 }
  0x59   :  { %3886 = vmatmul.mubr.msk.bf16.gmra.mrb[32].mxu0 %vm324_vm0, %v4108_v18 }
  0x5a   :  { %3889 = vmatprep.mubr.msk.bf16.mxu0 %vm324_vm0, %v4109_v19 }
  0x61   :  { %3890 = vmatmul.mubr.msk.bf16.gmra.mrb[36].mxu0 %vm324_vm0, %v4110_v20 }
  0x62   :  { %3893 = vmatprep.mubr.msk.bf16.mxu0 %vm324_vm0, %v4111_v21 }
  0x69   :  { %3894 = vmatmul.mubr.msk.bf16.gmra.mrb[40].mxu0 %vm324_vm0, %v4112_v22  ;;  %v4120_v22 = vld [vmem:[#allocation2 + $0x18] ss:$12 sps:$4 sm:$0xff]  }
  0x6a   :  { %3897 = vmatprep.mubr.msk.bf16.mxu0 %vm324_vm0, %v4113_v23 }
  0x71   :  { %3898 = vmatmul.mubr.msk.bf16.gmra.mrb[44].mxu0 %vm324_vm0, %v4114_v24  ;;  %v4123_v24 = vld [vmem:[#allocation2 + $0x34] ss:$12 sps:$4 sm:$0xff]  }
  0x72   :  { %3917 = vmatprep.mubr.bf16.mxu0 %v4121_v27 }
  0xec   :  { %v3855_v28 = vpop.f32.mrb[0].mxu0 }
  0xed   :  { %v431_v29 = vpop.f32.mrb[1].mxu0 }
  0xee   :  { %v3856_v30 = vpop.f32.mrb[2].mxu0 }
  0xef   :  { %v623_v31 = vpack.c.bf16 %v3856_v30, %v3855_v28  ;;  %v434_v32 = vpop.f32.mrb[3].mxu0 }
  0xf0   :  { %v622_v33 = vpack.c.bf16 %v434_v32, %v431_v29  ;;  %v4125_v32 = vld [vmem:[#allocation2 + $0x30] ss:$12 sps:$4 sm:$0xff]  }
  0xf2   :  { %1038 = vmatpush1.bf16.msra.mxu1 %v622_v33 }
  0xf3   :  { %1039 = vmatprep.subr.bf16.mxu1 %v4620_v25 }
  0xf4   :  { %v3859_v34 = vpop.f32.mrb[4].mxu0 }
  0xf5   :  { %v447_v35 = vpop.f32.mrb[5].mxu0 }
  0xf6   :  { %v3860_v36 = vpop.f32.mrb[6].mxu0  ;;  %1040 = vmatpush1.bf16.msra.mxu1 %v623_v31 }
  0xf7   :  { %v625_v37 = vpack.c.bf16 %v3860_v36, %v3859_v34  ;;  %v450_v38 = vpop.f32.mrb[7].mxu0  ;;  %1041 = vmatprep.subr.bf16.mxu1 %v4620_v25  ;;  %v4126_v34 = vld [vmem:[#allocation2 + $0x4c] ss:$12 sps:$4 sm:$0xff]  }
  0xf8   :  { %v624_v39 = vpack.c.bf16 %v450_v38, %v447_v35 }
  0xfa   :  { %1042 = vmatpush1.bf16.msra.mxu1 %v624_v39 }
  0xfb   :  { %1043 = vmatprep.subr.bf16.mxu1 %v4620_v25 }
  0xfc   :  { %v3863_v40 = vpop.f32.mrb[8].mxu0 }
  0xfd   :  { %v463_v41 = vpop.f32.mrb[9].mxu0 }
  0xfe   :  { %v3864_v42 = vpop.f32.mrb[10].mxu0  ;;  %1044 = vmatpush1.bf16.msra.mxu1 %v625_v37 }
  0xff   :  { %v627_v43 = vpack.c.bf16 %v3864_v42, %v3863_v40  ;;  %v466_v44 = vpop.f32.mrb[11].mxu0  ;;  %1045 = vmatprep.subr.bf16.mxu1 %v4620_v25  ;;  %v4128_v40 = vld [vmem:[#allocation2 + $0x48] ss:$12 sps:$4 sm:$0xff]   ;;  %v4131_v42 = vld [vmem:[#allocation2 + $0x64] ss:$12 sps:$4 sm:$0xff]  }
 0x100   :  { %v626_v45 = vpack.c.bf16 %v466_v44, %v463_v41 }
 0x102   :  { %1046 = vmatpush1.bf16.msra.mxu1 %v626_v45 }
 0x103   :  { %1047 = vmatprep.subr.bf16.mxu1 %v4620_v25 }
 0x104   :  { %v3867_v46 = vpop.f32.mrb[12].mxu0 }
 0x105   :  { %v479_v47 = vpop.f32.mrb[13].mxu0 }
 0x106   :  { %v3868_v48 = vpop.f32.mrb[14].mxu0  ;;  %1048 = vmatpush1.bf16.msra.mxu1 %v627_v43 }
 0x107   :  { %v629_v49 = vpack.c.bf16 %v3868_v48, %v3867_v46  ;;  %v482_v50 = vpop.f32.mrb[15].mxu0  ;;  %1049 = vmatprep.subr.bf16.mxu1 %v4620_v25  ;;  %v4133_v46 = vld [vmem:[#allocation2 + $0x60] ss:$12 sps:$4 sm:$0xff]   ;;  %v4134_v48 = vld [vmem:[#allocation2 + $0x7c] ss:$12 sps:$4 sm:$0xff]  }
 0x108   :  { %v628_v51 = vpack.c.bf16 %v482_v50, %v479_v47  ;;  %v4122_v47 = vld [vmem:[#allocation2 + $0x20] ss:$12 sps:$4 sm:$0xff]   ;;  %v4136_v50 = vld [vmem:[#allocation2 + $0x78] ss:$12 sps:$4 sm:$0xff]  }
 0x10a   :  { %1050 = vmatpush1.bf16.msra.mxu1 %v628_v51  ;;  %v4130_v51 = vld [vmem:[#allocation2 + $0x50] ss:$12 sps:$4 sm:$0xff]  }
 0x10b   :  { %1051 = vmatprep.subr.bf16.mxu1 %v4620_v25 }
 0x10c   :  { %v3871_v52 = vpop.f32.mrb[16].mxu0 }
 0x10d   :  { %v495_v53 = vpop.f32.mrb[17].mxu0 }
 0x10e   :  { %v3872_v54 = vpop.f32.mrb[18].mxu0  ;;  %1052 = vmatpush1.bf16.msra.mxu1 %v629_v49  ;;  %v4129_v49 = vld [vmem:[#allocation2 + $0x38] ss:$12 sps:$4 sm:$0xff]  }
 0x10f   :  { %v631_v55 = vpack.c.bf16 %v3872_v54, %v3871_v52  ;;  %v498_v56 = vpop.f32.mrb[19].mxu0  ;;  %1053 = vmatprep.subr.bf16.mxu1 %v4620_v25  ;;  %v4139_v52 = vld [vmem:[#allocation2 + $0x94] ss:$12 sps:$4 sm:$0xff]   ;;  %v4141_v54 = vld [vmem:[#allocation2 + $0x90] ss:$12 sps:$4 sm:$0xff]  }
 0x110   :  { %v630_v57 = vpack.c.bf16 %v498_v56, %v495_v53  ;;  %v4137_v53 = vld [vmem:[#allocation2 + $0x68] ss:$12 sps:$4 sm:$0xff]   ;;  %v4142_v56 = vld [vmem:[#allocation2 + $0xac] ss:$12 sps:$4 sm:$0xff]  }
 0x112   :  { %1054 = vmatpush1.bf16.msra.mxu1 %v630_v57  ;;  %v4145_v57 = vld [vmem:[#allocation2 + $0x98] ss:$12 sps:$4 sm:$0xff]  }
 0x113   :  { %1055 = vmatprep.subr.bf16.mxu1 %v4620_v25 }
 0x114   :  { %v3875_v58 = vpop.f32.mrb[20].mxu0 }
 0x115   :  { %v511_v59 = vpop.f32.mrb[21].mxu0 }
 0x116   :  { %v3876_v60 = vpop.f32.mrb[22].mxu0  ;;  %1056 = vmatpush1.bf16.msra.mxu1 %v631_v55  ;;  %v4138_v55 = vld [vmem:[#allocation2 + $0x80] ss:$12 sps:$4 sm:$0xff]  }
 0x117   :  { %v633_v61 = vpack.c.bf16 %v3876_v60, %v3875_v58  ;;  %v514_v62 = vpop.f32.mrb[23].mxu0  ;;  %1057 = vmatprep.subr.bf16.mxu1 %v4620_v25  ;;  %v4144_v58 = vld [vmem:[#allocation2 + $0xa8] ss:$12 sps:$4 sm:$0xff]   ;;  %v4147_v60 = vld [vmem:[#allocation2 + $0xc4] ss:$12 sps:$4 sm:$0xff]  }
 0x118   :  { %v632_v63 = vpack.c.bf16 %v514_v62, %v511_v59  ;;  %v4146_v59 = vld [vmem:[#allocation2 + $0xb0] ss:$12 sps:$4 sm:$0xff]   ;;  %v4211_v62 = vld [vmem:[%s6339_s4] ss:$8 sps:$4 sm:$0xff]  }
 0x11a   :  { %1058 = vmatpush1.bf16.msra.mxu1 %v632_v63  ;;  %v4213_v63 = vld [vmem:[%s6339_s4 + $0x4] ss:$8 sps:$4 sm:$0xff]  }
 0x11b   :  { %1059 = vmatprep.subr.bf16.mxu1 %v4620_v25 }
 0x11c   :  { %v3879_v0 = vpop.f32.mrb[24].mxu0 }
 0x11d   :  { %v527_v1 = vpop.f32.mrb[25].mxu0 }
 0x11e   :  { %v3880_v2 = vpop.f32.mrb[26].mxu0  ;;  %1060 = vmatpush1.bf16.msra.mxu1 %v633_v61  ;;  %v4153_v61 = vld [vmem:[#allocation2 + $0xc8] ss:$12 sps:$4 sm:$0xff]  }
 0x11f   :  { %v635_v3 = vpack.c.bf16 %v3880_v2, %v3879_v0  ;;  %v530_v4 = vpop.f32.mrb[27].mxu0  ;;  %1061 = vmatprep.subr.bf16.mxu1 %v4620_v25  ;;  %v4216_v0 = vld [vmem:[%s6339_s4 + $0x14] ss:$8 sps:$4 sm:$0xff]   ;;  %v4149_v2 = vld [vmem:[#allocation2 + $0xc0] ss:$12 sps:$4 sm:$0xff]  }
 0x120   :  { %v634_v5 = vpack.c.bf16 %v530_v4, %v527_v1  ;;  %v4214_v1 = vld [vmem:[%s6339_s4 + $0x10] ss:$8 sps:$4 sm:$0xff]   ;;  %v4150_v4 = vld [vmem:[#allocation2 + $0xdc] ss:$12 sps:$4 sm:$0xff]  }
 0x122   :  { %1062 = vmatpush1.bf16.msra.mxu1 %v634_v5  ;;  %v4154_v5 = vld [vmem:[#allocation2 + $0xe0] ss:$12 sps:$4 sm:$0xff]  }
 0x123   :  { %1063 = vmatprep.subr.bf16.mxu1 %v4620_v25 }
 0x124   :  { %v3883_v6 = vpop.f32.mrb[28].mxu0 }
 0x125   :  { %v543_v7 = vpop.f32.mrb[29].mxu0 }
 0x126   :  { %v3884_v8 = vpop.f32.mrb[30].mxu0  ;;  %1064 = vmatpush1.bf16.msra.mxu1 %v635_v3  ;;  %v4219_v3 = vld [vmem:[%s6339_s4 + $0x24] ss:$8 sps:$4 sm:$0xff]  }
 0x127   :  { %v637_v9 = vpack.c.bf16 %v3884_v8, %v3883_v6  ;;  %v546_v10 = vpop.f32.mrb[31].mxu0  ;;  %1065 = vmatprep.subr.bf16.mxu1 %v4620_v25  ;;  %v4161_v6 = vld [vmem:[#allocation2 + $0xf8] ss:$12 sps:$4 sm:$0xff]   ;;  %v4222_v8 = vld [vmem:[%s6339_s4 + $0x34] ss:$8 sps:$4 sm:$0xff]  }
 0x128   :  { %v636_v11 = vpack.c.bf16 %v546_v10, %v543_v7  ;;  %v4217_v7 = vld [vmem:[%s6339_s4 + $0x20] ss:$8 sps:$4 sm:$0xff]   ;;  %v4152_v10 = vld [vmem:[#allocation2 + $0xd8] ss:$12 sps:$4 sm:$0xff]  }
 0x12a   :  { %1066 = vmatpush1.bf16.msra.mxu1 %v636_v11  ;;  %v4155_v11 = vld [vmem:[#allocation2 + $0xf4] ss:$12 sps:$4 sm:$0xff]  }
 0x12b   :  { %1067 = vmatprep.subr.bf16.mxu1 %v4620_v25 }
 0x12c   :  { %v3887_v12 = vpop.f32.mrb[32].mxu0 }
 0x12d   :  { %v559_v13 = vpop.f32.mrb[33].mxu0 }
 0x12e   :  { %v3888_v15 = vpop.f32.mrb[34].mxu0  ;;  %1068 = vmatpush1.bf16.msra.mxu1 %v637_v9  ;;  %v4220_v9 = vld [vmem:[%s6339_s4 + $0x30] ss:$8 sps:$4 sm:$0xff]  }
 0x12f   :  { %v639_v17 = vpack.c.bf16 %v3888_v15, %v3887_v12  ;;  %v562_v18 = vpop.f32.mrb[35].mxu0  ;;  %2062 = vmatprep.subr.bf16.mxu1 %v4620_v25  ;;  %v4162_v12 = vld [vmem:[#allocation2 + $0x110] ss:$12 sps:$4 sm:$0xff]   ;;  %v4158_v15 = vld [vmem:[#allocation2 + $0x10c] ss:$12 sps:$4 sm:$0xff]  }
 0x130   :  { %v638_v19 = vpack.c.bf16 %v562_v18, %v559_v13  ;;  %v4169_v13 = vld [vmem:[#allocation2 + $0x128] ss:$12 sps:$4 sm:$0xff]  }
 0x131   :  { %1070 = vmatmul.mubr.bf16.vlgmr.msra.gmra.mrb[0].mxu1 %v4115_v14  ;;  %v4157_v14 = vld [vmem:[#allocation2 + $0xf0] ss:$12 sps:$4 sm:$0xff]   ;;  %v4160_v18 = vld [vmem:[#allocation2 + $0x108] ss:$12 sps:$4 sm:$0xff]  }
 0x132   :  { %3901 = vmatprep.subr.bf16.mxu0 %v638_v19  ;;  %1077 = vmatprep.mubr.bf16.mxu1 %v4118_v16  ;;  %v4170_v16 = vld [vmem:[#allocation2 + $0x140] ss:$12 sps:$4 sm:$0xff]  }
 0x133   :  { %3902 = vmatpush3.bf16.msra.mxu0 %v638_v19  ;;  %v4223_v19 = vld [vmem:[%s6339_s4 + $0x40] ss:$8 sps:$4 sm:$0xff]  }
 0x134   :  { %v3891_v20 = vpop.f32.mrb[36].mxu0  ;;  %3903 = vmatprep.subr.bf16.mxu0 %v639_v17 }
 0x135   :  { %v575_v21 = vpop.f32.mrb[37].mxu0 }
 0x136   :  { %v3892_v23 = vpop.f32.mrb[38].mxu0 }
 0x137   :  { %v641_v27 = vpack.c.bf16 %v3892_v23, %v3891_v20  ;;  %v578_v28 = vpop.f32.mrb[39].mxu0  ;;  %3904 = vmatpush3.bf16.msra.mxu0 %v639_v17  ;;  %v4177_v17 = vld [vmem:[#allocation2 + $0x158] ss:$12 sps:$4 sm:$0xff]   ;;  %v4185_v23 = vld [vmem:[#allocation2 + $0x188] ss:$12 sps:$4 sm:$0xff]  }
 0x138   :  { %v640_v29 = vpack.c.bf16 %v578_v28, %v575_v21  ;;  %v4225_v20 = vld [vmem:[%s6339_s4 + $0x44] ss:$8 sps:$4 sm:$0xff]   ;;  %v4228_v28 = vld [vmem:[%s6339_s4 + $0x54] ss:$8 sps:$4 sm:$0xff]  }
 0x139   :  { %1078 = vmatmul.mubr.bf16.gmra.mrb[4].mxu1 %v4120_v22  ;;  %v4163_v21 = vld [vmem:[#allocation2 + $0x124] ss:$12 sps:$4 sm:$0xff]  }
 0x13a   :  { %3905 = vmatprep.subr.bf16.mxu0 %v640_v29  ;;  %1085 = vmatprep.mubr.bf16.mxu1 %v4123_v24  ;;  %v4178_v22 = vld [vmem:[#allocation2 + $0x170] ss:$12 sps:$4 sm:$0xff]   ;;  %v4165_v24 = vld [vmem:[#allocation2 + $0x120] ss:$12 sps:$4 sm:$0xff]  }
 0x13b   :  { %3906 = vmatpush3.bf16.msra.mxu0 %v640_v29  ;;  %v4166_v29 = vld [vmem:[#allocation2 + $0x13c] ss:$12 sps:$4 sm:$0xff]  }
 0x13c   :  { %v3895_v30 = vpop.f32.mrb[40].mxu0  ;;  %3907 = vmatprep.subr.bf16.mxu0 %v641_v27 }
 0x13d   :  { %v591_v31 = vpop.f32.mrb[41].mxu0 }
 0x13e   :  { %v3896_v33 = vpop.f32.mrb[42].mxu0 }
 0x13f   :  { %v643_v35 = vpack.c.bf16 %v3896_v33, %v3895_v30  ;;  %v594_v36 = vpop.f32.mrb[43].mxu0  ;;  %3908 = vmatpush3.bf16.msra.mxu0 %v641_v27  ;;  %v4226_v27 = vld [vmem:[%s6339_s4 + $0x50] ss:$8 sps:$4 sm:$0xff]   ;;  %v4186_v30 = vld [vmem:[#allocation2 + $0x1a0] ss:$12 sps:$4 sm:$0xff]  }
 0x140   :  { %v642_v37 = vpack.c.bf16 %v594_v36, %v591_v31  ;;  %v4190_v31 = vld [vmem:[#allocation2 + $0x1b8] ss:$12 sps:$4 sm:$0xff]   ;;  %v4171_v33 = vld [vmem:[#allocation2 + $0x154] ss:$12 sps:$4 sm:$0xff]   ;;  %v4173_v36 = vld [vmem:[#allocation2 + $0x150] ss:$12 sps:$4 sm:$0xff]  }
 0x141   :  { %1086 = vmatmul.mubr.bf16.gmra.mrb[8].mxu1 %v4125_v32  ;;  %v4168_v32 = vld [vmem:[#allocation2 + $0x138] ss:$12 sps:$4 sm:$0xff]  }
 0x142   :  { %3909 = vmatprep.subr.bf16.mxu0 %v642_v37  ;;  %1093 = vmatprep.mubr.bf16.mxu1 %v4126_v34  ;;  %v4191_v34 = vld [vmem:[#allocation2 + $0x1d0] ss:$12 sps:$4 sm:$0xff]  }
 0x143   :  { %3910 = vmatpush3.bf16.msra.mxu0 %v642_v37  ;;  %v4174_v37 = vld [vmem:[#allocation2 + $0x16c] ss:$12 sps:$4 sm:$0xff]  }
 0x144   :  { %v3899_v38 = vpop.f32.mrb[44].mxu0  ;;  %3911 = vmatprep.subr.bf16.mxu0 %v643_v35 }
 0x145   :  { %v607_v39 = vpop.f32.mrb[45].mxu0 }
 0x146   :  { %v3900_v41 = vpop.f32.mrb[46].mxu0 }
 0x147   :  { %v645_v43 = vpack.c.bf16 %v3900_v41, %v3899_v38  ;;  %v610_v44 = vpop.f32.mrb[47].mxu0  ;;  %3912 = vmatpush3.bf16.msra.mxu0 %v643_v35  ;;  %v4198_v35 = vld [vmem:[#allocation2 + $0x1e8] ss:$12 sps:$4 sm:$0xff]   ;;  %v4199_v38 = vld [vmem:[#allocation2 + $0x200] ss:$12 sps:$4 sm:$0xff]  }
 0x148   :  { %v644_v45 = vpack.c.bf16 %v610_v44, %v607_v39  ;;  %v4206_v39 = vld [vmem:[#allocation2 + $0x218] ss:$12 sps:$4 sm:$0xff]   ;;  %v4229_v44 = vld [vmem:[%s6339_s4 + $0x60] ss:$8 sps:$4 sm:$0xff]  }
 0x149   :  { %1094 = vmatmul.mubr.bf16.gmra.mrb[12].mxu1 %v4128_v40  ;;  %v4176_v40 = vld [vmem:[#allocation2 + $0x168] ss:$12 sps:$4 sm:$0xff]   ;;  %v4231_v41 = vld [vmem:[%s6339_s4 + $0x64] ss:$8 sps:$4 sm:$0xff]  }
 0x14a   :  { %3913 = vmatprep.subr.bf16.mxu0 %v644_v45  ;;  %1101 = vmatprep.mubr.bf16.mxu1 %v4131_v42  ;;  %v4179_v42 = vld [vmem:[#allocation2 + $0x184] ss:$12 sps:$4 sm:$0xff]  }
 0x14b   :  { %3914 = vmatpush3.bf16.msra.mxu0 %v644_v45  ;;  %v4234_v45 = vld [vmem:[%s6339_s4 + $0x74] ss:$8 sps:$4 sm:$0xff]  }
 0x14c   :  { %3915 = vmatprep.subr.bf16.mxu0 %v645_v43 }
 0x14f   :  { %3916 = vmatpush3.bf16.msra.mxu0 %v645_v43  ;;  %v4207_v43 = vld [vmem:[#allocation2 + $0x230] ss:$12 sps:$4 sm:$0xff]  }
 0x150   :  { %1655 = vmatprep.subr.bf16.mxu0 %v4213_v63 }
 0x151   :  { %1102 = vmatmul.mubr.bf16.gmra.mrb[16].mxu1 %v4133_v46  ;;  %v4232_v46 = vld [vmem:[%s6339_s4 + $0x70] ss:$8 sps:$4 sm:$0xff]  }
 0x152   :  { %3918 = vmatmul.mubr.bf16.vlgmr.msra.gmra.mrb[48].mxu0 %v4122_v47  ;;  %1109 = vmatprep.mubr.bf16.mxu1 %v4134_v48  ;;  %v4181_v47 = vld [vmem:[#allocation2 + $0x180] ss:$12 sps:$4 sm:$0xff]   ;;  %v4182_v48 = vld [vmem:[#allocation2 + $0x19c] ss:$12 sps:$4 sm:$0xff]  }
 0x153   :  { %3921 = vmatprep.mubr.bf16.mxu0 %v4129_v49  ;;  %1656 = vmatpush1.bf16.msra.mxu0 %v4211_v62  ;;  %v4184_v49 = vld [vmem:[#allocation2 + $0x198] ss:$12 sps:$4 sm:$0xff]  }
 0x154   :  { %1657 = vmatprep.subr.bf16.mxu0 %v4216_v0 }
 0x157   :  { %1658 = vmatpush1.bf16.msra.mxu0 %v4214_v1 }
 0x158   :  { %1659 = vmatprep.subr.bf16.mxu0 %v4219_v3 }
 0x159   :  { %1110 = vmatmul.mubr.bf16.gmra.mrb[20].mxu1 %v4136_v50  ;;  %v4187_v50 = vld [vmem:[#allocation2 + $0x1b4] ss:$12 sps:$4 sm:$0xff]  }
 0x15a   :  { %3922 = vmatmul.mubr.bf16.gmra.mrb[52].mxu0 %v4130_v51  ;;  %1117 = vmatprep.mubr.bf16.mxu1 %v4139_v52  ;;  %v4189_v51 = vld [vmem:[#allocation2 + $0x1b0] ss:$12 sps:$4 sm:$0xff]   ;;  %v4192_v52 = vld [vmem:[#allocation2 + $0x1cc] ss:$12 sps:$4 sm:$0xff]  }
 0x15b   :  { %3925 = vmatprep.mubr.bf16.mxu0 %v4137_v53  ;;  %1660 = vmatpush1.bf16.msra.mxu0 %v4217_v7  ;;  %v4194_v53 = vld [vmem:[#allocation2 + $0x1c8] ss:$12 sps:$4 sm:$0xff]  }
 0x15c   :  { %1661 = vmatprep.subr.bf16.mxu0 %v4222_v8 }
 0x15f   :  { %1662 = vmatpush1.bf16.msra.mxu0 %v4220_v9 }
 0x160   :  { %1663 = vmatprep.subr.bf16.mxu0 %v4225_v20 }
 0x161   :  { %1118 = vmatmul.mubr.bf16.gmra.mrb[24].mxu1 %v4141_v54  ;;  %v4195_v54 = vld [vmem:[#allocation2 + $0x1e4] ss:$12 sps:$4 sm:$0xff]  }
 0x162   :  { %3926 = vmatmul.mubr.bf16.gmra.mrb[56].mxu0 %v4138_v55  ;;  %1125 = vmatprep.mubr.bf16.mxu1 %v4142_v56  ;;  %v4197_v55 = vld [vmem:[#allocation2 + $0x1e0] ss:$12 sps:$4 sm:$0xff]   ;;  %v4200_v56 = vld [vmem:[#allocation2 + $0x1fc] ss:$12 sps:$4 sm:$0xff]  }
 0x163   :  { %3929 = vmatprep.mubr.bf16.mxu0 %v4145_v57  ;;  %1664 = vmatpush1.bf16.msra.mxu0 %v4223_v19  ;;  %v4202_v57 = vld [vmem:[#allocation2 + $0x1f8] ss:$12 sps:$4 sm:$0xff]  }
 0x164   :  { %1665 = vmatprep.subr.bf16.mxu0 %v4228_v28 }
 0x167   :  { %1666 = vmatpush1.bf16.msra.mxu0 %v4226_v27 }
 0x168   :  { %1667 = vmatprep.subr.bf16.mxu0 %v4231_v41 }
 0x169   :  { %1126 = vmatmul.mubr.bf16.gmra.mrb[28].mxu1 %v4144_v58  ;;  %v4203_v58 = vld [vmem:[#allocation2 + $0x214] ss:$12 sps:$4 sm:$0xff]  }
 0x16a   :  { %3930 = vmatmul.mubr.bf16.gmra.mrb[60].mxu0 %v4146_v59  ;;  %1133 = vmatprep.mubr.bf16.mxu1 %v4147_v60  ;;  %v4205_v59 = vld [vmem:[#allocation2 + $0x210] ss:$12 sps:$4 sm:$0xff]   ;;  %v4208_v60 = vld [vmem:[#allocation2 + $0x22c] ss:$12 sps:$4 sm:$0xff]  }
 0x16b   :  { %3933 = vmatprep.mubr.bf16.mxu0 %v4153_v61  ;;  %1668 = vmatpush1.bf16.msra.mxu0 %v4229_v44  ;;  %v4210_v61 = vld [vmem:[#allocation2 + $0x228] ss:$12 sps:$4 sm:$0xff]  }
 0x16c   :  { %1669 = vmatprep.subr.bf16.mxu0 %v4234_v45 }
 0x16f   :  { %1670 = vmatpush1.bf16.msra.mxu0 %v4232_v46 }
 0x171   :  { %1134 = vmatmul.mubr.bf16.gmra.mrb[32].mxu1 %v4149_v2 }
 0x172   :  { %1141 = vmatprep.mubr.bf16.mxu1 %v4150_v4  ;;  %3934 = vmatmul.mubr.bf16.gmra.mrb[64].mxu0 %v4154_v5 }
 0x173   :  { %3937 = vmatprep.mubr.bf16.mxu0 %v4161_v6 }
 0x179   :  { %1142 = vmatmul.mubr.bf16.gmra.mrb[36].mxu1 %v4152_v10 }
 0x17a   :  { %1149 = vmatprep.mubr.bf16.mxu1 %v4155_v11  ;;  %3938 = vmatmul.mubr.bf16.gmra.mrb[68].mxu0 %v4162_v12 }
 0x17b   :  { %3941 = vmatprep.mubr.bf16.mxu0 %v4169_v13  ;;  %v4870_v13 = vld [vmem:[%s6338_s3] ss:$0 sm:$0xff] }
 0x181   :  { %1150 = vmatmul.mubr.bf16.gmra.mrb[40].mxu1 %v4157_v14 }
 0x182   :  { %1157 = vmatprep.mubr.bf16.mxu1 %v4158_v15  ;;  %3942 = vmatmul.mubr.bf16.gmra.mrb[72].mxu0 %v4170_v16 }
 0x183   :  { %3945 = vmatprep.mubr.bf16.mxu0 %v4177_v17 }
 0x189   :  { %1158 = vmatmul.mubr.bf16.gmra.mrb[44].mxu1 %v4160_v18 }
 0x18a   :  { %1165 = vmatprep.mubr.bf16.mxu1 %v4163_v21  ;;  %3946 = vmatmul.mubr.bf16.gmra.mrb[76].mxu0 %v4178_v22 }
 0x18b   :  { %3949 = vmatprep.mubr.bf16.mxu0 %v4185_v23 }
 0x191   :  { %1166 = vmatmul.mubr.bf16.gmra.mrb[48].mxu1 %v4165_v24 }
 0x192   :  { %1173 = vmatprep.mubr.bf16.mxu1 %v4166_v29  ;;  %3950 = vmatmul.mubr.bf16.gmra.mrb[80].mxu0 %v4186_v30 }
 0x193   :  { %3953 = vmatprep.mubr.bf16.mxu0 %v4190_v31 }
 0x199   :  { %1174 = vmatmul.mubr.bf16.gmra.mrb[52].mxu1 %v4168_v32 }
 0x19a   :  { %1181 = vmatprep.mubr.bf16.mxu1 %v4171_v33  ;;  %3954 = vmatmul.mubr.bf16.gmra.mrb[84].mxu0 %v4191_v34 }
 0x19b   :  { %3957 = vmatprep.mubr.bf16.mxu0 %v4198_v35 }
 0x1a1   :  { %1182 = vmatmul.mubr.bf16.gmra.mrb[56].mxu1 %v4173_v36 }
 0x1a2   :  { %1189 = vmatprep.mubr.bf16.mxu1 %v4174_v37  ;;  %3958 = vmatmul.mubr.bf16.gmra.mrb[88].mxu0 %v4199_v38 }
 0x1a3   :  { %3961 = vmatprep.mubr.bf16.mxu0 %v4206_v39 }
 0x1a9   :  { %1190 = vmatmul.mubr.bf16.gmra.mrb[60].mxu1 %v4176_v40 }
 0x1aa   :  { %1197 = vmatprep.mubr.bf16.mxu1 %v4179_v42  ;;  %3962 = vmatmul.mubr.bf16.gmra.mrb[92].mxu0 %v4207_v43 }
 0x1ab   :  { %1687 = vmatprep.mubr.bf16.mxu0 %v4620_v25 }
 0x1b1   :  { %1198 = vmatmul.mubr.bf16.gmra.mrb[64].mxu1 %v4181_v47 }
 0x1b2   :  { %1205 = vmatprep.mubr.bf16.mxu1 %v4182_v48 }
 0x1b9   :  { %1206 = vmatmul.mubr.bf16.gmra.mrb[68].mxu1 %v4184_v49 }
 0x1ba   :  { %1213 = vmatprep.mubr.bf16.mxu1 %v4187_v50 }
 0x1c1   :  { %1214 = vmatmul.mubr.bf16.gmra.mrb[72].mxu1 %v4189_v51 }
 0x1c2   :  { %1221 = vmatprep.mubr.bf16.mxu1 %v4192_v52 }
 0x1c9   :  { %1222 = vmatmul.mubr.bf16.gmra.mrb[76].mxu1 %v4194_v53 }
 0x1ca   :  { %1229 = vmatprep.mubr.bf16.mxu1 %v4195_v54 }
 0x1d1   :  { %1230 = vmatmul.mubr.bf16.gmra.mrb[80].mxu1 %v4197_v55 }
 0x1d2   :  { %1237 = vmatprep.mubr.bf16.mxu1 %v4200_v56 }
 0x1d9   :  { %1238 = vmatmul.mubr.bf16.gmra.mrb[84].mxu1 %v4202_v57 }
 0x1da   :  { %1245 = vmatprep.mubr.bf16.mxu1 %v4203_v58 }
 0x1e1   :  { %1246 = vmatmul.mubr.bf16.gmra.mrb[88].mxu1 %v4205_v59 }
 0x1e2   :  { %1253 = vmatprep.mubr.bf16.mxu1 %v4208_v60 }
 0x1e9   :  { %1254 = vmatmul.mubr.bf16.gmra.mrb[92].mxu1 %v4210_v61 }
 0x1ea   :  { %2094 = vmatprep.mubr.bf16.mxu1 %v4798_v26 }
 0x204   :  { %v1071_v62 = vpop.f32.mrb[0].mxu1 }
 0x205   :  { %v1073_v63 = vpop.f32.mrb[1].mxu1  ;;  %v1072_v15 = vadd.f32 %v4870_v13, %v1071_v62 }
 0x206   :  { %v1074_v0 = vpop.f32.mrb[2].mxu1 }
 0x207   :  { %v1076_v1 = vpop.f32.mrb[3].mxu1  ;;  %v1075_v23 = vadd.f32 %v4870_v13, %v1074_v0 }
 0x20c   :  { %v1079_v2 = vpop.f32.mrb[4].mxu1 }
 0x20d   :  { %v1081_v3 = vpop.f32.mrb[5].mxu1  ;;  %v1080_v14 = vadd.f32 %v4870_v13, %v1079_v2 }
 0x20e   :  { %v1082_v4 = vpop.f32.mrb[6].mxu1 }
 0x20f   :  { %v1084_v5 = vpop.f32.mrb[7].mxu1  ;;  %v1083_v16 = vadd.f32 %v4870_v13, %v1082_v4 }
 0x214   :  { %v1087_v6 = vpop.f32.mrb[8].mxu1 }
 0x215   :  { %v1089_v7 = vpop.f32.mrb[9].mxu1  ;;  %v1088_v37 = vadd.f32 %v4870_v13, %v1087_v6 }
 0x216   :  { %v1090_v8 = vpop.f32.mrb[10].mxu1 }
 0x217   :  { %v1092_v9 = vpop.f32.mrb[11].mxu1  ;;  %v1091_v42 = vadd.f32 %v4870_v13, %v1090_v8 }
 0x21c   :  { %v1095_v10 = vpop.f32.mrb[12].mxu1 }
 0x21d   :  { %v1097_v11 = vpop.f32.mrb[13].mxu1  ;;  %v1096_v34 = vadd.f32 %v4870_v13, %v1095_v10 }
 0x21e   :  { %v1098_v12 = vpop.f32.mrb[14].mxu1 }
 0x21f   :  { %v1100_v26 = vpop.f32.mrb[15].mxu1  ;;  %v1099_v39 = vadd.f32 %v4870_v13, %v1098_v12 }
 0x224   :  { %v1103_v17 = vpop.f32.mrb[16].mxu1 }
 0x225   :  { %v3919_v18 = vpop.f32.mrb[48].mxu0  ;;  %v1105_v19 = vpop.f32.mrb[17].mxu1  ;;  %v1104_v59 = vadd.f32 %v4870_v13, %v1103_v17 }
 0x226   :  { %v1305_v20 = vadd.f32 %v3919_v18, %v1080_v14  ;;  %v1296_v21 = vpop.f32.mrb[49].mxu0  ;;  %v1106_v22 = vpop.f32.mrb[18].mxu1 }
 0x227   :  { %v1297_v24 = vadd.f32 %v1296_v21, %v1072_v15  ;;  %v3920_v27 = vpop.f32.mrb[50].mxu0  ;;  %v1108_v28 = vpop.f32.mrb[19].mxu1  ;;  %v1107_v0 = vadd.f32 %v4870_v13, %v1106_v22 }
 0x228   :  { %v1308_v29 = vadd.f32 %v3920_v27, %v1083_v16  ;;  %v1299_v30 = vpop.f32.mrb[51].mxu0  ;;  %v1489_v32 = vmax.f32 %v1305_v20, 0.0 }
 0x229   :  { %v1300_v31 = vadd.f32 %v1299_v30, %v1075_v23  ;;  %v1487_v35 = vmax.f32 %v1297_v24, 0.0 }
 0x22a   :  { %v1490_v33 = vmax.f32 %v1308_v29, 0.0 }
 0x22b   :  { %v1488_v36 = vmax.f32 %v1300_v31, 0.0 }
 0x22c   :  { %v1536_v38 = vpack.c.bf16 %v1490_v33, %v1489_v32  ;;  %v1111_v40 = vpop.f32.mrb[20].mxu1 }
 0x22d   :  { %v1535_v41 = vpack.c.bf16 %v1488_v36, %v1487_v35  ;;  %v3923_v43 = vpop.f32.mrb[52].mxu0  ;;  %v1113_v44 = vpop.f32.mrb[21].mxu1  ;;  %v1112_v57 = vadd.f32 %v4870_v13, %v1111_v40 }
 0x22e   :  { %v1321_v45 = vadd.f32 %v3923_v43, %v1096_v34  ;;  %v1312_v46 = vpop.f32.mrb[53].mxu0  ;;  %v1114_v47 = vpop.f32.mrb[22].mxu1 }
 0x22f   :  { %1688 = vmatmul.mubr.bf16.vlgmr.msra.gmra.mrb[96].mxu0 %v1535_v41  ;;  %v1313_v48 = vadd.f32 %v1312_v46, %v1088_v37  ;;  %v3924_v49 = vpop.f32.mrb[54].mxu0  ;;  %v1116_v50 = vpop.f32.mrb[23].mxu1  ;;  %v1115_v61 = vadd.f32 %v4870_v13, %v1114_v47 }
 0x230   :  { %v1493_v51 = vmax.f32 %v1321_v45, 0.0  ;;  %v1324_v52 = vadd.f32 %v3924_v49, %v1099_v39  ;;  %v1315_v53 = vpop.f32.mrb[55].mxu0  ;;  %1697 = vmatprep.mubr.bf16.mxu0 %v4620_v25 }
 0x231   :  { %v1491_v54 = vmax.f32 %v1313_v48, 0.0  ;;  %v1316_v55 = vadd.f32 %v1315_v53, %v1091_v42 }
 0x232   :  { %v1494_v56 = vmax.f32 %v1324_v52, 0.0 }
 0x233   :  { %v1492_v58 = vmax.f32 %v1316_v55, 0.0 }
 0x234   :  { %v1538_v60 = vpack.c.bf16 %v1494_v56, %v1493_v51  ;;  %v1119_v62 = vpop.f32.mrb[24].mxu1 }
 0x235   :  { %v1537_v63 = vpack.c.bf16 %v1492_v58, %v1491_v54  ;;  %v3927_v1 = vpop.f32.mrb[56].mxu0  ;;  %v1121_v2 = vpop.f32.mrb[25].mxu1  ;;  %v1120_v16 = vadd.f32 %v4870_v13, %v1119_v62 }
 0x236   :  { %v1337_v3 = vadd.f32 %v3927_v1, %v1112_v57  ;;  %v1328_v4 = vpop.f32.mrb[57].mxu0  ;;  %v1122_v5 = vpop.f32.mrb[26].mxu1 }
 0x237   :  { %1698 = vmatmul.mubr.bf16.gmra.mrb[100].mxu0 %v1536_v38  ;;  %v1329_v6 = vadd.f32 %v1328_v4, %v1104_v59  ;;  %v3928_v7 = vpop.f32.mrb[58].mxu0  ;;  %v1124_v8 = vpop.f32.mrb[27].mxu1  ;;  %v1123_v20 = vadd.f32 %v4870_v13, %v1122_v5 }
 0x238   :  { %1707 = vmatprep.mubr.bf16.mxu0 %v4620_v25  ;;  %v1497_v9 = vmax.f32 %v1337_v3, 0.0  ;;  %v1340_v10 = vadd.f32 %v3928_v7, %v1115_v61  ;;  %v1331_v11 = vpop.f32.mrb[59].mxu0 }
 0x239   :  { %v1495_v12 = vmax.f32 %v1329_v6, 0.0  ;;  %v1332_v26 = vadd.f32 %v1331_v11, %v1107_v0 }
 0x23a   :  { %v1498_v14 = vmax.f32 %v1340_v10, 0.0 }
 0x23b   :  { %v1496_v15 = vmax.f32 %v1332_v26, 0.0 }
 0x23c   :  { %v4887_v17 = vpack.c.bf16 %v1498_v14, %v1497_v9  ;;  %v1127_v18 = vpop.f32.mrb[28].mxu1 }
 0x23d   :  { %v1539_v19 = vpack.c.bf16 %v1496_v15, %v1495_v12  ;;  %v1128_v21 = vadd.f32 %v4870_v13, %v1127_v18  ;;  %v1129_v22 = vpop.f32.mrb[29].mxu1  ;;  %v3931_v23 = vpop.f32.mrb[60].mxu0 }
 0x23e   :  { %v1130_v24 = vpop.f32.mrb[30].mxu1  ;;  %v1344_v27 = vpop.f32.mrb[61].mxu0 }
 0x23f   :  { %1708 = vmatmul.mubr.bf16.gmra.mrb[104].mxu0 %v1537_v63  ;;  %v1353_v28 = vadd.f32 %v3931_v23, %v1128_v21  ;;  %v1131_v29 = vadd.f32 %v4870_v13, %v1130_v24  ;;  %v1345_v30 = vadd.f32 %v1344_v27, %v1120_v16  ;;  %v3932_v31 = vpop.f32.mrb[62].mxu0  ;;  %v1132_v32 = vpop.f32.mrb[31].mxu1 }
 0x240   :  { %1717 = vmatprep.mubr.bf16.mxu0 %v4620_v25  ;;  %v1347_v33 = vpop.f32.mrb[63].mxu0 }
 0x241   :  { %v1501_v34 = vmax.f32 %v1353_v28, 0.0  ;;  %v1499_v35 = vmax.f32 %v1345_v30, 0.0  ;;  %v1356_v36 = vadd.f32 %v3932_v31, %v1131_v29  ;;  %v1348_v37 = vadd.f32 %v1347_v33, %v1123_v20 }
 0x243   :  { %v1502_v38 = vmax.f32 %v1356_v36, 0.0  ;;  %v1500_v39 = vmax.f32 %v1348_v37, 0.0 }
 0x244   :  { %v1135_v40 = vpop.f32.mrb[32].mxu1 }
 0x245   :  { %v4893_v41 = vpack.c.bf16 %v1502_v38, %v1501_v34  ;;  %v1541_v42 = vpack.c.bf16 %v1500_v39, %v1499_v35  ;;  %v1136_v43 = vadd.f32 %v4870_v13, %v1135_v40  ;;  %v1137_v44 = vpop.f32.mrb[33].mxu1  ;;  %v3935_v45 = vpop.f32.mrb[64].mxu0 }
 0x246   :  { %v1138_v46 = vpop.f32.mrb[34].mxu1  ;;  %v1360_v47 = vpop.f32.mrb[65].mxu0 }
 0x247   :  { %1718 = vmatmul.mubr.bf16.gmra.mrb[108].mxu0 %v1538_v60  ;;  %v1139_v48 = vadd.f32 %v4870_v13, %v1138_v46  ;;  %v1140_v49 = vpop.f32.mrb[35].mxu1  ;;  %v1361_v50 = vadd.f32 %v1360_v47, %v1136_v43  ;;  %v3936_v51 = vpop.f32.mrb[66].mxu0 }
 0x248   :  { %1727 = vmatprep.mubr.bf16.mxu0 %v4620_v25  ;;  %v1363_v52 = vpop.f32.mrb[67].mxu0 }
 0x249   :  { %v1503_v53 = vmax.f32 %v1361_v50, 0.0  ;;  %v1364_v54 = vadd.f32 %v1363_v52, %v1139_v48 }
 0x24b   :  { %v1504_v55 = vmax.f32 %v1364_v54, 0.0 }
 0x24c   :  { %v1143_v56 = vpop.f32.mrb[36].mxu1 }
 0x24d   :  { %v1144_v57 = vadd.f32 %v4870_v13, %v1143_v56  ;;  %v1145_v58 = vpop.f32.mrb[37].mxu1  ;;  %v4899_v59 = vpack.c.bf16 %v1504_v55, %v1503_v53  ;;  %v3939_v61 = vpop.f32.mrb[68].mxu0 }
 0x24e   :  { %v1146_v62 = vpop.f32.mrb[38].mxu1  ;;  %v1376_v60 = vpop.f32.mrb[69].mxu0 }
 0x24f   :  { %1728 = vmatmul.mubr.bf16.gmra.mrb[112].mxu0 %v1539_v19  ;;  %v1369_v63 = vadd.f32 %v3935_v45, %v1144_v57  ;;  %v1147_v0 = vadd.f32 %v4870_v13, %v1146_v62  ;;  %v1148_v1 = vpop.f32.mrb[39].mxu1  ;;  %v3940_v2 = vpop.f32.mrb[70].mxu0 }
 0x250   :  { %1737 = vmatprep.mubr.bf16.mxu0 %v4620_v25  ;;  %v1379_v3 = vpop.f32.mrb[71].mxu0 }
 0x251   :  { %v1505_v4 = vmax.f32 %v1369_v63, 0.0  ;;  %v1372_v5 = vadd.f32 %v3936_v51, %v1147_v0 }
 0x253   :  { %v1506_v6 = vmax.f32 %v1372_v5, 0.0 }
 0x254   :  { %v1151_v7 = vpop.f32.mrb[40].mxu1 }
 0x255   :  { %v4903_v8 = vpack.c.bf16 %v1506_v6, %v1505_v4  ;;  %v1152_v9 = vadd.f32 %v4870_v13, %v1151_v7  ;;  %v1153_v10 = vpop.f32.mrb[41].mxu1  ;;  %v3943_v11 = vpop.f32.mrb[72].mxu0 }
 0x256   :  { %v1154_v12 = vpop.f32.mrb[42].mxu1  ;;  %v1392_v26 = vpop.f32.mrb[73].mxu0 }
 0x257   :  { %1738 = vmatmul.mubr.bf16.gmra.mrb[116].mxu0 %v4887_v17  ;;  %v1155_v14 = vadd.f32 %v4870_v13, %v1154_v12  ;;  %v1156_v15 = vpop.f32.mrb[43].mxu1  ;;  %v1377_v16 = vadd.f32 %v1376_v60, %v1152_v9  ;;  %v3944_v18 = vpop.f32.mrb[74].mxu0 }
 0x258   :  { %1747 = vmatprep.mubr.bf16.mxu0 %v4620_v25  ;;  %v1395_v19 = vpop.f32.mrb[75].mxu0 }
 0x259   :  { %v1507_v20 = vmax.f32 %v1377_v16, 0.0  ;;  %v1380_v21 = vadd.f32 %v1379_v3, %v1155_v14 }
 0x25b   :  { %v1508_v22 = vmax.f32 %v1380_v21, 0.0 }
 0x25c   :  { %v1159_v23 = vpop.f32.mrb[44].mxu1 }
 0x25d   :  { %v1160_v24 = vadd.f32 %v4870_v13, %v1159_v23  ;;  %v1161_v27 = vpop.f32.mrb[45].mxu1  ;;  %v4910_v28 = vpack.c.bf16 %v1508_v22, %v1507_v20  ;;  %v4912_v29 = vpop.f32.mrb[76].mxu0 }
 0x25e   :  { %v1162_v17 = vpop.f32.mrb[46].mxu1  ;;  %v1408_v30 = vpop.f32.mrb[77].mxu0 }
 0x25f   :  { %1748 = vmatmul.mubr.bf16.gmra.mrb[120].mxu0 %v1541_v42  ;;  %v1385_v31 = vadd.f32 %v3939_v61, %v1160_v24  ;;  %v1163_v32 = vadd.f32 %v4870_v13, %v1162_v17  ;;  %v1164_v33 = vpop.f32.mrb[47].mxu1  ;;  %v4915_v34 = vpop.f32.mrb[78].mxu0 }
 0x260   :  { %1757 = vmatprep.mubr.bf16.mxu0 %v4620_v25  ;;  %v1411_v35 = vpop.f32.mrb[79].mxu0 }
 0x261   :  { %v1509_v36 = vmax.f32 %v1385_v31, 0.0  ;;  %v1388_v37 = vadd.f32 %v3940_v2, %v1163_v32 }
 0x263   :  { %v1510_v38 = vmax.f32 %v1388_v37, 0.0 }
 0x264   :  { %v1167_v39 = vpop.f32.mrb[48].mxu1 }
 0x265   :  { %v4918_v40 = vpack.c.bf16 %v1510_v38, %v1509_v36  ;;  %v1168_v43 = vadd.f32 %v4870_v13, %v1167_v39  ;;  %v1169_v44 = vpop.f32.mrb[49].mxu1  ;;  %v4921_v45 = vpop.f32.mrb[80].mxu0 }
 0x266   :  { %v1170_v42 = vpop.f32.mrb[50].mxu1  ;;  %v4923_v46 = vpop.f32.mrb[81].mxu0 }
 0x267   :  { %1758 = vmatmul.mubr.bf16.gmra.mrb[124].mxu0 %v4893_v41  ;;  %v1171_v47 = vadd.f32 %v4870_v13, %v1170_v42  ;;  %v1172_v48 = vpop.f32.mrb[51].mxu1  ;;  %v1393_v49 = vadd.f32 %v1392_v26, %v1168_v43  ;;  %v4927_v50 = vpop.f32.mrb[82].mxu0 }
 0x268   :  { %1767 = vmatprep.mubr.bf16.mxu0 %v4620_v25  ;;  %v4930_v51 = vpop.f32.mrb[83].mxu0 }
 0x269   :  { %v1511_v52 = vmax.f32 %v1393_v49, 0.0  ;;  %v1396_v53 = vadd.f32 %v1395_v19, %v1171_v47 }
 0x26b   :  { %v1512_v54 = vmax.f32 %v1396_v53, 0.0 }
 0x26c   :  { %v1175_v55 = vpop.f32.mrb[52].mxu1 }
 0x26d   :  { %v1176_v56 = vadd.f32 %v4870_v13, %v1175_v55  ;;  %v1177_v57 = vpop.f32.mrb[53].mxu1  ;;  %v4933_v58 = vpack.c.bf16 %v1512_v54, %v1511_v52  ;;  %v4935_v41 = vpop.f32.mrb[84].mxu0 }
 0x26e   :  { %v1178_v61 = vpop.f32.mrb[54].mxu1  ;;  %v4937_v62 = vpop.f32.mrb[85].mxu0 }
 0x26f   :  { %1768 = vmatmul.mubr.bf16.gmra.mrb[128].mxu0 %v4899_v59  ;;  %v1401_v60 = vadd.f32 %v3943_v11, %v1176_v56  ;;  %v1179_v63 = vadd.f32 %v4870_v13, %v1178_v61  ;;  %v1180_v0 = vpop.f32.mrb[55].mxu1  ;;  %v4941_v1 = vpop.f32.mrb[86].mxu0 }
 0x270   :  { %1777 = vmatprep.mubr.bf16.mxu0 %v4620_v25  ;;  %v4944_v2 = vpop.f32.mrb[87].mxu0 }
 0x271   :  { %v1513_v3 = vmax.f32 %v1401_v60, 0.0  ;;  %v1404_v4 = vadd.f32 %v3944_v18, %v1179_v63 }
 0x273   :  { %v1514_v5 = vmax.f32 %v1404_v4, 0.0 }
 0x274   :  { %v1183_v6 = vpop.f32.mrb[56].mxu1 }
 0x275   :  { %v4946_v7 = vpack.c.bf16 %v1514_v5, %v1513_v3  ;;  %v1184_v9 = vadd.f32 %v4870_v13, %v1183_v6  ;;  %v1185_v10 = vpop.f32.mrb[57].mxu1  ;;  %v4949_v59 = vpop.f32.mrb[88].mxu0 }
 0x276   :  { %v1186_v11 = vpop.f32.mrb[58].mxu1  ;;  %v4951_v12 = vpop.f32.mrb[89].mxu0 }
 0x277   :  { %1778 = vmatmul.mubr.bf16.gmra.mrb[132].mxu0 %v4903_v8  ;;  %v1187_v26 = vadd.f32 %v4870_v13, %v1186_v11  ;;  %v1188_v14 = vpop.f32.mrb[59].mxu1  ;;  %v1409_v15 = vadd.f32 %v1408_v30, %v1184_v9  ;;  %v4955_v16 = vpop.f32.mrb[90].mxu0 }
 0x278   :  { %1787 = vmatprep.mubr.bf16.mxu0 %v4620_v25  ;;  %v4958_v18 = vpop.f32.mrb[91].mxu0 }
 0x279   :  { %v1515_v19 = vmax.f32 %v1409_v15, 0.0  ;;  %v1412_v20 = vadd.f32 %v1411_v35, %v1187_v26 }
 0x27b   :  { %v1516_v21 = vmax.f32 %v1412_v20, 0.0 }
 0x27c   :  { %v1191_v22 = vpop.f32.mrb[60].mxu1 }
 0x27d   :  { %v1192_v23 = vadd.f32 %v4870_v13, %v1191_v22  ;;  %v1193_v24 = vpop.f32.mrb[61].mxu1  ;;  %v1549_v27 = vpack.c.bf16 %v1516_v21, %v1515_v19  ;;  %v4961_v17 = vpop.f32.mrb[92].mxu0 }
 0x27e   :  { %v1194_v8 = vpop.f32.mrb[62].mxu1  ;;  %v4963_v31 = vpop.f32.mrb[93].mxu0 }
 0x27f   :  { %1788 = vmatmul.mubr.bf16.gmra.mrb[136].mxu0 %v4910_v28  ;;  %v1417_v30 = vadd.f32 %v4912_v29, %v1192_v23  ;;  %v1195_v32 = vadd.f32 %v4870_v13, %v1194_v8  ;;  %v1196_v33 = vpop.f32.mrb[63].mxu1  ;;  %v4968_v36 = vpop.f32.mrb[94].mxu0 }
 0x280   :  { %1797 = vmatprep.mubr.bf16.mxu0 %v4620_v25  ;;  %v4971_v35 = vpop.f32.mrb[95].mxu0 }
 0x281   :  { %v1517_v37 = vmax.f32 %v1417_v30, 0.0  ;;  %v1420_v38 = vadd.f32 %v4915_v34, %v1195_v32 }
 0x283   :  { %v1518_v39 = vmax.f32 %v1420_v38, 0.0 }
 0x284   :  { %v1199_v43 = vpop.f32.mrb[64].mxu1 }
 0x285   :  { %v1550_v44 = vpack.c.bf16 %v1518_v39, %v1517_v37  ;;  %v1200_v42 = vadd.f32 %v4870_v13, %v1199_v43  ;;  %v1201_v28 = vpop.f32.mrb[65].mxu1 }
 0x286   :  { %v1202_v47 = vpop.f32.mrb[66].mxu1 }
 0x287   :  { %1798 = vmatmul.mubr.bf16.gmra.mrb[140].mxu0 %v4918_v40  ;;  %v1203_v29 = vadd.f32 %v4870_v13, %v1202_v47  ;;  %v1204_v48 = vpop.f32.mrb[67].mxu1  ;;  %v1425_v49 = vadd.f32 %v4923_v46, %v1200_v42 }
 0x288   :  { %1807 = vmatprep.mubr.bf16.mxu0 %v4620_v25 }
 0x289   :  { %v1519_v52 = vmax.f32 %v1425_v49, 0.0  ;;  %v1428_v53 = vadd.f32 %v4930_v51, %v1203_v29 }
 0x28b   :  { %v1520_v34 = vmax.f32 %v1428_v53, 0.0 }
 0x28c   :  { %v1207_v54 = vpop.f32.mrb[68].mxu1 }
 0x28d   :  { %v1208_v55 = vadd.f32 %v4870_v13, %v1207_v54  ;;  %v1209_v56 = vpop.f32.mrb[69].mxu1  ;;  %v1551_v57 = vpack.c.bf16 %v1520_v34, %v1519_v52 }
 0x28e   :  { %v1210_v61 = vpop.f32.mrb[70].mxu1 }
 0x28f   :  { %1808 = vmatmul.mubr.bf16.gmra.mrb[144].mxu0 %v4933_v58  ;;  %v1433_v40 = vadd.f32 %v4921_v45, %v1208_v55  ;;  %v1211_v60 = vadd.f32 %v4870_v13, %v1210_v61  ;;  %v1212_v63 = vpop.f32.mrb[71].mxu1 }
 0x290   :  { %1817 = vmatprep.mubr.bf16.mxu0 %v4620_v25 }
 0x291   :  { %v1521_v46 = vmax.f32 %v1433_v40, 0.0  ;;  %v1436_v0 = vadd.f32 %v4927_v50, %v1211_v60 }
 0x293   :  { %v1522_v51 = vmax.f32 %v1436_v0, 0.0 }
 0x294   :  { %v1215_v3 = vpop.f32.mrb[72].mxu1 }
 0x295   :  { %v1552_v4 = vpack.c.bf16 %v1522_v51, %v1521_v46  ;;  %v1216_v5 = vadd.f32 %v4870_v13, %v1215_v3  ;;  %v1217_v6 = vpop.f32.mrb[73].mxu1 }
 0x296   :  { %v1218_v9 = vpop.f32.mrb[74].mxu1 }
 0x297   :  { %1818 = vmatmul.mubr.bf16.gmra.mrb[148].mxu0 %v4946_v7  ;;  %v1219_v58 = vadd.f32 %v4870_v13, %v1218_v9  ;;  %v1441_v45 = vadd.f32 %v4937_v62, %v1216_v5  ;;  %v1220_v10 = vpop.f32.mrb[75].mxu1 }
 0x298   :  { %1827 = vmatprep.mubr.bf16.mxu0 %v4620_v25 }
 0x299   :  { %v1523_v11 = vmax.f32 %v1441_v45, 0.0  ;;  %v1444_v26 = vadd.f32 %v4944_v2, %v1219_v58 }
 0x29b   :  { %v1524_v50 = vmax.f32 %v1444_v26, 0.0 }
 0x29c   :  { %v1223_v14 = vpop.f32.mrb[76].mxu1 }
 0x29d   :  { %v1553_v15 = vpack.c.bf16 %v1524_v50, %v1523_v11  ;;  %v1224_v19 = vadd.f32 %v4870_v13, %v1223_v14  ;;  %v1225_v20 = vpop.f32.mrb[77].mxu1 }
 0x29e   :  { %v1226_v21 = vpop.f32.mrb[78].mxu1 }
 0x29f   :  { %1828 = vmatmul.mubr.bf16.gmra.mrb[152].mxu0 %v1549_v27  ;;  %v1449_v7 = vadd.f32 %v4935_v41, %v1224_v19  ;;  %v1227_v22 = vadd.f32 %v4870_v13, %v1226_v21  ;;  %v1228_v23 = vpop.f32.mrb[79].mxu1 }
 0x2a0   :  { %1837 = vmatprep.mubr.bf16.mxu0 %v4620_v25 }
 0x2a1   :  { %v1525_v62 = vmax.f32 %v1449_v7, 0.0  ;;  %v1452_v24 = vadd.f32 %v4941_v1, %v1227_v22 }
 0x2a3   :  { %v1526_v8 = vmax.f32 %v1452_v24, 0.0 }
 0x2a4   :  { %v1231_v2 = vpop.f32.mrb[80].mxu1 }
 0x2a5   :  { %v1232_v30 = vadd.f32 %v4870_v13, %v1231_v2  ;;  %v1233_v32 = vpop.f32.mrb[81].mxu1  ;;  %v1554_v33 = vpack.c.bf16 %v1526_v8, %v1525_v62 }
 0x2a6   :  { %v1234_v37 = vpop.f32.mrb[82].mxu1 }
 0x2a7   :  { %1838 = vmatmul.mubr.bf16.gmra.mrb[156].mxu0 %v1550_v44  ;;  %v1235_v27 = vadd.f32 %v4870_v13, %v1234_v37  ;;  %v1457_v41 = vadd.f32 %v4951_v12, %v1232_v30  ;;  %v1236_v38 = vpop.f32.mrb[83].mxu1 }
 0x2a8   :  { %1847 = vmatprep.mubr.bf16.mxu0 %v4620_v25 }
 0x2a9   :  { %v1527_v39 = vmax.f32 %v1457_v41, 0.0  ;;  %v1460_v43 = vadd.f32 %v4958_v18, %v1235_v27 }
 0x2ab   :  { %v1528_v42 = vmax.f32 %v1460_v43, 0.0 }
 0x2ac   :  { %v1239_v1 = vpop.f32.mrb[84].mxu1 }
 0x2ad   :  { %v1555_v28 = vpack.c.bf16 %v1528_v42, %v1527_v39  ;;  %v1240_v47 = vadd.f32 %v4870_v13, %v1239_v1  ;;  %v1241_v29 = vpop.f32.mrb[85].mxu1 }
 0x2ae   :  { %v1242_v48 = vpop.f32.mrb[86].mxu1 }
 0x2af   :  { %1848 = vmatmul.mubr.bf16.gmra.mrb[160].mxu0 %v1551_v57  ;;  %v1465_v44 = vadd.f32 %v4949_v59, %v1240_v47  ;;  %v1243_v49 = vadd.f32 %v4870_v13, %v1242_v48  ;;  %v1244_v52 = vpop.f32.mrb[87].mxu1 }
 0x2b0   :  { %1857 = vmatprep.mubr.bf16.mxu0 %v4620_v25 }
 0x2b1   :  { %v1529_v12 = vmax.f32 %v1465_v44, 0.0  ;;  %v1468_v53 = vadd.f32 %v4955_v16, %v1243_v49 }
 0x2b3   :  { %v1530_v34 = vmax.f32 %v1468_v53, 0.0 }
 0x2b4   :  { %v1247_v18 = vpop.f32.mrb[88].mxu1 }
 0x2b5   :  { %v1248_v54 = vadd.f32 %v4870_v13, %v1247_v18  ;;  %v1249_v55 = vpop.f32.mrb[89].mxu1  ;;  %v1556_v56 = vpack.c.bf16 %v1530_v34, %v1529_v12 }
 0x2b6   :  { %v1250_v61 = vpop.f32.mrb[90].mxu1 }
 0x2b7   :  { %1858 = vmatmul.mubr.bf16.gmra.mrb[164].mxu0 %v1552_v4  ;;  %v1251_v57 = vadd.f32 %v4870_v13, %v1250_v61  ;;  %v1473_v59 = vadd.f32 %v4963_v31, %v1248_v54  ;;  %v1252_v40 = vpop.f32.mrb[91].mxu1 }
 0x2b8   :  { %1867 = vmatprep.mubr.bf16.mxu0 %v4620_v25 }
 0x2b9   :  { %v1531_v60 = vmax.f32 %v1473_v59, 0.0  ;;  %v1476_v63 = vadd.f32 %v4971_v35, %v1251_v57 }
 0x2bb   :  { %v1532_v46 = vmax.f32 %v1476_v63, 0.0 }
 0x2bc   :  { %v1255_v16 = vpop.f32.mrb[92].mxu1 }
 0x2bd   :  { %v1557_v0 = vpack.c.bf16 %v1532_v46, %v1531_v60  ;;  %v1256_v51 = vadd.f32 %v4870_v13, %v1255_v16  ;;  %v1257_v3 = vpop.f32.mrb[93].mxu1 }
 0x2be   :  { %v1258_v5 = vpop.f32.mrb[94].mxu1 }
 0x2bf   :  { %1868 = vmatmul.mubr.bf16.gmra.mrb[168].mxu0 %v1553_v15  ;;  %v1481_v4 = vadd.f32 %v4961_v17, %v1256_v51  ;;  %v1259_v6 = vadd.f32 %v4870_v13, %v1258_v5  ;;  %v1260_v9 = vpop.f32.mrb[95].mxu1  ;;  %v4428_v13 = vld [vmem:[#allocation2 + $0x8] ss:$12 sps:$4 sm:$0xff]   ;;  %v5024_v17 = vld [vmem:[%s6340_s5] ss:$0 sm:$0xff] }
 0x2c0   :  { %1877 = vmatprep.mubr.bf16.mxu0 %v4620_v25 }
 0x2c1   :  { %v1533_v31 = vmax.f32 %v1481_v4, 0.0  ;;  %v1484_v58 = vadd.f32 %v4968_v36, %v1259_v6 }
 0x2c3   :  { %v1534_v45 = vmax.f32 %v1484_v58, 0.0 }
 0x2c5   :  { %v1558_v35 = vpack.c.bf16 %v1534_v45, %v1533_v31 }
 0x2c7   :  { %1878 = vmatmul.mubr.bf16.gmra.mrb[172].mxu0 %v1554_v33 }
 0x2c8   :  { %1887 = vmatprep.mubr.bf16.mxu0 %v4620_v25 }
 0x2cf   :  { %1888 = vmatmul.mubr.bf16.gmra.mrb[176].mxu0 %v1555_v28 }
 0x2d0   :  { %1897 = vmatprep.mubr.bf16.mxu0 %v4620_v25 }
 0x2d7   :  { %1898 = vmatmul.mubr.bf16.gmra.mrb[180].mxu0 %v1556_v56 }
 0x2d8   :  { %1907 = vmatprep.mubr.bf16.mxu0 %v4620_v25 }
 0x2df   :  { %1908 = vmatmul.mubr.bf16.gmra.mrb[184].mxu0 %v1557_v0 }
 0x2e0   :  { %1917 = vmatprep.mubr.bf16.mxu0 %v4620_v25 }
 0x2e7   :  { %1918 = vmatmul.mubr.bf16.gmra.mrb[188].mxu0 %v1558_v35 }
 0x2e8   :  { %3981 = vmatprep.mubr.bf16.mxu0 %v4428_v13 }
 0x302   :  { %v1689_v36 = vpop.f32.mrb[96].mxu0 }
 0x303   :  { %v1935_v10 = vadd.f32 %v5024_v17, %v1689_v36  ;;  %v1691_v11 = vpop.f32.mrb[97].mxu0 }
 0x304   :  { %v1693_v26 = vpop.f32.mrb[98].mxu0 }
 0x305   :  { %1983 = vst [vmem:[#allocation5] sm:$0xff] %v1935_v10  ;;  %v1936_v50 = vadd.f32 %v5024_v17, %v1693_v26  ;;  %v1695_v14 = vpop.f32.mrb[99].mxu0 }
 0x306   :  { %v2031_v15 = vpack.c.bf16 %v1695_v14, %v1691_v11 }
 0x307   :  { %1984 = vst [vmem:[#allocation5 + $0x8] sm:$0xff] %v1936_v50 }
 0x308   :  { %2063 = vmatpush1.bf16.msra.mxu1 %v2031_v15 }
 0x309   :  { %2064 = vmatprep.subr.bf16.mxu1 %v4620_v25 }
 0x30a   :  { %v1699_v19 = vpop.f32.mrb[100].mxu0 }
 0x30b   :  { %v1937_v20 = vadd.f32 %v5024_v17, %v1699_v19  ;;  %v1701_v21 = vpop.f32.mrb[101].mxu0 }
 0x30c   :  { %v1703_v7 = vpop.f32.mrb[102].mxu0 }
 0x30d   :  { %1985 = vst [vmem:[#allocation5 + $0x10] sm:$0xff] %v1937_v20  ;;  %v1938_v22 = vadd.f32 %v5024_v17, %v1703_v7  ;;  %v1705_v23 = vpop.f32.mrb[103].mxu0 }
 0x30e   :  { %v2032_v62 = vpack.c.bf16 %v1705_v23, %v1701_v21 }
 0x30f   :  { %1986 = vst [vmem:[#allocation5 + $0x18] sm:$0xff] %v1938_v22 }
 0x310   :  { %2065 = vmatpush1.bf16.msra.mxu1 %v2032_v62 }
 0x311   :  { %2066 = vmatprep.subr.bf16.mxu1 %v4620_v25 }
 0x312   :  { %v1709_v24 = vpop.f32.mrb[104].mxu0 }
 0x313   :  { %v1939_v8 = vadd.f32 %v5024_v17, %v1709_v24  ;;  %v1711_v2 = vpop.f32.mrb[105].mxu0 }
 0x314   :  { %v1713_v30 = vpop.f32.mrb[106].mxu0 }
 0x315   :  { %1987 = vst [vmem:[#allocation5 + $0x20] sm:$0xff] %v1939_v8  ;;  %v1940_v32 = vadd.f32 %v5024_v17, %v1713_v30  ;;  %v1715_v33 = vpop.f32.mrb[107].mxu0 }
 0x316   :  { %v2033_v37 = vpack.c.bf16 %v1715_v33, %v1711_v2 }
 0x317   :  { %1988 = vst [vmem:[#allocation5 + $0x28] sm:$0xff] %v1940_v32 }
 0x318   :  { %2067 = vmatpush1.bf16.msra.mxu1 %v2033_v37 }
 0x319   :  { %2068 = vmatprep.subr.bf16.mxu1 %v4620_v25 }
 0x31a   :  { %v1719_v27 = vpop.f32.mrb[108].mxu0 }
 0x31b   :  { %v1941_v41 = vadd.f32 %v5024_v17, %v1719_v27  ;;  %v1721_v38 = vpop.f32.mrb[109].mxu0 }
 0x31c   :  { %v1723_v39 = vpop.f32.mrb[110].mxu0 }
 0x31d   :  { %1989 = vst [vmem:[#allocation5 + $0x30] sm:$0xff] %v1941_v41  ;;  %v1942_v43 = vadd.f32 %v5024_v17, %v1723_v39  ;;  %v1725_v42 = vpop.f32.mrb[111].mxu0 }
 0x31e   :  { %v2034_v1 = vpack.c.bf16 %v1725_v42, %v1721_v38 }
 0x31f   :  { %1990 = vst [vmem:[#allocation5 + $0x38] sm:$0xff] %v1942_v43 }
 0x320   :  { %2069 = vmatpush1.bf16.msra.mxu1 %v2034_v1 }
 0x321   :  { %2070 = vmatprep.subr.bf16.mxu1 %v4620_v25 }
 0x322   :  { %v1729_v28 = vpop.f32.mrb[112].mxu0 }
 0x323   :  { %v1943_v47 = vadd.f32 %v5024_v17, %v1729_v28  ;;  %v1731_v29 = vpop.f32.mrb[113].mxu0 }
 0x324   :  { %v1733_v48 = vpop.f32.mrb[114].mxu0 }
 0x325   :  { %1991 = vst [vmem:[#allocation5 + $0x40] sm:$0xff] %v1943_v47  ;;  %v1944_v44 = vadd.f32 %v5024_v17, %v1733_v48  ;;  %v1735_v49 = vpop.f32.mrb[115].mxu0 }
 0x326   :  { %v2035_v52 = vpack.c.bf16 %v1735_v49, %v1731_v29 }
 0x327   :  { %1992 = vst [vmem:[#allocation5 + $0x48] sm:$0xff] %v1944_v44 }
 0x328   :  { %2071 = vmatpush1.bf16.msra.mxu1 %v2035_v52 }
 0x329   :  { %2072 = vmatprep.subr.bf16.mxu1 %v4620_v25 }
 0x32a   :  { %v1739_v12 = vpop.f32.mrb[116].mxu0 }
 0x32b   :  { %v1945_v53 = vadd.f32 %v5024_v17, %v1739_v12  ;;  %v1741_v34 = vpop.f32.mrb[117].mxu0 }
 0x32c   :  { %v1743_v18 = vpop.f32.mrb[118].mxu0 }
 0x32d   :  { %1993 = vst [vmem:[#allocation5 + $0x50] sm:$0xff] %v1945_v53  ;;  %v1946_v54 = vadd.f32 %v5024_v17, %v1743_v18  ;;  %v1745_v55 = vpop.f32.mrb[119].mxu0 }
 0x32e   :  { %v2036_v56 = vpack.c.bf16 %v1745_v55, %v1741_v34 }
 0x32f   :  { %1994 = vst [vmem:[#allocation5 + $0x58] sm:$0xff] %v1946_v54 }
 0x330   :  { %2073 = vmatpush1.bf16.msra.mxu1 %v2036_v56 }
 0x331   :  { %2074 = vmatprep.subr.bf16.mxu1 %v4620_v25 }
 0x332   :  { %v1749_v61 = vpop.f32.mrb[120].mxu0 }
 0x333   :  { %v1947_v57 = vadd.f32 %v5024_v17, %v1749_v61  ;;  %v1751_v59 = vpop.f32.mrb[121].mxu0 }
 0x334   :  { %v1753_v40 = vpop.f32.mrb[122].mxu0 }
 0x335   :  { %1995 = vst [vmem:[#allocation5 + $0x60] sm:$0xff] %v1947_v57  ;;  %v1948_v60 = vadd.f32 %v5024_v17, %v1753_v40  ;;  %v1755_v63 = vpop.f32.mrb[123].mxu0 }
 0x336   :  { %v2037_v46 = vpack.c.bf16 %v1755_v63, %v1751_v59 }
 0x337   :  { %1996 = vst [vmem:[#allocation5 + $0x68] sm:$0xff] %v1948_v60 }
 0x338   :  { %2075 = vmatpush1.bf16.msra.mxu1 %v2037_v46 }
 0x339   :  { %2076 = vmatprep.subr.bf16.mxu1 %v4620_v25 }
 0x33a   :  { %v1759_v16 = vpop.f32.mrb[124].mxu0 }
 0x33b   :  { %v1949_v0 = vadd.f32 %v5024_v17, %v1759_v16  ;;  %v1761_v51 = vpop.f32.mrb[125].mxu0 }
 0x33c   :  { %v1763_v3 = vpop.f32.mrb[126].mxu0 }
 0x33d   :  { %1997 = vst [vmem:[#allocation5 + $0x70] sm:$0xff] %v1949_v0  ;;  %v1950_v5 = vadd.f32 %v5024_v17, %v1763_v3  ;;  %v1765_v4 = vpop.f32.mrb[127].mxu0  ;;  %v5076_v0 = vld [vmem:[%s6342_s7] sm:$0xff]  }
 0x33e   :  { %v2038_v6 = vpack.c.bf16 %v1765_v4, %v1761_v51 }
 0x33f   :  { %1998 = vst [vmem:[#allocation5 + $0x78] sm:$0xff] %v1950_v5  ;;  %v4429_v5 = vld [vmem:[#allocation2] ss:$12 sps:$4 sm:$0xff]  }
 0x340   :  { %2077 = vmatpush1.bf16.msra.mxu1 %v2038_v6  ;;  %v4430_v6 = vld [vmem:[#allocation2 + $0x1c] ss:$12 sps:$4 sm:$0xff]  }
 0x341   :  { %2078 = vmatprep.subr.bf16.mxu1 %v4620_v25 }
 0x342   :  { %v1769_v9 = vpop.f32.mrb[128].mxu0 }
 0x343   :  { %v1951_v31 = vadd.f32 %v5024_v17, %v1769_v9  ;;  %v1771_v58 = vpop.f32.mrb[129].mxu0 }
 0x344   :  { %v1773_v45 = vpop.f32.mrb[130].mxu0 }
 0x345   :  { %1999 = vst [vmem:[#allocation5 + $0x80] sm:$0xff] %v1951_v31  ;;  %v1952_v35 = vadd.f32 %v5024_v17, %v1773_v45  ;;  %v1775_v13 = vpop.f32.mrb[131].mxu0 }
 0x346   :  { %v2039_v36 = vpack.c.bf16 %v1775_v13, %v1771_v58 }
 0x347   :  { %2000 = vst [vmem:[#allocation5 + $0x88] sm:$0xff] %v1952_v35 }
 0x348   :  { %2079 = vmatpush1.bf16.msra.mxu1 %v2039_v36  ;;  %v4431_v36 = vld [vmem:[#allocation2 + $0x18] ss:$12 sps:$4 sm:$0xff]  }
 0x349   :  { %2080 = vmatprep.subr.bf16.mxu1 %v4620_v25 }
 0x34a   :  { %v1779_v10 = vpop.f32.mrb[132].mxu0 }
 0x34b   :  { %v1953_v11 = vadd.f32 %v5024_v17, %v1779_v10  ;;  %v1781_v26 = vpop.f32.mrb[133].mxu0 }
 0x34c   :  { %v1783_v50 = vpop.f32.mrb[134].mxu0 }
 0x34d   :  { %2001 = vst [vmem:[#allocation5 + $0x90] sm:$0xff] %v1953_v11  ;;  %v1954_v14 = vadd.f32 %v5024_v17, %v1783_v50  ;;  %v1785_v15 = vpop.f32.mrb[135].mxu0  ;;  %v4432_v11 = vld [vmem:[#allocation2 + $0x34] ss:$12 sps:$4 sm:$0xff]  }
 0x34e   :  { %v2040_v19 = vpack.c.bf16 %v1785_v15, %v1781_v26 }
 0x34f   :  { %2002 = vst [vmem:[#allocation5 + $0x98] sm:$0xff] %v1954_v14 }
 0x350   :  { %2081 = vmatpush1.bf16.msra.mxu1 %v2040_v19  ;;  %v4433_v19 = vld [vmem:[#allocation2 + $0x30] ss:$12 sps:$4 sm:$0xff]  }
 0x351   :  { %2082 = vmatprep.subr.bf16.mxu1 %v4620_v25 }
 0x352   :  { %v1789_v20 = vpop.f32.mrb[136].mxu0 }
 0x353   :  { %v1955_v21 = vadd.f32 %v5024_v17, %v1789_v20  ;;  %v1791_v7 = vpop.f32.mrb[137].mxu0 }
 0x354   :  { %v1793_v22 = vpop.f32.mrb[138].mxu0 }
 0x355   :  { %2003 = vst [vmem:[#allocation5 + $0xa0] sm:$0xff] %v1955_v21  ;;  %v1956_v23 = vadd.f32 %v5024_v17, %v1793_v22  ;;  %v1795_v62 = vpop.f32.mrb[139].mxu0 }
 0x356   :  { %v2041_v24 = vpack.c.bf16 %v1795_v62, %v1791_v7  ;;  %v4434_v7 = vld [vmem:[#allocation2 + $0x4c] ss:$12 sps:$4 sm:$0xff]  }
 0x357   :  { %2004 = vst [vmem:[#allocation5 + $0xa8] sm:$0xff] %v1956_v23 }
 0x358   :  { %2083 = vmatpush1.bf16.msra.mxu1 %v2041_v24 }
 0x359   :  { %2084 = vmatprep.subr.bf16.mxu1 %v4620_v25 }
 0x35a   :  { %v1799_v8 = vpop.f32.mrb[140].mxu0 }
 0x35b   :  { %v1957_v2 = vadd.f32 %v5024_v17, %v1799_v8  ;;  %v1801_v30 = vpop.f32.mrb[141].mxu0 }
 0x35c   :  { %v1803_v32 = vpop.f32.mrb[142].mxu0 }
 0x35d   :  { %2005 = vst [vmem:[#allocation5 + $0xb0] sm:$0xff] %v1957_v2  ;;  %v1958_v33 = vadd.f32 %v5024_v17, %v1803_v32  ;;  %v1805_v37 = vpop.f32.mrb[143].mxu0  ;;  %v4435_v2 = vld [vmem:[#allocation2 + $0x48] ss:$12 sps:$4 sm:$0xff]  }
 0x35e   :  { %v2042_v27 = vpack.c.bf16 %v1805_v37, %v1801_v30 }
 0x35f   :  { %2006 = vst [vmem:[#allocation5 + $0xb8] sm:$0xff] %v1958_v33  ;;  %v4436_v33 = vld [vmem:[#allocation2 + $0x64] ss:$12 sps:$4 sm:$0xff]  }
 0x360   :  { %2085 = vmatpush1.bf16.msra.mxu1 %v2042_v27 }
 0x361   :  { %2086 = vmatprep.subr.bf16.mxu1 %v4620_v25 }
 0x362   :  { %v1809_v41 = vpop.f32.mrb[144].mxu0 }
 0x363   :  { %v1959_v38 = vadd.f32 %v5024_v17, %v1809_v41  ;;  %v1811_v39 = vpop.f32.mrb[145].mxu0 }
 0x364   :  { %v1813_v43 = vpop.f32.mrb[146].mxu0 }
 0x365   :  { %2007 = vst [vmem:[#allocation5 + $0xc0] sm:$0xff] %v1959_v38  ;;  %v1960_v42 = vadd.f32 %v5024_v17, %v1813_v43  ;;  %v1815_v1 = vpop.f32.mrb[147].mxu0  ;;  %v4437_v43 = vld [vmem:[#allocation2 + $0x60] ss:$12 sps:$4 sm:$0xff]  }
 0x366   :  { %v2043_v28 = vpack.c.bf16 %v1815_v1, %v1811_v39 }
 0x367   :  { %2008 = vst [vmem:[#allocation5 + $0xc8] sm:$0xff] %v1960_v42 }
 0x368   :  { %2087 = vmatpush1.bf16.msra.mxu1 %v2043_v28  ;;  %v4438_v28 = vld [vmem:[#allocation2 + $0x7c] ss:$12 sps:$4 sm:$0xff]  }
 0x369   :  { %2088 = vmatprep.subr.bf16.mxu1 %v4620_v25 }
 0x36a   :  { %v1819_v47 = vpop.f32.mrb[148].mxu0 }
 0x36b   :  { %v1961_v29 = vadd.f32 %v5024_v17, %v1819_v47  ;;  %v1821_v48 = vpop.f32.mrb[149].mxu0 }
 0x36c   :  { %v1823_v44 = vpop.f32.mrb[150].mxu0 }
 0x36d   :  { %2009 = vst [vmem:[#allocation5 + $0xd0] sm:$0xff] %v1961_v29  ;;  %v1962_v49 = vadd.f32 %v5024_v17, %v1823_v44  ;;  %v1825_v52 = vpop.f32.mrb[151].mxu0 }
 0x36e   :  { %v2044_v12 = vpack.c.bf16 %v1825_v52, %v1821_v48  ;;  %v4439_v52 = vld [vmem:[#allocation2 + $0x78] ss:$12 sps:$4 sm:$0xff]  }
 0x36f   :  { %2010 = vst [vmem:[#allocation5 + $0xd8] sm:$0xff] %v1962_v49 }
 0x370   :  { %2089 = vmatpush1.bf16.msra.mxu1 %v2044_v12 }
 0x371   :  { %2090 = vmatprep.subr.bf16.mxu1 %v4620_v25 }
 0x372   :  { %v1829_v53 = vpop.f32.mrb[152].mxu0 }
 0x373   :  { %v1963_v34 = vadd.f32 %v5024_v17, %v1829_v53  ;;  %v1831_v18 = vpop.f32.mrb[153].mxu0 }
 0x374   :  { %v1833_v54 = vpop.f32.mrb[154].mxu0 }
 0x375   :  { %2011 = vst [vmem:[#allocation5 + $0xe0] sm:$0xff] %v1963_v34  ;;  %v1964_v55 = vadd.f32 %v5024_v17, %v1833_v54  ;;  %v1835_v56 = vpop.f32.mrb[155].mxu0  ;;  %v4440_v34 = vld [vmem:[#allocation2 + $0x94] ss:$12 sps:$4 sm:$0xff]  }
 0x376   :  { %v2045_v61 = vpack.c.bf16 %v1835_v56, %v1831_v18 }
 0x377   :  { %2012 = vst [vmem:[#allocation5 + $0xe8] sm:$0xff] %v1964_v55 }
 0x378   :  { %2091 = vmatpush1.bf16.msra.mxu1 %v2045_v61 }
 0x379   :  { %2092 = vmatprep.subr.bf16.mxu1 %v4620_v25 }
 0x37a   :  { %v1839_v57 = vpop.f32.mrb[156].mxu0 }
 0x37b   :  { %v1965_v59 = vadd.f32 %v5024_v17, %v1839_v57  ;;  %v1841_v40 = vpop.f32.mrb[157].mxu0  ;;  %v4441_v57 = vld [vmem:[#allocation2 + $0x90] ss:$12 sps:$4 sm:$0xff]  }
 0x37c   :  { %v1843_v60 = vpop.f32.mrb[158].mxu0 }
 0x37d   :  { %2013 = vst [vmem:[#allocation5 + $0xf0] sm:$0xff] %v1965_v59  ;;  %v1966_v63 = vadd.f32 %v5024_v17, %v1843_v60  ;;  %v1845_v46 = vpop.f32.mrb[159].mxu0 }
 0x37e   :  { %v2046_v16 = vpack.c.bf16 %v1845_v46, %v1841_v40 }
 0x37f   :  { %2014 = vst [vmem:[#allocation5 + $0xf8] sm:$0xff] %v1966_v63  ;;  %v4442_v63 = vld [vmem:[#allocation2 + $0xac] ss:$12 sps:$4 sm:$0xff]  }
 0x380   :  { %2093 = vmatpush1.bf16.msra.mxu1 %v2046_v16 }
 0x381   :  { %4079 = vmatprep.subr.bf16.mxu1 %v5076_v0 }
 0x382   :  { %v1849_v25 = vpop.f32.mrb[160].mxu0 }
 0x383   :  { %v1967_v51 = vadd.f32 %v5024_v17, %v1849_v25  ;;  %v1851_v3 = vpop.f32.mrb[161].mxu0  ;;  %2095 = vmatmul.mubr.bf16.vlgmr.msra.gmra.mrb[96].mxu1 %v4429_v5 }
 0x384   :  { %v1853_v4 = vpop.f32.mrb[162].mxu0  ;;  %2102 = vmatprep.mubr.bf16.mxu1 %v4430_v6  ;;  %4080 = vmatpush3.bf16.msra.mxu1 %v5076_v0 }
 0x385   :  { %2015 = vst [vmem:[#allocation5 + $0x100] sm:$0xff] %v1967_v51  ;;  %v1968_v9 = vadd.f32 %v5024_v17, %v1853_v4  ;;  %v1855_v31 = vpop.f32.mrb[163].mxu0  ;;  %v4443_v4 = vld [vmem:[#allocation2 + $0xa8] ss:$12 sps:$4 sm:$0xff]  }
 0x386   :  { %v2047_v58 = vpack.c.bf16 %v1855_v31, %v1851_v3 }
 0x387   :  { %2016 = vst [vmem:[#allocation5 + $0x108] sm:$0xff] %v1968_v9  ;;  %v4444_v9 = vld [vmem:[#allocation2 + $0xc4] ss:$12 sps:$4 sm:$0xff]  }
 0x388   :  { %3965 = vmatprep.subr.bf16.mxu0 %v2047_v58 }
 0x389   :  { %3966 = vmatpush3.bf16.msra.mxu0 %v2047_v58 }
 0x38a   :  { %v1859_v45 = vpop.f32.mrb[164].mxu0 }
 0x38b   :  { %v1969_v35 = vadd.f32 %v5024_v17, %v1859_v45  ;;  %v1861_v13 = vpop.f32.mrb[165].mxu0  ;;  %2103 = vmatmul.mubr.bf16.gmra.mrb[100].mxu1 %v4431_v36  ;;  %v4447_v36 = vld [vmem:[#allocation2 + $0xdc] ss:$12 sps:$4 sm:$0xff]  }
 0x38c   :  { %v1863_v10 = vpop.f32.mrb[166].mxu0  ;;  %2110 = vmatprep.mubr.bf16.mxu1 %v4432_v11  ;;  %v4449_v11 = vld [vmem:[#allocation2 + $0xd8] ss:$12 sps:$4 sm:$0xff]  }
 0x38d   :  { %2017 = vst [vmem:[#allocation5 + $0x110] sm:$0xff] %v1969_v35  ;;  %v1970_v26 = vadd.f32 %v5024_v17, %v1863_v10  ;;  %v1865_v50 = vpop.f32.mrb[167].mxu0  ;;  %v4445_v35 = vld [vmem:[#allocation2 + $0xc0] ss:$12 sps:$4 sm:$0xff]   ;;  %v4448_v10 = vld [vmem:[#allocation2 + $0x38] ss:$12 sps:$4 sm:$0xff]  }
 0x38e   :  { %v2048_v14 = vpack.c.bf16 %v1865_v50, %v1861_v13  ;;  %v4446_v13 = vld [vmem:[#allocation2 + $0x20] ss:$12 sps:$4 sm:$0xff]   ;;  %v4452_v50 = vld [vmem:[#allocation2 + $0x68] ss:$12 sps:$4 sm:$0xff]  }
 0x38f   :  { %2018 = vst [vmem:[#allocation5 + $0x118] sm:$0xff] %v1970_v26  ;;  %v4451_v26 = vld [vmem:[#allocation2 + $0xf4] ss:$12 sps:$4 sm:$0xff]  }
 0x390   :  { %3967 = vmatprep.subr.bf16.mxu0 %v2048_v14 }
 0x391   :  { %3968 = vmatpush3.bf16.msra.mxu0 %v2048_v14  ;;  %v4453_v14 = vld [vmem:[#allocation2 + $0xf0] ss:$12 sps:$4 sm:$0xff]  }
 0x392   :  { %v1869_v15 = vpop.f32.mrb[168].mxu0 }
 0x393   :  { %2111 = vmatmul.mubr.bf16.gmra.mrb[104].mxu1 %v4433_v19  ;;  %v1971_v20 = vadd.f32 %v5024_v17, %v1869_v15  ;;  %v1871_v21 = vpop.f32.mrb[169].mxu0  ;;  %v4454_v15 = vld [vmem:[#allocation2 + $0x80] ss:$12 sps:$4 sm:$0xff]  }
 0x394   :  { %2118 = vmatprep.mubr.bf16.mxu1 %v4434_v7  ;;  %v1873_v22 = vpop.f32.mrb[170].mxu0  ;;  %v4455_v19 = vld [vmem:[#allocation2 + $0x10c] ss:$12 sps:$4 sm:$0xff]   ;;  %v4458_v7 = vld [vmem:[#allocation2 + $0xb0] ss:$12 sps:$4 sm:$0xff]  }
 0x395   :  { %2019 = vst [vmem:[#allocation5 + $0x120] sm:$0xff] %v1971_v20  ;;  %v1972_v23 = vadd.f32 %v5024_v17, %v1873_v22  ;;  %v1875_v62 = vpop.f32.mrb[171].mxu0  ;;  %v4456_v20 = vld [vmem:[#allocation2 + $0x98] ss:$12 sps:$4 sm:$0xff]   ;;  %v4460_v22 = vld [vmem:[#allocation2 + $0xc8] ss:$12 sps:$4 sm:$0xff]  }
 0x396   :  { %v2049_v24 = vpack.c.bf16 %v1875_v62, %v1871_v21  ;;  %v4457_v21 = vld [vmem:[#allocation2 + $0x108] ss:$12 sps:$4 sm:$0xff]   ;;  %v4462_v62 = vld [vmem:[#allocation2 + $0xe0] ss:$12 sps:$4 sm:$0xff]  }
 0x397   :  { %2020 = vst [vmem:[#allocation5 + $0x128] sm:$0xff] %v1972_v23  ;;  %v4461_v23 = vld [vmem:[#allocation2 + $0x120] ss:$12 sps:$4 sm:$0xff]  }
 0x398   :  { %3969 = vmatprep.subr.bf16.mxu0 %v2049_v24 }
 0x399   :  { %3970 = vmatpush3.bf16.msra.mxu0 %v2049_v24  ;;  %v4463_v24 = vld [vmem:[#allocation2 + $0x13c] ss:$12 sps:$4 sm:$0xff]  }
 0x39a   :  { %v1879_v8 = vpop.f32.mrb[172].mxu0 }
 0x39b   :  { %2119 = vmatmul.mubr.bf16.gmra.mrb[108].mxu1 %v4435_v2  ;;  %v1973_v30 = vadd.f32 %v5024_v17, %v1879_v8  ;;  %v1881_v32 = vpop.f32.mrb[173].mxu0  ;;  %v4464_v8 = vld [vmem:[#allocation2 + $0xf8] ss:$12 sps:$4 sm:$0xff]  }
 0x39c   :  { %2126 = vmatprep.mubr.bf16.mxu1 %v4436_v33  ;;  %v1883_v37 = vpop.f32.mrb[174].mxu0  ;;  %v4465_v2 = vld [vmem:[#allocation2 + $0x138] ss:$12 sps:$4 sm:$0xff]   ;;  %v4468_v33 = vld [vmem:[#allocation2 + $0x128] ss:$12 sps:$4 sm:$0xff]  }
 0x39d   :  { %2021 = vst [vmem:[#allocation5 + $0x130] sm:$0xff] %v1973_v30  ;;  %v1974_v27 = vadd.f32 %v5024_v17, %v1883_v37  ;;  %v1885_v41 = vpop.f32.mrb[175].mxu0  ;;  %v4466_v30 = vld [vmem:[#allocation2 + $0x110] ss:$12 sps:$4 sm:$0xff]  }
 0x39e   :  { %v2050_v38 = vpack.c.bf16 %v1885_v41, %v1881_v32  ;;  %v4467_v32 = vld [vmem:[#allocation2 + $0x154] ss:$12 sps:$4 sm:$0xff]   ;;  %v4469_v37 = vld [vmem:[#allocation2 + $0x150] ss:$12 sps:$4 sm:$0xff]   ;;  %v4471_v41 = vld [vmem:[#allocation2 + $0x16c] ss:$12 sps:$4 sm:$0xff]  }
 0x39f   :  { %2022 = vst [vmem:[#allocation5 + $0x138] sm:$0xff] %v1974_v27  ;;  %v4470_v27 = vld [vmem:[#allocation2 + $0x140] ss:$12 sps:$4 sm:$0xff]  }
 0x3a0   :  { %3971 = vmatprep.subr.bf16.mxu0 %v2050_v38 }
 0x3a1   :  { %3972 = vmatpush3.bf16.msra.mxu0 %v2050_v38  ;;  %v4472_v38 = vld [vmem:[#allocation2 + $0x158] ss:$12 sps:$4 sm:$0xff]  }
 0x3a2   :  { %v1889_v39 = vpop.f32.mrb[176].mxu0 }
 0x3a3   :  { %2127 = vmatmul.mubr.bf16.gmra.mrb[112].mxu1 %v4437_v43  ;;  %v1975_v42 = vadd.f32 %v5024_v17, %v1889_v39  ;;  %v1891_v1 = vpop.f32.mrb[177].mxu0  ;;  %v4473_v39 = vld [vmem:[#allocation2 + $0x168] ss:$12 sps:$4 sm:$0xff]   ;;  %v4474_v43 = vld [vmem:[#allocation2 + $0x170] ss:$12 sps:$4 sm:$0xff]  }
 0x3a4   :  { %2134 = vmatprep.mubr.bf16.mxu1 %v4438_v28  ;;  %v1893_v47 = vpop.f32.mrb[178].mxu0  ;;  %v4477_v28 = vld [vmem:[#allocation2 + $0x180] ss:$12 sps:$4 sm:$0xff]  }
 0x3a5   :  { %2023 = vst [vmem:[#allocation5 + $0x140] sm:$0xff] %v1975_v42  ;;  %v1976_v29 = vadd.f32 %v5024_v17, %v1893_v47  ;;  %v1895_v48 = vpop.f32.mrb[179].mxu0  ;;  %v4475_v42 = vld [vmem:[#allocation2 + $0x184] ss:$12 sps:$4 sm:$0xff]   ;;  %v4478_v47 = vld [vmem:[#allocation2 + $0x1a0] ss:$12 sps:$4 sm:$0xff]  }
 0x3a6   :  { %v2051_v44 = vpack.c.bf16 %v1895_v48, %v1891_v1  ;;  %v4476_v1 = vld [vmem:[#allocation2 + $0x188] ss:$12 sps:$4 sm:$0xff]   ;;  %v4480_v48 = vld [vmem:[#allocation2 + $0x1b8] ss:$12 sps:$4 sm:$0xff]  }
 0x3a7   :  { %2024 = vst [vmem:[#allocation5 + $0x148] sm:$0xff] %v1976_v29  ;;  %v4479_v29 = vld [vmem:[#allocation2 + $0x19c] ss:$12 sps:$4 sm:$0xff]  }
 0x3a8   :  { %3973 = vmatprep.subr.bf16.mxu0 %v2051_v44 }
 0x3a9   :  { %3974 = vmatpush3.bf16.msra.mxu0 %v2051_v44  ;;  %v4481_v44 = vld [vmem:[#allocation2 + $0x198] ss:$12 sps:$4 sm:$0xff]  }
 0x3aa   :  { %v1899_v49 = vpop.f32.mrb[180].mxu0 }
 0x3ab   :  { %2135 = vmatmul.mubr.bf16.gmra.mrb[116].mxu1 %v4439_v52  ;;  %v1977_v12 = vadd.f32 %v5024_v17, %v1899_v49  ;;  %v1901_v53 = vpop.f32.mrb[181].mxu0  ;;  %v4482_v49 = vld [vmem:[#allocation2 + $0x1d0] ss:$12 sps:$4 sm:$0xff]   ;;  %v4483_v52 = vld [vmem:[#allocation2 + $0x1b4] ss:$12 sps:$4 sm:$0xff]  }
 0x3ac   :  { %2142 = vmatprep.mubr.bf16.mxu1 %v4440_v34  ;;  %v1903_v18 = vpop.f32.mrb[182].mxu0  ;;  %v4486_v34 = vld [vmem:[#allocation2 + $0x200] ss:$12 sps:$4 sm:$0xff]  }
 0x3ad   :  { %2025 = vst [vmem:[#allocation5 + $0x150] sm:$0xff] %v1977_v12  ;;  %v1978_v54 = vadd.f32 %v5024_v17, %v1903_v18  ;;  %v1905_v55 = vpop.f32.mrb[183].mxu0  ;;  %v4484_v12 = vld [vmem:[#allocation2 + $0x1e8] ss:$12 sps:$4 sm:$0xff]   ;;  %v4487_v18 = vld [vmem:[#allocation2 + $0x1cc] ss:$12 sps:$4 sm:$0xff]  }
 0x3ae   :  { %v2052_v56 = vpack.c.bf16 %v1905_v55, %v1901_v53  ;;  %v4485_v53 = vld [vmem:[#allocation2 + $0x1b0] ss:$12 sps:$4 sm:$0xff]   ;;  %v4489_v55 = vld [vmem:[#allocation2 + $0x1c8] ss:$12 sps:$4 sm:$0xff]  }
 0x3af   :  { %2026 = vst [vmem:[#allocation5 + $0x158] sm:$0xff] %v1978_v54  ;;  %v4488_v54 = vld [vmem:[#allocation2 + $0x218] ss:$12 sps:$4 sm:$0xff]  }
 0x3b0   :  { %3975 = vmatprep.subr.bf16.mxu0 %v2052_v56 }
 0x3b1   :  { %3976 = vmatpush3.bf16.msra.mxu0 %v2052_v56  ;;  %v4490_v56 = vld [vmem:[#allocation2 + $0x230] ss:$12 sps:$4 sm:$0xff]  }
 0x3b2   :  { %v1909_v61 = vpop.f32.mrb[184].mxu0 }
 0x3b3   :  { %2143 = vmatmul.mubr.bf16.gmra.mrb[120].mxu1 %v4441_v57  ;;  %v1979_v59 = vadd.f32 %v5024_v17, %v1909_v61  ;;  %v1911_v40 = vpop.f32.mrb[185].mxu0  ;;  %v4491_v61 = vld [vmem:[#allocation2 + $0x1e4] ss:$12 sps:$4 sm:$0xff]  }
 0x3b4   :  { %v1913_v60 = vpop.f32.mrb[186].mxu0  ;;  %2150 = vmatprep.mubr.bf16.mxu1 %v4442_v63  ;;  %v4492_v57 = vld [vmem:[%s6336_s1] sm:$0xff]   ;;  %v4496_v63 = vld [vmem:[%s6336_s1 + $0x10] sm:$0xff]  }
 0x3b5   :  { %2027 = vst [vmem:[#allocation5 + $0x160] sm:$0xff] %v1979_v59  ;;  %v1980_v46 = vadd.f32 %v5024_v17, %v1913_v60  ;;  %v1915_v16 = vpop.f32.mrb[187].mxu0  ;;  %v4493_v59 = vld [vmem:[#allocation2 + $0x1e0] ss:$12 sps:$4 sm:$0xff]   ;;  %v4495_v60 = vld [vmem:[#allocation2 + $0x1fc] ss:$12 sps:$4 sm:$0xff]  }
 0x3b6   :  { %v2053_v25 = vpack.c.bf16 %v1915_v16, %v1911_v40  ;;  %v4494_v40 = vld [vmem:[%s6336_s1 + $0x8] sm:$0xff]   ;;  %v4498_v16 = vld [vmem:[%s6336_s1 + $0x18] sm:$0xff]  }
 0x3b7   :  { %2028 = vst [vmem:[#allocation5 + $0x168] sm:$0xff] %v1980_v46  ;;  %v4497_v46 = vld [vmem:[#allocation2 + $0x1f8] ss:$12 sps:$4 sm:$0xff]  }
 0x3b8   :  { %3977 = vmatprep.subr.bf16.mxu0 %v2053_v25 }
 0x3b9   :  { %3978 = vmatpush3.bf16.msra.mxu0 %v2053_v25  ;;  %v4499_v25 = vld [vmem:[#allocation2 + $0x214] ss:$12 sps:$4 sm:$0xff]  }
 0x3ba   :  { %v1919_v51 = vpop.f32.mrb[188].mxu0 }
 0x3bb   :  { %v1981_v3 = vadd.f32 %v5024_v17, %v1919_v51  ;;  %v1921_v5 = vpop.f32.mrb[189].mxu0  ;;  %2151 = vmatmul.mubr.bf16.gmra.mrb[124].mxu1 %v4443_v4  ;;  %v4500_v51 = vld [vmem:[%s6336_s1 + $0x20] sm:$0xff]   ;;  %v4503_v4 = vld [vmem:[#allocation2 + $0x22c] ss:$12 sps:$4 sm:$0xff]  }
 0x3bc   :  { %v1923_v6 = vpop.f32.mrb[190].mxu0  ;;  %2158 = vmatprep.mubr.bf16.mxu1 %v4444_v9  ;;  %v4505_v9 = vld [vmem:[%s6336_s1 + $0x30] sm:$0xff]  }
 0x3bd   :  { %2029 = vst [vmem:[#allocation5 + $0x170] sm:$0xff] %v1981_v3  ;;  %v1982_v31 = vadd.f32 %v5024_v17, %v1923_v6  ;;  %v1925_v58 = vpop.f32.mrb[191].mxu0  ;;  %v4450_v17 = vld [vmem:[#allocation2 + $0x50] ss:$12 sps:$4 sm:$0xff]   ;;  %v4504_v6 = vld [vmem:[#allocation2 + $0x228] ss:$12 sps:$4 sm:$0xff]  }
 0x3be   :  { %v2054_v45 = vpack.c.bf16 %v1925_v58, %v1921_v5  ;;  %v4501_v3 = vld [vmem:[#allocation2 + $0x210] ss:$12 sps:$4 sm:$0xff]   ;;  %v4502_v5 = vld [vmem:[%s6336_s1 + $0x28] sm:$0xff]   ;;  %v4507_v58 = vld [vmem:[%s6336_s1 + $0x40] sm:$0xff]  }
 0x3bf   :  { %2030 = vst [vmem:[#allocation5 + $0x178] sm:$0xff] %v1982_v31  ;;  %v4506_v31 = vld [vmem:[%s6336_s1 + $0x38] sm:$0xff]  }
 0x3c0   :  { %3979 = vmatprep.subr.bf16.mxu0 %v2054_v45 }
 0x3c1   :  { %3980 = vmatpush3.bf16.msra.mxu0 %v2054_v45  ;;  %v4508_v45 = vld [vmem:[%s6336_s1 + $0x48] sm:$0xff]  }
 0x3c2   :  { %4029 = vmatprep.subr.bf16.mxu0 %v5076_v0 }
 0x3c3   :  { %2159 = vmatmul.mubr.bf16.gmra.mrb[128].mxu1 %v4445_v35  ;;  %v4509_v35 = vld [vmem:[%s6336_s1 + $0x50] sm:$0xff]  }
 0x3c4   :  { %3982 = vmatmul.mubr.bf16.vlgmr.msra.gmra.mrb[192].mxu0 %v4446_v13  ;;  %2166 = vmatprep.mubr.bf16.mxu1 %v4447_v36  ;;  %v4510_v13 = vld [vmem:[%s6336_s1 + $0x58] sm:$0xff]   ;;  %v4511_v36 = vld [vmem:[%s6336_s1 + $0x60] sm:$0xff]  }
 0x3c5   :  { %3985 = vmatprep.mubr.bf16.mxu0 %v4448_v10  ;;  %4030 = vmatpush3.bf16.msra.mxu0 %v5076_v0  ;;  %v4459_v0 = vld [vmem:[#allocation2 + $0x124] ss:$12 sps:$4 sm:$0xff]  }
 0x3cb   :  { %2167 = vmatmul.mubr.bf16.gmra.mrb[132].mxu1 %v4449_v11 }
 0x3cc   :  { %3986 = vmatmul.mubr.bf16.gmra.mrb[196].mxu0 %v4450_v17  ;;  %2174 = vmatprep.mubr.bf16.mxu1 %v4451_v26 }
 0x3cd   :  { %3989 = vmatprep.mubr.bf16.mxu0 %v4452_v50  ;;  %v4512_v50 = vld [vmem:[%s6336_s1 + $0x68] sm:$0xff]  }
 0x3d3   :  { %2175 = vmatmul.mubr.bf16.gmra.mrb[136].mxu1 %v4453_v14  ;;  %v4513_v14 = vld [vmem:[%s6336_s1 + $0x70] sm:$0xff]  }
 0x3d4   :  { %3990 = vmatmul.mubr.bf16.gmra.mrb[200].mxu0 %v4454_v15  ;;  %2182 = vmatprep.mubr.bf16.mxu1 %v4455_v19 }
 0x3d5   :  { %3993 = vmatprep.mubr.bf16.mxu0 %v4456_v20 }
 0x3db   :  { %2183 = vmatmul.mubr.bf16.gmra.mrb[140].mxu1 %v4457_v21 }
 0x3dc   :  { %3994 = vmatmul.mubr.bf16.gmra.mrb[204].mxu0 %v4458_v7  ;;  %2190 = vmatprep.mubr.bf16.mxu1 %v4459_v0  ;;  %v4514_v7 = vld [vmem:[%s6336_s1 + $0x78] sm:$0xff]   ;;  %v4515_v0 = vld [vmem:[%s6336_s1 + $0x80] sm:$0xff]  }
 0x3dd   :  { %3997 = vmatprep.mubr.bf16.mxu0 %v4460_v22 }
 0x3e3   :  { %2191 = vmatmul.mubr.bf16.gmra.mrb[144].mxu1 %v4461_v23 }
 0x3e4   :  { %3998 = vmatmul.mubr.bf16.gmra.mrb[208].mxu0 %v4462_v62  ;;  %2198 = vmatprep.mubr.bf16.mxu1 %v4463_v24 }
 0x3e5   :  { %4001 = vmatprep.mubr.bf16.mxu0 %v4464_v8  ;;  %v4516_v8 = vld [vmem:[%s6336_s1 + $0x88] sm:$0xff]  }
 0x3eb   :  { %2199 = vmatmul.mubr.bf16.gmra.mrb[148].mxu1 %v4465_v2  ;;  %v4517_v2 = vld [vmem:[%s6336_s1 + $0x90] sm:$0xff]  }
 0x3ec   :  { %4002 = vmatmul.mubr.bf16.gmra.mrb[212].mxu0 %v4466_v30  ;;  %2206 = vmatprep.mubr.bf16.mxu1 %v4467_v32 }
 0x3ed   :  { %4005 = vmatprep.mubr.bf16.mxu0 %v4468_v33 }
 0x3f3   :  { %2207 = vmatmul.mubr.bf16.gmra.mrb[152].mxu1 %v4469_v37 }
 0x3f4   :  { %4006 = vmatmul.mubr.bf16.gmra.mrb[216].mxu0 %v4470_v27  ;;  %2214 = vmatprep.mubr.bf16.mxu1 %v4471_v41  ;;  %v4518_v27 = vld [vmem:[%s6336_s1 + $0x98] sm:$0xff]   ;;  %v4519_v41 = vld [vmem:[%s6336_s1 + $0xa0] sm:$0xff]  }
 0x3f5   :  { %4009 = vmatprep.mubr.bf16.mxu0 %v4472_v38 }
 0x3fb   :  { %2215 = vmatmul.mubr.bf16.gmra.mrb[156].mxu1 %v4473_v39 }
 0x3fc   :  { %4010 = vmatmul.mubr.bf16.gmra.mrb[220].mxu0 %v4474_v43  ;;  %2222 = vmatprep.mubr.bf16.mxu1 %v4475_v42 }
 0x3fd   :  { %4013 = vmatprep.mubr.bf16.mxu0 %v4476_v1  ;;  %v4520_v1 = vld [vmem:[%s6336_s1 + $0xa8] sm:$0xff]  }
 0x403   :  { %2223 = vmatmul.mubr.bf16.gmra.mrb[160].mxu1 %v4477_v28  ;;  %v4521_v28 = vld [vmem:[%s6336_s1 + $0xb0] sm:$0xff]  }
 0x404   :  { %4014 = vmatmul.mubr.bf16.gmra.mrb[224].mxu0 %v4478_v47  ;;  %2230 = vmatprep.mubr.bf16.mxu1 %v4479_v29 }
 0x405   :  { %4017 = vmatprep.mubr.bf16.mxu0 %v4480_v48 }
 0x40b   :  { %2231 = vmatmul.mubr.bf16.gmra.mrb[164].mxu1 %v4481_v44 }
 0x40c   :  { %4018 = vmatmul.mubr.bf16.gmra.mrb[228].mxu0 %v4482_v49  ;;  %2238 = vmatprep.mubr.bf16.mxu1 %v4483_v52  ;;  %v4522_v49 = vld [vmem:[%s6336_s1 + $0xb8] sm:$0xff]  }
 0x40d   :  { %4021 = vmatprep.mubr.bf16.mxu0 %v4484_v12 }
 0x413   :  { %2239 = vmatmul.mubr.bf16.gmra.mrb[168].mxu1 %v4485_v53 }
 0x414   :  { %4022 = vmatmul.mubr.bf16.gmra.mrb[232].mxu0 %v4486_v34  ;;  %2246 = vmatprep.mubr.bf16.mxu1 %v4487_v18 }
 0x415   :  { %4025 = vmatprep.mubr.bf16.mxu0 %v4488_v54 }
 0x41b   :  { %2247 = vmatmul.mubr.bf16.gmra.mrb[172].mxu1 %v4489_v55 }
 0x41c   :  { %4026 = vmatmul.mubr.bf16.gmra.mrb[236].mxu0 %v4490_v56  ;;  %2254 = vmatprep.mubr.bf16.mxu1 %v4491_v61  ;;  %v5199_v61 = vld [vmem:[%s6341_s6] ss:$0 sm:$0xff] }
 0x41d   :  { %4031 = vmatprep.mubr.msk.bf16.mxu0 %vm324_vm0, %v4492_v57 }
 0x423   :  { %2255 = vmatmul.mubr.bf16.gmra.mrb[176].mxu1 %v4493_v59 }
 0x424   :  { %4032 = vmatmul.mubr.msk.bf16.vlgmr.msra.gmra.mrb[240].mxu0 %vm324_vm0, %v4494_v40  ;;  %2262 = vmatprep.mubr.bf16.mxu1 %v4495_v60 }
 0x425   :  { %4035 = vmatprep.mubr.msk.bf16.mxu0 %vm324_vm0, %v4496_v63 }
 0x42b   :  { %2263 = vmatmul.mubr.bf16.gmra.mrb[180].mxu1 %v4497_v46 }
 0x42c   :  { %4036 = vmatmul.mubr.msk.bf16.gmra.mrb[244].mxu0 %vm324_vm0, %v4498_v16  ;;  %2270 = vmatprep.mubr.bf16.mxu1 %v4499_v25 }
 0x42d   :  { %4039 = vmatprep.mubr.msk.bf16.mxu0 %vm324_vm0, %v4500_v51 }
 0x433   :  { %2271 = vmatmul.mubr.bf16.gmra.mrb[184].mxu1 %v4501_v3 }
 0x434   :  { %4040 = vmatmul.mubr.msk.bf16.gmra.mrb[248].mxu0 %vm324_vm0, %v4502_v5  ;;  %2278 = vmatprep.mubr.bf16.mxu1 %v4503_v4 }
 0x43b   :  { %2279 = vmatmul.mubr.bf16.gmra.mrb[188].mxu1 %v4504_v6 }
 0x43c   :  { %4043 = vmatprep.mubr.msk.bf16.mxu1 %vm324_vm0, %v4505_v9 }
 0x443   :  { %4044 = vmatmul.mubr.msk.bf16.vlgmr.msra.gmra.mrb[192].mxu1 %vm324_vm0, %v4506_v31 }
 0x444   :  { %4047 = vmatprep.mubr.msk.bf16.mxu1 %vm324_vm0, %v4507_v58 }
 0x44b   :  { %4048 = vmatmul.mubr.msk.bf16.gmra.mrb[196].mxu1 %vm324_vm0, %v4508_v45 }
 0x44c   :  { %4051 = vmatprep.mubr.msk.bf16.mxu1 %vm324_vm0, %v4509_v35 }
 0x453   :  { %4052 = vmatmul.mubr.msk.bf16.gmra.mrb[200].mxu1 %vm324_vm0, %v4510_v13 }
 0x454   :  { %4055 = vmatprep.mubr.msk.bf16.mxu1 %vm324_vm0, %v4511_v36 }
 0x456   :  { %v2096_v10 = vpop.f32.mrb[96].mxu1 }
 0x457   :  { %v2098_v11 = vpop.f32.mrb[97].mxu1  ;;  %v2097_v40 = vadd.f32 %v5199_v61, %v2096_v10 }
 0x458   :  { %v2099_v17 = vpop.f32.mrb[98].mxu1 }
 0x459   :  { %v2101_v26 = vpop.f32.mrb[99].mxu1  ;;  %v2100_v3 = vadd.f32 %v5199_v61, %v2099_v17 }
 0x45b   :  { %4056 = vmatmul.mubr.msk.bf16.gmra.mrb[204].mxu1 %vm324_vm0, %v4512_v50 }
 0x45c   :  { %4059 = vmatprep.mubr.msk.bf16.mxu1 %vm324_vm0, %v4513_v14 }
 0x45e   :  { %v2104_v15 = vpop.f32.mrb[100].mxu1 }
 0x45f   :  { %v2106_v19 = vpop.f32.mrb[101].mxu1  ;;  %v2105_v57 = vadd.f32 %v5199_v61, %v2104_v15 }
 0x460   :  { %v2107_v20 = vpop.f32.mrb[102].mxu1 }
 0x461   :  { %v2109_v21 = vpop.f32.mrb[103].mxu1  ;;  %v2108_v46 = vadd.f32 %v5199_v61, %v2107_v20 }
 0x463   :  { %4060 = vmatmul.mubr.msk.bf16.gmra.mrb[208].mxu1 %vm324_vm0, %v4514_v7 }
 0x464   :  { %4063 = vmatprep.mubr.msk.bf16.mxu1 %vm324_vm0, %v4515_v0 }
 0x466   :  { %v2112_v22 = vpop.f32.mrb[104].mxu1 }
 0x467   :  { %v2114_v23 = vpop.f32.mrb[105].mxu1  ;;  %v2113_v13 = vadd.f32 %v5199_v61, %v2112_v22 }
 0x468   :  { %v2115_v62 = vpop.f32.mrb[106].mxu1 }
 0x469   :  { %v2117_v24 = vpop.f32.mrb[107].mxu1  ;;  %v2116_v14 = vadd.f32 %v5199_v61, %v2115_v62 }
 0x46b   :  { %4064 = vmatmul.mubr.msk.bf16.gmra.mrb[212].mxu1 %vm324_vm0, %v4516_v8 }
 0x46c   :  { %4067 = vmatprep.mubr.msk.bf16.mxu1 %vm324_vm0, %v4517_v2 }
 0x46e   :  { %v2120_v30 = vpop.f32.mrb[108].mxu1 }
 0x46f   :  { %v2122_v32 = vpop.f32.mrb[109].mxu1  ;;  %v2121_v45 = vadd.f32 %v5199_v61, %v2120_v30 }
 0x470   :  { %v2123_v33 = vpop.f32.mrb[110].mxu1 }
 0x471   :  { %v2125_v37 = vpop.f32.mrb[111].mxu1  ;;  %v2124_v11 = vadd.f32 %v5199_v61, %v2123_v33 }
 0x473   :  { %4068 = vmatmul.mubr.msk.bf16.gmra.mrb[216].mxu1 %vm324_vm0, %v4518_v27 }
 0x474   :  { %4071 = vmatprep.mubr.msk.bf16.mxu1 %vm324_vm0, %v4519_v41 }
 0x476   :  { %v2128_v38 = vpop.f32.mrb[112].mxu1 }
 0x477   :  { %v2130_v39 = vpop.f32.mrb[113].mxu1  ;;  %v2129_v24 = vadd.f32 %v5199_v61, %v2128_v38 }
 0x478   :  { %v2131_v43 = vpop.f32.mrb[114].mxu1 }
 0x479   :  { %v2133_v42 = vpop.f32.mrb[115].mxu1  ;;  %v2132_v37 = vadd.f32 %v5199_v61, %v2131_v43 }
 0x47b   :  { %4072 = vmatmul.mubr.msk.bf16.gmra.mrb[220].mxu1 %vm324_vm0, %v4520_v1 }
 0x47c   :  { %4075 = vmatprep.mubr.msk.bf16.mxu1 %vm324_vm0, %v4521_v28 }
 0x47e   :  { %v2136_v47 = vpop.f32.mrb[116].mxu1 }
 0x47f   :  { %v2138_v29 = vpop.f32.mrb[117].mxu1  ;;  %v2137_v22 = vadd.f32 %v5199_v61, %v2136_v47 }
 0x480   :  { %v2139_v48 = vpop.f32.mrb[118].mxu1 }
 0x481   :  { %v2141_v44 = vpop.f32.mrb[119].mxu1  ;;  %v2140_v30 = vadd.f32 %v5199_v61, %v2139_v48 }
 0x483   :  { %4076 = vmatmul.mubr.msk.bf16.gmra.mrb[224].mxu1 %vm324_vm0, %v4522_v49 }
 0x486   :  { %v2144_v52 = vpop.f32.mrb[120].mxu1 }
 0x487   :  { %v2146_v12 = vpop.f32.mrb[121].mxu1  ;;  %v2145_v29 = vadd.f32 %v5199_v61, %v2144_v52 }
 0x488   :  { %v5194_v53 = vpop.f32.mrb[122].mxu1 }
 0x489   :  { %v2149_v34 = vpop.f32.mrb[123].mxu1 }
 0x48e   :  { %v2152_v18 = vpop.f32.mrb[124].mxu1 }
 0x48f   :  { %v2154_v54 = vpop.f32.mrb[125].mxu1  ;;  %v2153_v38 = vadd.f32 %v5199_v61, %v2152_v18 }
 0x490   :  { %v2155_v55 = vpop.f32.mrb[126].mxu1  ;;  %v2148_v54 = vadd.f32 %v5199_v61, %v5194_v53 }
 0x491   :  { %v2157_v56 = vpop.f32.mrb[127].mxu1  ;;  %v2156_v43 = vadd.f32 %v5199_v61, %v2155_v55 }
 0x496   :  { %v5202_v59 = vpop.f32.mrb[128].mxu1 }
 0x497   :  { %v3983_v60 = vpop.f32.mrb[192].mxu0  ;;  %v2162_v63 = vpop.f32.mrb[129].mxu1  ;;  %v2161_v55 = vadd.f32 %v5199_v61, %v5202_v59 }
 0x498   :  { %v5206_v16 = vadd.f32 %v3983_v60, %v2105_v57  ;;  %v2321_v25 = vpop.f32.mrb[193].mxu0  ;;  %v5208_v51 = vpop.f32.mrb[130].mxu1 }
 0x499   :  { %v5211_v5 = vadd.f32 %v2321_v25, %v2097_v40  ;;  %v3984_v4 = vpop.f32.mrb[194].mxu0  ;;  %v2165_v6 = vpop.f32.mrb[131].mxu1 }
 0x49a   :  { %v5213_v9 = vadd.f32 %v3984_v4, %v2108_v46  ;;  %v2324_v31 = vpop.f32.mrb[195].mxu0 }
 0x49b   :  { %v5215_v58 = vadd.f32 %v2324_v31, %v2100_v3 }
 0x49e   :  { %v2168_v35 = vpop.f32.mrb[132].mxu1 }
 0x49f   :  { %v3987_v36 = vpop.f32.mrb[196].mxu0  ;;  %v2170_v10 = vpop.f32.mrb[133].mxu1  ;;  %v2169_v52 = vadd.f32 %v5199_v61, %v2168_v35 }
 0x4a0   :  { %v5220_v26 = vadd.f32 %v3987_v36, %v2121_v45  ;;  %v2337_v17 = vpop.f32.mrb[197].mxu0  ;;  %v2171_v50 = vpop.f32.mrb[134].mxu1  ;;  %v2164_v45 = vadd.f32 %v5199_v61, %v5208_v51 }
 0x4a1   :  { %v5223_v15 = vadd.f32 %v2337_v17, %v2113_v13  ;;  %v3988_v19 = vpop.f32.mrb[198].mxu0  ;;  %v2173_v20 = vpop.f32.mrb[135].mxu1  ;;  %v2172_v53 = vadd.f32 %v5199_v61, %v2171_v50 }
 0x4a2   :  { %v5225_v21 = vadd.f32 %v3988_v19, %v2124_v11  ;;  %v2340_v7 = vpop.f32.mrb[199].mxu0 }
 0x4a3   :  { %v5227_v0 = vadd.f32 %v2340_v7, %v2116_v14 }
 0x4a6   :  { %v2176_v23 = vpop.f32.mrb[136].mxu1 }
 0x4a7   :  { %v3991_v8 = vpop.f32.mrb[200].mxu0  ;;  %v2178_v2 = vpop.f32.mrb[137].mxu1  ;;  %v2177_v20 = vadd.f32 %v5199_v61, %v2176_v23 }
 0x4a8   :  { %v5232_v32 = vadd.f32 %v3991_v8, %v2137_v22  ;;  %v2353_v62 = vpop.f32.mrb[201].mxu0  ;;  %v2179_v33 = vpop.f32.mrb[138].mxu1 }
 0x4a9   :  { %v5235_v27 = vadd.f32 %v2353_v62, %v2129_v24  ;;  %v3992_v41 = vpop.f32.mrb[202].mxu0  ;;  %v2181_v39 = vpop.f32.mrb[139].mxu1 }
 0x4aa   :  { %v5237_v42 = vadd.f32 %v3992_v41, %v2140_v30  ;;  %v2356_v1 = vpop.f32.mrb[203].mxu0  ;;  %v2180_v30 = vadd.f32 %v5199_v61, %v2179_v33 }
 0x4ab   :  { %v5239_v28 = vadd.f32 %v2356_v1, %v2132_v37 }
 0x4ae   :  { %v2184_v47 = vpop.f32.mrb[140].mxu1 }
 0x4af   :  { %v3995_v48 = vpop.f32.mrb[204].mxu0  ;;  %v2186_v44 = vpop.f32.mrb[141].mxu1  ;;  %v2185_v59 = vadd.f32 %v5199_v61, %v2184_v47 }
 0x4b0   :  { %v5243_v49 = vadd.f32 %v3995_v48, %v2153_v38  ;;  %v2369_v12 = vpop.f32.mrb[205].mxu0  ;;  %v2187_v34 = vpop.f32.mrb[142].mxu1 }
 0x4b1   :  { %v5248_v56 = vadd.f32 %v2369_v12, %v2145_v29  ;;  %v3996_v57 = vpop.f32.mrb[206].mxu0  ;;  %v2189_v40 = vpop.f32.mrb[143].mxu1  ;;  %v2188_v51 = vadd.f32 %v5199_v61, %v2187_v34 }
 0x4b2   :  { %v5250_v60 = vadd.f32 %v3996_v57, %v2156_v43  ;;  %v2372_v18 = vpop.f32.mrb[207].mxu0 }
 0x4b3   :  { %v5252_v63 = vadd.f32 %v2372_v18, %v2148_v54 }
 0x4b6   :  { %v2192_v46 = vpop.f32.mrb[144].mxu1 }
 0x4b7   :  { %v3999_v25 = vpop.f32.mrb[208].mxu0  ;;  %v2194_v3 = vpop.f32.mrb[145].mxu1  ;;  %v2193_v47 = vadd.f32 %v5199_v61, %v2192_v46 }
 0x4b8   :  { %v2385_v4 = vpop.f32.mrb[209].mxu0  ;;  %v5257_v6 = vadd.f32 %v3999_v25, %v2169_v52  ;;  %v2195_v31 = vpop.f32.mrb[146].mxu1 }
 0x4b9   :  { %v5262_v13 = vadd.f32 %v2385_v4, %v2161_v55  ;;  %v4000_v36 = vpop.f32.mrb[210].mxu0  ;;  %v2197_v10 = vpop.f32.mrb[147].mxu1  ;;  %v2196_v54 = vadd.f32 %v5199_v61, %v2195_v31 }
 0x4ba   :  { %v2388_v35 = vpop.f32.mrb[211].mxu0  ;;  %v5264_v11 = vadd.f32 %v4000_v36, %v2172_v53 }
 0x4bb   :  { %v5266_v17 = vadd.f32 %v2388_v35, %v2164_v45 }
 0x4be   :  { %v2200_v14 = vpop.f32.mrb[148].mxu1 }
 0x4bf   :  { %v4003_v19 = vpop.f32.mrb[212].mxu0  ;;  %v2202_v50 = vpop.f32.mrb[149].mxu1  ;;  %v2201_v23 = vadd.f32 %v5199_v61, %v2200_v14 }
 0x4c0   :  { %v2401_v7 = vpop.f32.mrb[213].mxu0  ;;  %v5270_v22 = vadd.f32 %v4003_v19, %v2185_v59  ;;  %v2203_v24 = vpop.f32.mrb[150].mxu1 }
 0x4c1   :  { %v4004_v8 = vpop.f32.mrb[214].mxu0  ;;  %v5273_v2 = vadd.f32 %v2401_v7, %v2177_v20  ;;  %v2205_v62 = vpop.f32.mrb[151].mxu1  ;;  %v2204_v43 = vadd.f32 %v5199_v61, %v2203_v24 }
 0x4c2   :  { %v2404_v37 = vpop.f32.mrb[215].mxu0  ;;  %v5276_v41 = vadd.f32 %v4004_v8, %v2188_v51 }
 0x4c3   :  { %v5278_v39 = vadd.f32 %v2404_v37, %v2180_v30 }
 0x4c6   :  { %v2208_v1 = vpop.f32.mrb[152].mxu1 }
 0x4c7   :  { %v4007_v38 = vpop.f32.mrb[216].mxu0  ;;  %v2210_v29 = vpop.f32.mrb[153].mxu1  ;;  %v2209_v25 = vadd.f32 %v5199_v61, %v2208_v1 }
 0x4c8   :  { %v2417_v48 = vpop.f32.mrb[217].mxu0  ;;  %v5282_v44 = vadd.f32 %v4007_v38, %v2201_v23  ;;  %v2211_v12 = vpop.f32.mrb[154].mxu1 }
 0x4c9   :  { %v4008_v33 = vpop.f32.mrb[218].mxu0  ;;  %v5285_v34 = vadd.f32 %v2417_v48, %v2193_v47  ;;  %v2213_v57 = vpop.f32.mrb[155].mxu1  ;;  %v2212_v31 = vadd.f32 %v5199_v61, %v2211_v12 }
 0x4ca   :  { %v2420_v40 = vpop.f32.mrb[219].mxu0  ;;  %v5288_v18 = vadd.f32 %v4008_v33, %v2204_v43 }
 0x4cb   :  { %v5290_v52 = vadd.f32 %v2420_v40, %v2196_v54 }
 0x4ce   :  { %v2216_v55 = vpop.f32.mrb[156].mxu1 }
 0x4cf   :  { %v4011_v46 = vpop.f32.mrb[220].mxu0  ;;  %v2217_v3 = vadd.f32 %v5199_v61, %v2216_v55  ;;  %v2218_v4 = vpop.f32.mrb[157].mxu1 }
 0x4d0   :  { %v2433_v53 = vpop.f32.mrb[221].mxu0  ;;  %v2219_v45 = vpop.f32.mrb[158].mxu1 }
 0x4d1   :  { %v4012_v36 = vpop.f32.mrb[222].mxu0  ;;  %v5294_v10 = vadd.f32 %v2433_v53, %v2209_v25  ;;  %v5297_v35 = vadd.f32 %v4011_v46, %v2217_v3  ;;  %v2220_v59 = vadd.f32 %v5199_v61, %v2219_v45  ;;  %v2221_v14 = vpop.f32.mrb[159].mxu1 }
 0x4d2   :  { %v2436_v19 = vpop.f32.mrb[223].mxu0 }
 0x4d3   :  { %v5300_v20 = vadd.f32 %v2436_v19, %v2212_v31  ;;  %v5302_v50 = vadd.f32 %v4012_v36, %v2220_v59 }
 0x4d6   :  { %v2224_v7 = vpop.f32.mrb[160].mxu1 }
 0x4d7   :  { %v4015_v51 = vpop.f32.mrb[224].mxu0  ;;  %v2225_v24 = vadd.f32 %v5199_v61, %v2224_v7  ;;  %v2226_v8 = vpop.f32.mrb[161].mxu1 }
 0x4d8   :  { %v2449_v30 = vpop.f32.mrb[225].mxu0  ;;  %v2227_v62 = vpop.f32.mrb[162].mxu1 }
 0x4d9   :  { %v4016_v37 = vpop.f32.mrb[226].mxu0  ;;  %v5305_v23 = vadd.f32 %v2449_v30, %v2225_v24  ;;  %v2228_v1 = vadd.f32 %v5199_v61, %v2227_v62  ;;  %v2229_v38 = vpop.f32.mrb[163].mxu1 }
 0x4da   :  { %v2452_v47 = vpop.f32.mrb[227].mxu0 }
 0x4db   :  { %v5308_v29 = vadd.f32 %v2452_v47, %v2228_v1 }
 0x4de   :  { %v2232_v48 = vpop.f32.mrb[164].mxu1 }
 0x4df   :  { %v4019_v43 = vpop.f32.mrb[228].mxu0  ;;  %v2233_v12 = vadd.f32 %v5199_v61, %v2232_v48  ;;  %v2234_v33 = vpop.f32.mrb[165].mxu1 }
 0x4e0   :  { %v2465_v54 = vpop.f32.mrb[229].mxu0  ;;  %v2235_v57 = vpop.f32.mrb[166].mxu1  ;;  %v2848_v33 = vlaneseq }
 0x4e1   :  { %v4020_v40 = vpop.f32.mrb[230].mxu0  ;;  %v5311_v55 = vadd.f32 %v4015_v51, %v2233_v12  ;;  %v2236_v46 = vadd.f32 %v5199_v61, %v2235_v57  ;;  %v2237_v25 = vpop.f32.mrb[167].mxu1 }
 0x4e2   :  { %v2468_v3 = vpop.f32.mrb[231].mxu0 }
 0x4e3   :  { %v5314_v4 = vadd.f32 %v4016_v37, %v2236_v46 }
 0x4e6   :  { %v2240_v53 = vpop.f32.mrb[168].mxu1 }
 0x4e7   :  { %v5316_v45 = vpop.f32.mrb[232].mxu0  ;;  %v2241_v36 = vadd.f32 %v5199_v61, %v2240_v53  ;;  %v2242_v31 = vpop.f32.mrb[169].mxu1  ;;  %v5343_v53 = vld [vmem:[%s6343_s8] ss:$0 sm:$0xff]  ;;  %s4621_s8 = smov [#allocation6]  }
 0x4e8   :  { %v2481_v59 = vpop.f32.mrb[233].mxu0  ;;  %v2243_v14 = vpop.f32.mrb[170].mxu1  ;;  %s3540_s7 = sshll.u32 %s4621_s8, 4  ;;  %s3541_s7 = int_to_ptr.vmem [resolvable:$true] %s3540_s7 }
 0x4e9   :  { %v5319_v19 = vpop.f32.mrb[234].mxu0  ;;  %v5321_v7 = vadd.f32 %v2465_v54, %v2241_v36  ;;  %v2244_v51 = vadd.f32 %v5199_v61, %v2243_v14  ;;  %v2245_v24 = vpop.f32.mrb[171].mxu1  ;;  %v5345_v36 = vand.u32 127, %v2848_v33  ;;  %s4545_s15 = scalar_lea.vmem %s3541_s7, 6144  ;;  %p4550_p9 = scmp.lt.s32.totalorder %s3541_s7, %s3541_s7 }
 0x4ea   :  { %v2484_v8 = vpop.f32.mrb[235].mxu0  ;;  %p4546_p8 = scmp.ne.s32.totalorder %s3541_s7, %s4545_s15  ;;  %p4551_p10 = scmp.lt.s32.totalorder %s4545_s15, %s4545_s15 }
 0x4eb   :  { %v5324_v30 = vadd.f32 %v2468_v3, %v2244_v51  ;;  %vm2850_vm1 = vcmp.lt.s32.totalorder %v5345_v36, 8 }
 0x4ec   :  { %p4552_p11 = por %p4551_p10, %p4550_p9 }
 0x4ed   :  { %6396 = vst [vmem:[#allocation12_spill] sm:$0xff] %v5324_v30 }
 0x4ee   :  { %v2248_v62 = vpop.f32.mrb[172].mxu1  ;;  %p4553_p12 = pnand %p4552_p11, %p4546_p8 }
 0x4ef   :  { %v5326_v37 = vpop.f32.mrb[236].mxu0  ;;  %v2249_v1 = vadd.f32 %v5199_v61, %v2248_v62  ;;  %v2250_v38 = vpop.f32.mrb[173].mxu1 }
 0x4f0   :  { %v5329_v47 = vpop.f32.mrb[237].mxu0  ;;  %v2251_v48 = vpop.f32.mrb[174].mxu1 }
 0x4f1   :  { %v5331_v12 = vpop.f32.mrb[238].mxu0  ;;  %v5333_v54 = vadd.f32 %v4019_v43, %v2249_v1  ;;  %v2252_v57 = vadd.f32 %v5199_v61, %v2251_v48  ;;  %v2253_v46 = vpop.f32.mrb[175].mxu1 }
 0x4f2   :  { %v5336_v25 = vpop.f32.mrb[239].mxu0 }
 0x4f3   :  { %v5338_v3 = vadd.f32 %v4020_v40, %v2252_v57 }
 0x4f6   :  { %v2256_v31 = vpop.f32.mrb[176].mxu1 }
 0x4f7   :  { %v4033_v14 = vpop.f32.mrb[240].mxu0  ;;  %v2257_v51 = vadd.f32 %v5199_v61, %v2256_v31  ;;  %v2258_v43 = vpop.f32.mrb[177].mxu1 }
 0x4f8   :  { %v2570_v24 = vadd.f32 %v4033_v14, %v5343_v53  ;;  %v2561_v62 = vpop.f32.mrb[241].mxu0  ;;  %v2259_v1 = vpop.f32.mrb[178].mxu1 }
 0x4f9   :  { %v2562_v38 = vadd.f32 %v5343_v53, %v2561_v62  ;;  %v4034_v40 = vpop.f32.mrb[242].mxu0  ;;  %v5351_v48 = vadd.f32 %v2481_v59, %v2257_v51  ;;  %v2260_v57 = vadd.f32 %v5199_v61, %v2259_v1  ;;  %v2261_v33 = vpop.f32.mrb[179].mxu1 }
 0x4fa   :  { %v5355_v46 = vadd.f32 %v2570_v24, %v5206_v16  ;;  %v2573_v31 = vadd.f32 %v4034_v40, %v5343_v53  ;;  %v2564_v43 = vpop.f32.mrb[243].mxu0 }
 0x4fb   :  { %v5359_v14 = vadd.f32 %v2562_v38, %v5211_v5  ;;  %v2565_v30 = vadd.f32 %v5343_v53, %v2564_v43  ;;  %v5362_v62 = vadd.f32 %v2484_v8, %v2260_v57 }
 0x4fc   :  { %6397 = vst [vmem:[#allocation13_spill] sm:$0xff] %v5355_v46  ;;  %2802 = vst [vmem:[#allocation6 + $0x10] sm:$0xff] %v5355_v46  ;;  %v5366_v59 = vadd.f32 %v2573_v31, %v5213_v9  ;;  %v5371_v16 = vsel %vm2850_vm1, %v5355_v46, -1e+30 }
 0x4fd   :  { %6398 = vst [vmem:[#allocation14_spill] sm:$0xff] %v5359_v14  ;;  %2800 = vst [vmem:[#allocation6] sm:$0xff] %v5359_v14  ;;  %v5375_v51 = vadd.f32 %v2565_v30, %v5215_v58  ;;  %2903 = vmax.xlane.f32.xlu1 %v5371_v16  ;;  %v5381_v5 = vsel %vm2850_vm1, %v5359_v14, -1e+30 }
 0x4fe   :  { %6399 = vst [vmem:[#allocation15_spill] sm:$0xff] %v5366_v59  ;;  %2803 = vst [vmem:[#allocation6 + $0x18] sm:$0xff] %v5366_v59  ;;  %2899 = vmax.xlane.f32.xlu0 %v5381_v5  ;;  %v2264_v9 = vpop.f32.mrb[180].mxu1  ;;  %v5391_v38 = vsel %vm2850_vm1, %v5366_v59, -1e+30 }
 0x4ff   :  { %6400 = vst [vmem:[#allocation16_spill] sm:$0xff] %v5375_v51  ;;  %2801 = vst [vmem:[#allocation6 + $0x8] sm:$0xff] %v5375_v51  ;;  %v4037_v8 = vpop.f32.mrb[244].mxu0  ;;  %v2265_v24 = vadd.f32 %v5199_v61, %v2264_v9  ;;  %v2266_v1 = vpop.f32.mrb[181].mxu1  ;;  %v5398_v31 = vsel %vm2850_vm1, %v5375_v51, -1e+30 }
 0x500   :  { %v2586_v58 = vadd.f32 %v4037_v8, %v5343_v53  ;;  %v2577_v30 = vpop.f32.mrb[245].mxu0  ;;  %v2267_v40 = vpop.f32.mrb[182].mxu1 }
 0x501   :  { %v2578_v57 = vadd.f32 %v5343_v53, %v2577_v30  ;;  %2905 = vmax.xlane.f32.xlu1 %v5391_v38  ;;  %v4038_v33 = vpop.f32.mrb[246].mxu0  ;;  %v5401_v43 = vadd.f32 %v5316_v45, %v2265_v24  ;;  %v2268_v9 = vadd.f32 %v5199_v61, %v2267_v40  ;;  %v2269_v8 = vpop.f32.mrb[183].mxu1 }
 0x502   :  { %v5405_v1 = vadd.f32 %v2586_v58, %v5220_v26  ;;  %v2589_v14 = vadd.f32 %v4038_v33, %v5343_v53  ;;  %v2580_v30 = vpop.f32.mrb[247].mxu0  ;;  %2901 = vmax.xlane.f32.xlu0 %v5398_v31 }
 0x503   :  { %v5410_v59 = vadd.f32 %v2578_v57, %v5223_v15  ;;  %v2581_v51 = vadd.f32 %v5343_v53, %v2580_v30  ;;  %v5414_v46 = vadd.f32 %v5319_v19, %v2268_v9 }
 0x504   :  { %2806 = vst [vmem:[#allocation6 + $0x30] sm:$0xff] %v5405_v1  ;;  %v5418_v45 = vadd.f32 %v2589_v14, %v5225_v21  ;;  %v5423_v26 = vsel %vm2850_vm1, %v5405_v1, -1e+30 }
 0x505   :  { %6401 = vst [vmem:[#allocation17_spill] sm:$0xff] %v5410_v59  ;;  %2804 = vst [vmem:[#allocation6 + $0x20] sm:$0xff] %v5410_v59  ;;  %v5427_v15 = vadd.f32 %v2581_v51, %v5227_v0  ;;  %v5444_v9 = vsel %vm2850_vm1, %v5410_v59, -1e+30 }
 0x506   :  { %6402 = vst [vmem:[#allocation18_spill] sm:$0xff] %v5418_v45  ;;  %2807 = vst [vmem:[#allocation6 + $0x38] sm:$0xff] %v5418_v45  ;;  %2911 = vmax.xlane.f32.xlu0 %v5423_v26  ;;  %v5434_v19 = vsel %vm2850_vm1, %v5418_v45, -1e+30  ;;  %v2272_v21 = vpop.f32.mrb[184].mxu1 }
 0x507   :  { %6403 = vst [vmem:[#allocation19_spill] sm:$0xff] %v5427_v15  ;;  %2805 = vst [vmem:[#allocation6 + $0x28] sm:$0xff] %v5427_v15  ;;  %2913 = vmax.xlane.f32.xlu1 %v5434_v19  ;;  %v4041_v14 = vpop.f32.mrb[248].mxu0  ;;  %v2273_v24 = vadd.f32 %v5199_v61, %v2272_v21  ;;  %v2274_v58 = vpop.f32.mrb[185].mxu1 }
 0x508   :  { %v2602_v0 = vadd.f32 %v4041_v14, %v5343_v53  ;;  %v2593_v51 = vpop.f32.mrb[249].mxu0  ;;  %v2275_v40 = vpop.f32.mrb[186].mxu1 }
 0x509   :  { %v2594_v57 = vadd.f32 %v5343_v53, %v2593_v51  ;;  %v4042_v33 = vpop.f32.mrb[250].mxu0  ;;  %v5447_v8 = vadd.f32 %v5329_v47, %v2273_v24  ;;  %v2276_v30 = vadd.f32 %v5199_v61, %v2275_v40  ;;  %v2277_v45 = vpop.f32.mrb[187].mxu1  ;;  %v5458_v51 = vsel %vm2850_vm1, %v5427_v15, -1e+30 }
 0x50a   :  { %v5451_v21 = vadd.f32 %v2602_v0, %v5232_v32  ;;  %v2605_v14 = vadd.f32 %v4042_v33, %v5343_v53  ;;  %v2596_v58 = vpop.f32.mrb[251].mxu0  ;;  %2907 = vmax.xlane.f32.xlu0 %v5444_v9 }
 0x50b   :  { %v5461_v59 = vadd.f32 %v2594_v57, %v5235_v27  ;;  %v2597_v47 = vadd.f32 %v5343_v53, %v2596_v58  ;;  %2909 = vmax.xlane.f32.xlu1 %v5458_v51  ;;  %v5466_v32 = vadd.f32 %v5336_v25, %v2276_v30 }
 0x50c   :  { %6404 = vst [vmem:[#allocation20_spill] sm:$0xff] %v5451_v21  ;;  %2810 = vst [vmem:[#allocation6 + $0x50] sm:$0xff] %v5451_v21  ;;  %v5470_v45 = vadd.f32 %v2605_v14, %v5237_v42  ;;  %v5475_v24 = vsel %vm2850_vm1, %v5451_v21, -1e+30 }
 0x50d   :  { %6405 = vst [vmem:[#allocation21_spill] sm:$0xff] %v5461_v59  ;;  %2808 = vst [vmem:[#allocation6 + $0x40] sm:$0xff] %v5461_v59  ;;  %v5479_v27 = vadd.f32 %v2597_v47, %v5239_v28  ;;  %v5497_v33 = vsel %vm2850_vm1, %v5461_v59, -1e+30 }
 0x50e   :  { %6406 = vst [vmem:[#allocation22_spill] sm:$0xff] %v5470_v45  ;;  %2811 = vst [vmem:[#allocation6 + $0x58] sm:$0xff] %v5470_v45  ;;  %2919 = vmax.xlane.f32.xlu0 %v5475_v24  ;;  %v5486_v25 = vsel %vm2850_vm1, %v5470_v45, -1e+30  ;;  %v2280_v42 = vpop.f32.mrb[188].mxu1 }
 0x50f   :  { %6407 = vst [vmem:[#allocation23_spill] sm:$0xff] %v5479_v27  ;;  %2809 = vst [vmem:[#allocation6 + $0x48] sm:$0xff] %v5479_v27  ;;  %2921 = vmax.xlane.f32.xlu1 %v5486_v25  ;;  %v2281_v0 = vadd.f32 %v5199_v61, %v2280_v42  ;;  %v2282_v40 = vpop.f32.mrb[189].mxu1  ;;  %v5504_v58 = vsel %vm2850_vm1, %v5479_v27, -1e+30 }
 0x510   :  { %v2283_v57 = vpop.f32.mrb[190].mxu1 }
 0x511   :  { %v5492_v28 = vadd.f32 %v5326_v37, %v2281_v0  ;;  %v2284_v30 = vadd.f32 %v5199_v61, %v2283_v57  ;;  %v2285_v14 = vpop.f32.mrb[191].mxu1 }
 0x512   :  { %2915 = vmax.xlane.f32.xlu0 %v5497_v33 }
 0x513   :  { %2917 = vmax.xlane.f32.xlu1 %v5504_v58  ;;  %v5508_v37 = vadd.f32 %v5331_v12, %v2284_v30 }
 0x516   :  { %v4045_v47 = vpop.f32.mrb[192].mxu1 }
 0x517   :  { %v2618_v42 = vadd.f32 %v4045_v47, %v5343_v53  ;;  %v2609_v0 = vpop.f32.mrb[193].mxu1 }
 0x518   :  { %v2610_v40 = vadd.f32 %v5343_v53, %v2609_v0  ;;  %v4046_v61 = vpop.f32.mrb[194].mxu1 }
 0x519   :  { %v5513_v57 = vadd.f32 %v2618_v42, %v5243_v49  ;;  %v2621_v14 = vadd.f32 %v4046_v61, %v5343_v53  ;;  %v2612_v59 = vpop.f32.mrb[195].mxu1 }
 0x51a   :  { %v5517_v27 = vadd.f32 %v2610_v40, %v5248_v56  ;;  %v2613_v45 = vadd.f32 %v5343_v53, %v2612_v59 }
 0x51b   :  { %6408 = vst [vmem:[#allocation24_spill] sm:$0xff] %v5513_v57  ;;  %2814 = vst [vmem:[#allocation6 + $0x70] sm:$0xff] %v5513_v57  ;;  %v5522_v12 = vadd.f32 %v2621_v14, %v5250_v60  ;;  %v5527_v30 = vsel %vm2850_vm1, %v5513_v57, -1e+30 }
 0x51c   :  { %6409 = vst [vmem:[#allocation25_spill] sm:$0xff] %v5517_v27  ;;  %2812 = vst [vmem:[#allocation6 + $0x60] sm:$0xff] %v5517_v27  ;;  %v5531_v49 = vadd.f32 %v2613_v45, %v5252_v63  ;;  %2927 = vmax.xlane.f32.xlu0 %v5527_v30  ;;  %v5546_v63 = vsel %vm2850_vm1, %v5517_v27, -1e+30 }
 0x51d   :  { %6410 = vst [vmem:[#allocation26_spill] sm:$0xff] %v5522_v12  ;;  %2815 = vst [vmem:[#allocation6 + $0x78] sm:$0xff] %v5522_v12  ;;  %v5538_v56 = vsel %vm2850_vm1, %v5522_v12, -1e+30 }
 0x51e   :  { %6411 = vst [vmem:[#allocation27_spill] sm:$0xff] %v5531_v49  ;;  %2813 = vst [vmem:[#allocation6 + $0x68] sm:$0xff] %v5531_v49  ;;  %v4049_v60 = vpop.f32.mrb[196].mxu1  ;;  %2929 = vmax.xlane.f32.xlu1 %v5538_v56  ;;  %v5557_v14 = vsel %vm2850_vm1, %v5531_v49, -1e+30 }
 0x51f   :  { %v2634_v59 = vadd.f32 %v4049_v60, %v5343_v53  ;;  %v2625_v47 = vpop.f32.mrb[197].mxu1 }
 0x520   :  { %v2626_v45 = vadd.f32 %v5343_v53, %v2625_v47  ;;  %v4050_v42 = vpop.f32.mrb[198].mxu1  ;;  %2923 = vmax.xlane.f32.xlu0 %v5546_v63 }
 0x521   :  { %v5551_v0 = vadd.f32 %v2634_v59, %v5257_v6  ;;  %v2637_v40 = vadd.f32 %v4050_v42, %v5343_v53  ;;  %v2628_v61 = vpop.f32.mrb[199].mxu1 }
 0x522   :  { %v5560_v60 = vadd.f32 %v2626_v45, %v5262_v13  ;;  %v2629_v27 = vadd.f32 %v5343_v53, %v2628_v61  ;;  %2925 = vmax.xlane.f32.xlu1 %v5557_v14 }
 0x523   :  { %6412 = vst [vmem:[#allocation28_spill] sm:$0xff] %v5551_v0  ;;  %2818 = vst [vmem:[#allocation6 + $0x90] sm:$0xff] %v5551_v0  ;;  %v5566_v6 = vadd.f32 %v2637_v40, %v5264_v11  ;;  %v5571_v59 = vsel %vm2850_vm1, %v5551_v0, -1e+30 }
 0x524   :  { %6413 = vst [vmem:[#allocation29_spill] sm:$0xff] %v5560_v60  ;;  %2816 = vst [vmem:[#allocation6 + $0x80] sm:$0xff] %v5560_v60  ;;  %v5575_v47 = vadd.f32 %v2629_v27, %v5266_v17  ;;  %2935 = vmax.xlane.f32.xlu0 %v5571_v59  ;;  %v5590_v17 = vsel %vm2850_vm1, %v5560_v60, -1e+30 }
 0x525   :  { %6414 = vst [vmem:[#allocation30_spill] sm:$0xff] %v5566_v6  ;;  %2819 = vst [vmem:[#allocation6 + $0x98] sm:$0xff] %v5566_v6  ;;  %v5582_v13 = vsel %vm2850_vm1, %v5566_v6, -1e+30 }
 0x526   :  { %6415 = vst [vmem:[#allocation31_spill] sm:$0xff] %v5575_v47  ;;  %2817 = vst [vmem:[#allocation6 + $0x88] sm:$0xff] %v5575_v47  ;;  %v4053_v11 = vpop.f32.mrb[200].mxu1  ;;  %2937 = vmax.xlane.f32.xlu1 %v5582_v13 }
 0x527   :  { %v2650_v45 = vadd.f32 %v4053_v11, %v5343_v53  ;;  %v2641_v42 = vpop.f32.mrb[201].mxu1  ;;  %v5601_v11 = vsel %vm2850_vm1, %v5575_v47, -1e+30 }
 0x528   :  { %v2642_v27 = vadd.f32 %v5343_v53, %v2641_v42  ;;  %v4054_v40 = vpop.f32.mrb[202].mxu1  ;;  %2931 = vmax.xlane.f32.xlu0 %v5590_v17 }
 0x529   :  { %v5595_v61 = vadd.f32 %v2650_v45, %v5270_v22  ;;  %v2653_v6 = vadd.f32 %v4054_v40, %v5343_v53  ;;  %v2644_v0 = vpop.f32.mrb[203].mxu1 }
 0x52a   :  { %v5604_v49 = vadd.f32 %v2642_v27, %v5273_v2  ;;  %v2645_v60 = vadd.f32 %v5343_v53, %v2644_v0  ;;  %2933 = vmax.xlane.f32.xlu1 %v5601_v11 }
 0x52b   :  { %6416 = vst [vmem:[#allocation32_spill] sm:$0xff] %v5595_v61  ;;  %2822 = vst [vmem:[#allocation6 + $0xb0] sm:$0xff] %v5595_v61  ;;  %v5610_v22 = vadd.f32 %v2653_v6, %v5276_v41  ;;  %v5615_v45 = vsel %vm2850_vm1, %v5595_v61, -1e+30 }
 0x52c   :  { %6417 = vst [vmem:[#allocation33_spill] sm:$0xff] %v5604_v49  ;;  %2820 = vst [vmem:[#allocation6 + $0xa0] sm:$0xff] %v5604_v49  ;;  %v5619_v42 = vadd.f32 %v2645_v60, %v5278_v39  ;;  %2943 = vmax.xlane.f32.xlu0 %v5615_v45  ;;  %v5634_v39 = vsel %vm2850_vm1, %v5604_v49, -1e+30 }
 0x52d   :  { %6418 = vst [vmem:[#allocation34_spill] sm:$0xff] %v5610_v22  ;;  %2823 = vst [vmem:[#allocation6 + $0xb8] sm:$0xff] %v5610_v22  ;;  %v5626_v2 = vsel %vm2850_vm1, %v5610_v22, -1e+30 }
 0x52e   :  { %6419 = vst [vmem:[#allocation35_spill] sm:$0xff] %v5619_v42  ;;  %2821 = vst [vmem:[#allocation6 + $0xa8] sm:$0xff] %v5619_v42  ;;  %v4057_v41 = vpop.f32.mrb[204].mxu1  ;;  %2945 = vmax.xlane.f32.xlu1 %v5626_v2 }
 0x52f   :  { %v2666_v0 = vadd.f32 %v4057_v41, %v5343_v53  ;;  %v2657_v6 = vpop.f32.mrb[205].mxu1  ;;  %v5645_v41 = vsel %vm2850_vm1, %v5619_v42, -1e+30 }
 0x530   :  { %v2658_v60 = vadd.f32 %v5343_v53, %v2657_v6  ;;  %v4058_v27 = vpop.f32.mrb[206].mxu1  ;;  %2939 = vmax.xlane.f32.xlu0 %v5634_v39 }
 0x531   :  { %v5639_v40 = vadd.f32 %v2666_v0, %v5282_v44  ;;  %v2669_v22 = vadd.f32 %v4058_v27, %v5343_v53  ;;  %v2660_v61 = vpop.f32.mrb[207].mxu1 }
 0x532   :  { %v5648_v47 = vadd.f32 %v2658_v60, %v5285_v34  ;;  %2941 = vmax.xlane.f32.xlu1 %v5645_v41  ;;  %v2661_v6 = vadd.f32 %v5343_v53, %v2660_v61 }
 0x533   :  { %6420 = vst [vmem:[#allocation36_spill] sm:$0xff] %v5639_v40  ;;  %2826 = vst [vmem:[#allocation6 + $0xd0] sm:$0xff] %v5639_v40  ;;  %v5654_v44 = vadd.f32 %v2669_v22, %v5288_v18  ;;  %v5659_v0 = vsel %vm2850_vm1, %v5639_v40, -1e+30 }
 0x534   :  { %6421 = vst [vmem:[#allocation37_spill] sm:$0xff] %v5648_v47  ;;  %2824 = vst [vmem:[#allocation6 + $0xc0] sm:$0xff] %v5648_v47  ;;  %v5663_v27 = vadd.f32 %v2661_v6, %v5290_v52  ;;  %2951 = vmax.xlane.f32.xlu0 %v5659_v0  ;;  %v5678_v52 = vsel %vm2850_vm1, %v5648_v47, -1e+30 }
 0x535   :  { %6422 = vst [vmem:[#allocation38_spill] sm:$0xff] %v5654_v44  ;;  %2827 = vst [vmem:[#allocation6 + $0xd8] sm:$0xff] %v5654_v44  ;;  %v5670_v34 = vsel %vm2850_vm1, %v5654_v44, -1e+30 }
 0x536   :  { %6423 = vst [vmem:[#allocation39_spill] sm:$0xff] %v5663_v27  ;;  %2825 = vst [vmem:[#allocation6 + $0xc8] sm:$0xff] %v5663_v27  ;;  %v4061_v18 = vpop.f32.mrb[208].mxu1  ;;  %2953 = vmax.xlane.f32.xlu1 %v5670_v34 }
 0x537   :  { %v2682_v61 = vadd.f32 %v4061_v18, %v5343_v53  ;;  %v2673_v22 = vpop.f32.mrb[209].mxu1  ;;  %v5689_v18 = vsel %vm2850_vm1, %v5663_v27, -1e+30 }
 0x538   :  { %v2674_v60 = vadd.f32 %v5343_v53, %v2673_v22  ;;  %v4062_v6 = vpop.f32.mrb[210].mxu1  ;;  %2947 = vmax.xlane.f32.xlu0 %v5678_v52 }
 0x539   :  { %v5683_v44 = vadd.f32 %v2682_v61, %v5297_v35  ;;  %v2685_v40 = vadd.f32 %v4062_v6, %v5343_v53  ;;  %v2676_v42 = vpop.f32.mrb[211].mxu1 }
 0x53a   :  { %v5692_v49 = vadd.f32 %v2674_v60, %v5294_v10  ;;  %2949 = vmax.xlane.f32.xlu1 %v5689_v18  ;;  %v2677_v22 = vadd.f32 %v5343_v53, %v2676_v42 }
 0x53b   :  { %6424 = vst [vmem:[#allocation40_spill] sm:$0xff] %v5683_v44  ;;  %2830 = vst [vmem:[#allocation6 + $0xf0] sm:$0xff] %v5683_v44  ;;  %v5698_v35 = vadd.f32 %v2685_v40, %v5302_v50  ;;  %v5703_v61 = vsel %vm2850_vm1, %v5683_v44, -1e+30 }
 0x53c   :  { %6425 = vst [vmem:[#allocation41_spill] sm:$0xff] %v5692_v49  ;;  %2828 = vst [vmem:[#allocation6 + $0xe0] sm:$0xff] %v5692_v49  ;;  %v5707_v6 = vadd.f32 %v2677_v22, %v5300_v20  ;;  %2959 = vmax.xlane.f32.xlu0 %v5703_v61  ;;  %v5722_v20 = vsel %vm2850_vm1, %v5692_v49, -1e+30 }
 0x53d   :  { %6426 = vst [vmem:[#allocation42_spill] sm:$0xff] %v5698_v35  ;;  %2831 = vst [vmem:[#allocation6 + $0xf8] sm:$0xff] %v5698_v35  ;;  %v5714_v10 = vsel %vm2850_vm1, %v5698_v35, -1e+30 }
 0x53e   :  { %6427 = vst [vmem:[#allocation43_spill] sm:$0xff] %v5707_v6  ;;  %2829 = vst [vmem:[#allocation6 + $0xe8] sm:$0xff] %v5707_v6  ;;  %v4065_v50 = vpop.f32.mrb[212].mxu1  ;;  %2961 = vmax.xlane.f32.xlu1 %v5714_v10 }
 0x53f   :  { %v2698_v42 = vadd.f32 %v4065_v50, %v5343_v53  ;;  %v2689_v40 = vpop.f32.mrb[213].mxu1  ;;  %v5733_v50 = vsel %vm2850_vm1, %v5707_v6, -1e+30 }
 0x540   :  { %v2690_v60 = vadd.f32 %v5343_v53, %v2689_v40  ;;  %v4066_v22 = vpop.f32.mrb[214].mxu1  ;;  %2955 = vmax.xlane.f32.xlu0 %v5722_v20 }
 0x541   :  { %v5727_v35 = vadd.f32 %v2698_v42, %v5311_v55  ;;  %v2701_v44 = vadd.f32 %v4066_v22, %v5343_v53  ;;  %v2692_v27 = vpop.f32.mrb[215].mxu1 }
 0x542   :  { %v5736_v47 = vadd.f32 %v2690_v60, %v5305_v23  ;;  %2957 = vmax.xlane.f32.xlu1 %v5733_v50  ;;  %v2693_v40 = vadd.f32 %v5343_v53, %v2692_v27 }
 0x543   :  { %6428 = vst [vmem:[#allocation44_spill] sm:$0xff] %v5727_v35  ;;  %2834 = vst [vmem:[#allocation6 + $0x110] sm:$0xff] %v5727_v35  ;;  %v5742_v55 = vadd.f32 %v2701_v44, %v5314_v4  ;;  %v5747_v42 = vsel %vm2850_vm1, %v5727_v35, -1e+30 }
 0x544   :  { %6429 = vst [vmem:[#allocation45_spill] sm:$0xff] %v5736_v47  ;;  %2832 = vst [vmem:[#allocation6 + $0x100] sm:$0xff] %v5736_v47  ;;  %v5751_v22 = vadd.f32 %v2693_v40, %v5308_v29  ;;  %2967 = vmax.xlane.f32.xlu0 %v5747_v42  ;;  %v5766_v29 = vsel %vm2850_vm1, %v5736_v47, -1e+30 }
 0x545   :  { %6430 = vst [vmem:[#allocation46_spill] sm:$0xff] %v5742_v55  ;;  %2835 = vst [vmem:[#allocation6 + $0x118] sm:$0xff] %v5742_v55  ;;  %v5758_v23 = vsel %vm2850_vm1, %v5742_v55, -1e+30 }
 0x546   :  { %6431 = vst [vmem:[#allocation47_spill] sm:$0xff] %v5751_v22  ;;  %2833 = vst [vmem:[#allocation6 + $0x108] sm:$0xff] %v5751_v22  ;;  %v4069_v4 = vpop.f32.mrb[216].mxu1  ;;  %2969 = vmax.xlane.f32.xlu1 %v5758_v23 }
 0x547   :  { %v2714_v44 = vadd.f32 %v4069_v4, %v5343_v53  ;;  %v2705_v27 = vpop.f32.mrb[217].mxu1  ;;  %v5777_v4 = vsel %vm2850_vm1, %v5751_v22, -1e+30 }
 0x548   :  { %v2706_v60 = vadd.f32 %v5343_v53, %v2705_v27  ;;  %v4070_v40 = vpop.f32.mrb[218].mxu1  ;;  %2963 = vmax.xlane.f32.xlu0 %v5766_v29 }
 0x549   :  { %v5771_v55 = vadd.f32 %v2714_v44, %v5333_v54  ;;  %v2717_v35 = vadd.f32 %v4070_v40, %v5343_v53  ;;  %v2708_v6 = vpop.f32.mrb[219].mxu1  ;;  %v6435_v40 = vld [vmem:[#allocation12_spill] sm:$0xff] }
 0x54a   :  { %v5780_v49 = vadd.f32 %v2706_v60, %v5321_v7  ;;  %2965 = vmax.xlane.f32.xlu1 %v5777_v4  ;;  %v2709_v27 = vadd.f32 %v5343_v53, %v2708_v6 }
 0x54b   :  { %6432 = vst [vmem:[#allocation48_spill] sm:$0xff] %v5771_v55  ;;  %2838 = vst [vmem:[#allocation6 + $0x130] sm:$0xff] %v5771_v55  ;;  %v5786_v54 = vadd.f32 %v2717_v35, %v5338_v3  ;;  %v5791_v44 = vsel %vm2850_vm1, %v5771_v55, -1e+30 }
 0x54c   :  { %6433 = vst [vmem:[#allocation49_spill] sm:$0xff] %v5780_v49  ;;  %2836 = vst [vmem:[#allocation6 + $0x120] sm:$0xff] %v5780_v49  ;;  %v5795_v22 = vadd.f32 %v2709_v27, %v6435_v40  ;;  %2975 = vmax.xlane.f32.xlu0 %v5791_v44  ;;  %v5810_v60 = vsel %vm2850_vm1, %v5780_v49, -1e+30 }
 0x54d   :  { %6434 = vst [vmem:[#allocation50_spill] sm:$0xff] %v5786_v54  ;;  %2839 = vst [vmem:[#allocation6 + $0x138] sm:$0xff] %v5786_v54  ;;  %v5802_v7 = vsel %vm2850_vm1, %v5786_v54, -1e+30 }
 0x54e   :  { %6436 = vst [vmem:[#allocation12_spill] sm:$0xff] %v5795_v22  ;;  %2837 = vst [vmem:[#allocation6 + $0x128] sm:$0xff] %v5795_v22  ;;  %v4073_v3 = vpop.f32.mrb[220].mxu1  ;;  %2977 = vmax.xlane.f32.xlu1 %v5802_v7 }
 0x54f   :  { %v2730_v35 = vadd.f32 %v4073_v3, %v5343_v53  ;;  %v2721_v6 = vpop.f32.mrb[221].mxu1  ;;  %v5821_v3 = vsel %vm2850_vm1, %v5795_v22, -1e+30 }
 0x550   :  { %v2722_v27 = vadd.f32 %v5343_v53, %v2721_v6  ;;  %v4074_v40 = vpop.f32.mrb[222].mxu1  ;;  %2971 = vmax.xlane.f32.xlu0 %v5810_v60 }
 0x551   :  { %v5815_v54 = vadd.f32 %v2730_v35, %v5401_v43  ;;  %v2733_v55 = vadd.f32 %v4074_v40, %v5343_v53  ;;  %v2724_v47 = vpop.f32.mrb[223].mxu1 }
 0x552   :  { %v5824_v12 = vadd.f32 %v2722_v27, %v5351_v48  ;;  %2973 = vmax.xlane.f32.xlu1 %v5821_v3  ;;  %v2725_v6 = vadd.f32 %v5343_v53, %v2724_v47 }
 0x553   :  { %6437 = vst [vmem:[#allocation51_spill] sm:$0xff] %v5815_v54  ;;  %2842 = vst [vmem:[#allocation6 + $0x150] sm:$0xff] %v5815_v54  ;;  %v5830_v43 = vadd.f32 %v2733_v55, %v5414_v46  ;;  %v5835_v35 = vsel %vm2850_vm1, %v5815_v54, -1e+30 }
 0x554   :  { %6438 = vst [vmem:[#allocation52_spill] sm:$0xff] %v5824_v12  ;;  %2840 = vst [vmem:[#allocation6 + $0x140] sm:$0xff] %v5824_v12  ;;  %v5839_v40 = vadd.f32 %v2725_v6, %v5362_v62  ;;  %2983 = vmax.xlane.f32.xlu0 %v5835_v35  ;;  %v5854_v62 = vsel %vm2850_vm1, %v5824_v12, -1e+30 }
 0x555   :  { %6439 = vst [vmem:[#allocation53_spill] sm:$0xff] %v5830_v43  ;;  %2843 = vst [vmem:[#allocation6 + $0x158] sm:$0xff] %v5830_v43  ;;  %v5846_v48 = vsel %vm2850_vm1, %v5830_v43, -1e+30 }
 0x556   :  { %6440 = vst [vmem:[#allocation54_spill] sm:$0xff] %v5839_v40  ;;  %2841 = vst [vmem:[#allocation6 + $0x148] sm:$0xff] %v5839_v40  ;;  %v4077_v46 = vpop.f32.mrb[224].mxu1  ;;  %2985 = vmax.xlane.f32.xlu1 %v5846_v48 }
 0x557   :  { %v2746_v47 = vadd.f32 %v4077_v46, %v5343_v53  ;;  %v2737_v55 = vpop.f32.mrb[225].mxu1  ;;  %v5865_v46 = vsel %vm2850_vm1, %v5839_v40, -1e+30 }
 0x558   :  { %v2738_v27 = vadd.f32 %v5343_v53, %v2737_v55  ;;  %v4078_v6 = vpop.f32.mrb[226].mxu1  ;;  %2979 = vmax.xlane.f32.xlu0 %v5854_v62 }
 0x559   :  { %v5859_v43 = vadd.f32 %v2746_v47, %v5492_v28  ;;  %v2749_v54 = vadd.f32 %v4078_v6, %v5343_v53  ;;  %v2740_v22 = vpop.f32.mrb[227].mxu1 }
 0x55a   :  { %v5868_v49 = vadd.f32 %v2738_v27, %v5447_v8  ;;  %2981 = vmax.xlane.f32.xlu1 %v5865_v46  ;;  %v2741_v55 = vadd.f32 %v5343_v53, %v2740_v22 }
 0x55b   :  { %6441 = vst [vmem:[#allocation55_spill] sm:$0xff] %v5859_v43  ;;  %2846 = vst [vmem:[#allocation6 + $0x170] sm:$0xff] %v5859_v43  ;;  %v5874_v28 = vadd.f32 %v2749_v54, %v5508_v37  ;;  %v5879_v47 = vsel %vm2850_vm1, %v5859_v43, -1e+30 }
 0x55c   :  { %6442 = vst [vmem:[#allocation56_spill] sm:$0xff] %v5868_v49  ;;  %2844 = vst [vmem:[#allocation6 + $0x160] sm:$0xff] %v5868_v49  ;;  %v5883_v6 = vadd.f32 %v2741_v55, %v5466_v32  ;;  %2991 = vmax.xlane.f32.xlu0 %v5879_v47  ;;  %v5897_v8 = vsel %vm2850_vm1, %v5868_v49, -1e+30 }
 0x55d   :  { %6443 = vst [vmem:[#allocation57_spill] sm:$0xff] %v5874_v28  ;;  %2847 = vst [vmem:[#allocation6 + $0x178] sm:$0xff] %v5874_v28  ;;  %v5890_v53 = vsel %vm2850_vm1, %v5874_v28, -1e+30 }
 0x55e   :  { %6444 = vst [vmem:[#allocation58_spill] sm:$0xff] %v5883_v6  ;;  %2845 = vst [vmem:[#allocation6 + $0x168] sm:$0xff] %v5883_v6  ;;  %2993 = vmax.xlane.f32.xlu1 %v5890_v53  ;;  %v5903_v32 = vsel %vm2850_vm1, %v5883_v6, -1e+30 }
 0x560   :  { %2987 = vmax.xlane.f32.xlu0 %v5897_v8 }
 0x562   :  { %2989 = vmax.xlane.f32.xlu1 %v5903_v32 }
 0x58a   :  { %v5906_v37 = vpop.xlane.xlu1 %2903 }
 0x58b   :  { %v2997_v22 = vsub.f32 %v5371_v16, %v5906_v37  ;;  %v5910_v54 = vpop.xlane.xlu0 %2899 }
 0x58c   :  { %v2995_v27 = vsub.f32 %v5381_v5, %v5910_v54 }
 0x58d   :  { %v3047_v55 = vmul.f32 1.442695, %v2997_v22 }
 0x58e   :  { %v3043_v28 = vmul.f32 1.442695, %v2995_v27  ;;  %v5914_v43 = vpop.xlane.xlu1 %2905 }
 0x58f   :  { %4236 = vpow2.f32 %v3047_v55  ;;  %v2998_v6 = vsub.f32 %v5391_v38, %v5914_v43  ;;  %v5918_v49 = vpop.xlane.xlu0 %2901 }
 0x590   :  { %v2996_v40 = vsub.f32 %v5398_v31, %v5918_v49  ;;  %4238 = vpow2.f32 %v3043_v28 }
 0x591   :  { %v3049_v12 = vmul.f32 1.442695, %v2998_v6 }
 0x592   :  { %v3045_v16 = vmul.f32 1.442695, %v2996_v40 }
 0x593   :  { %4240 = vpow2.f32 %v3049_v12  ;;  %v5922_v57 = vpop.xlane.xlu0 %2911 }
 0x594   :  { %v3001_v5 = vsub.f32 %v5423_v26, %v5922_v57  ;;  %v5926_v22 = vpop.xlane.xlu1 %2913  ;;  %4242 = vpow2.f32 %v3045_v16 }
 0x595   :  { %v3002_v27 = vsub.f32 %v5434_v19, %v5926_v22 }
 0x596   :  { %v3055_v38 = vmul.f32 1.442695, %v3001_v5 }
 0x597   :  { %v3057_v55 = vmul.f32 1.442695, %v3002_v27  ;;  %v5930_v21 = vpop.xlane.xlu0 %2907 }
 0x598   :  { %4244 = vpow2.f32 %v3055_v38  ;;  %v2999_v31 = vsub.f32 %v5444_v9, %v5930_v21  ;;  %v5934_v12 = vpop.xlane.xlu1 %2909 }
 0x599   :  { %v4237_v40 = vpop.eup %4236  ;;  %v3000_v26 = vsub.f32 %v5458_v51, %v5934_v12  ;;  %4246 = vpow2.f32 %v3057_v55 }
 0x59a   :  { %v3051_v28 = vmul.f32 1.442695, %v2999_v31  ;;  %3143 = vadd.xlane.f32.xlu0 %v4237_v40  ;;  %v4239_v16 = vpop.eup %4238 }
 0x59b   :  { %v3053_v6 = vmul.f32 1.442695, %v3000_v26  ;;  %v5938_v19 = vpop.xlane.xlu0 %2919 }
 0x59c   :  { %6445 = vst [vmem:[#allocation59_spill] sm:$0xff] %v5938_v19  ;;  %4248 = vpow2.f32 %v3051_v28  ;;  %v3005_v5 = vsub.f32 %v5475_v24, %v5938_v19  ;;  %v5942_v27 = vpop.xlane.xlu1 %2921 }
 0x59d   :  { %v4241_v9 = vpop.eup %4240  ;;  %v3006_v38 = vsub.f32 %v5486_v25, %v5942_v27  ;;  %4250 = vpow2.f32 %v3053_v6 }
 0x59e   :  { %v3063_v15 = vmul.f32 1.442695, %v3005_v5  ;;  %3145 = vadd.xlane.f32.xlu1 %v4241_v9  ;;  %3139 = vadd.xlane.f32.xlu0 %v4239_v16  ;;  %v4243_v24 = vpop.eup %4242 }
 0x59f   :  { %v3065_v51 = vmul.f32 1.442695, %v3006_v38  ;;  %v5946_v55 = vpop.xlane.xlu0 %2915 }
 0x5a0   :  { %4252 = vpow2.f32 %v3063_v15  ;;  %v3003_v31 = vsub.f32 %v5497_v33, %v5946_v55  ;;  %v5950_v40 = vpop.xlane.xlu1 %2917 }
 0x5a1   :  { %v3004_v26 = vsub.f32 %v5504_v58, %v5950_v40  ;;  %4254 = vpow2.f32 %v3065_v51 }
 0x5a2   :  { %v4245_v28 = vpop.eup %4244  ;;  %v3059_v19 = vmul.f32 1.442695, %v3003_v31  ;;  %3141 = vadd.xlane.f32.xlu1 %v4243_v24 }
 0x5a3   :  { %v3061_v25 = vmul.f32 1.442695, %v3004_v26  ;;  %3151 = vadd.xlane.f32.xlu0 %v4245_v28  ;;  %v4247_v6 = vpop.eup %4246 }
 0x5a4   :  { %4256 = vpow2.f32 %v3059_v19 }
 0x5a5   :  { %4258 = vpow2.f32 %v3061_v25 }
 0x5a6   :  { %v4249_v16 = vpop.eup %4248  ;;  %3153 = vadd.xlane.f32.xlu1 %v4247_v6 }
 0x5a7   :  { %3147 = vadd.xlane.f32.xlu0 %v4249_v16  ;;  %v4251_v15 = vpop.eup %4250 }
 0x5a9   :  { %v5954_v33 = vpop.xlane.xlu0 %2927 }
 0x5aa   :  { %v4253_v5 = vpop.eup %4252  ;;  %v3009_v9 = vsub.f32 %v5527_v30, %v5954_v33  ;;  %3149 = vadd.xlane.f32.xlu1 %v4251_v15 }
 0x5ab   :  { %v5958_v58 = vpop.xlane.xlu1 %2929  ;;  %3159 = vadd.xlane.f32.xlu0 %v4253_v5  ;;  %v4255_v51 = vpop.eup %4254 }
 0x5ac   :  { %v3071_v38 = vmul.f32 1.442695, %v3009_v9  ;;  %v3010_v19 = vsub.f32 %v5538_v56, %v5958_v58 }
 0x5ad   :  { %v5962_v31 = vpop.xlane.xlu0 %2923 }
 0x5ae   :  { %v4257_v24 = vpop.eup %4256  ;;  %4260 = vpow2.f32 %v3071_v38  ;;  %v3073_v26 = vmul.f32 1.442695, %v3010_v19  ;;  %v3007_v28 = vsub.f32 %v5546_v63, %v5962_v31  ;;  %3161 = vadd.xlane.f32.xlu1 %v4255_v51 }
 0x5af   :  { %v5966_v25 = vpop.xlane.xlu1 %2925  ;;  %3155 = vadd.xlane.f32.xlu0 %v4257_v24  ;;  %v4259_v16 = vpop.eup %4258 }
 0x5b0   :  { %4262 = vpow2.f32 %v3073_v26  ;;  %v3067_v30 = vmul.f32 1.442695, %v3007_v28  ;;  %v3008_v6 = vsub.f32 %v5557_v14, %v5966_v25 }
 0x5b1   :  { %v5970_v56 = vpop.xlane.xlu0 %2935 }
 0x5b2   :  { %4264 = vpow2.f32 %v3067_v30  ;;  %v3069_v15 = vmul.f32 1.442695, %v3008_v6  ;;  %v3013_v5 = vsub.f32 %v5571_v59, %v5970_v56  ;;  %3157 = vadd.xlane.f32.xlu1 %v4259_v16 }
 0x5b3   :  { %v5974_v9 = vpop.xlane.xlu1 %2937 }
 0x5b4   :  { %4266 = vpow2.f32 %v3069_v15  ;;  %v3079_v63 = vmul.f32 1.442695, %v3013_v5  ;;  %v3014_v38 = vsub.f32 %v5582_v13, %v5974_v9 }
 0x5b5   :  { %v5978_v19 = vpop.xlane.xlu0 %2931 }
 0x5b6   :  { %4268 = vpow2.f32 %v3079_v63  ;;  %v3081_v14 = vmul.f32 1.442695, %v3014_v38  ;;  %v3011_v51 = vsub.f32 %v5590_v17, %v5978_v19 }
 0x5b7   :  { %v5982_v24 = vpop.xlane.xlu1 %2933 }
 0x5b8   :  { %v4261_v26 = vpop.eup %4260  ;;  %4270 = vpow2.f32 %v3081_v14  ;;  %v3075_v59 = vmul.f32 1.442695, %v3011_v51  ;;  %v3012_v28 = vsub.f32 %v5601_v11, %v5982_v24 }
 0x5b9   :  { %3167 = vadd.xlane.f32.xlu0 %v4261_v26  ;;  %v5986_v30 = vpop.xlane.xlu0 %2943 }
 0x5ba   :  { %v4263_v6 = vpop.eup %4262  ;;  %4272 = vpow2.f32 %v3075_v59  ;;  %v3077_v13 = vmul.f32 1.442695, %v3012_v28  ;;  %v3017_v16 = vsub.f32 %v5615_v45, %v5986_v30 }
 0x5bb   :  { %v5990_v15 = vpop.xlane.xlu1 %2945  ;;  %3169 = vadd.xlane.f32.xlu1 %v4263_v6 }
 0x5bc   :  { %v4265_v17 = vpop.eup %4264  ;;  %4274 = vpow2.f32 %v3077_v13  ;;  %v3087_v5 = vmul.f32 1.442695, %v3017_v16  ;;  %v3018_v63 = vsub.f32 %v5626_v2, %v5990_v15 }
 0x5bd   :  { %3163 = vadd.xlane.f32.xlu0 %v4265_v17  ;;  %v5994_v11 = vpop.xlane.xlu0 %2939 }
 0x5be   :  { %v4267_v38 = vpop.eup %4266  ;;  %4276 = vpow2.f32 %v3087_v5  ;;  %v3089_v14 = vmul.f32 1.442695, %v3018_v63  ;;  %v3015_v51 = vsub.f32 %v5634_v39, %v5994_v11 }
 0x5bf   :  { %v5998_v26 = vpop.xlane.xlu1 %2941  ;;  %3165 = vadd.xlane.f32.xlu1 %v4267_v38 }
 0x5c0   :  { %v4269_v45 = vpop.eup %4268  ;;  %4278 = vpow2.f32 %v3089_v14  ;;  %v3083_v59 = vmul.f32 1.442695, %v3015_v51  ;;  %v3016_v28 = vsub.f32 %v5645_v41, %v5998_v26 }
 0x5c1   :  { %3175 = vadd.xlane.f32.xlu0 %v4269_v45  ;;  %v6002_v2 = vpop.xlane.xlu0 %2951 }
 0x5c2   :  { %v4271_v6 = vpop.eup %4270  ;;  %4280 = vpow2.f32 %v3083_v59  ;;  %v3085_v13 = vmul.f32 1.442695, %v3016_v28  ;;  %v3021_v16 = vsub.f32 %v5659_v0, %v6002_v2 }
 0x5c3   :  { %v6006_v17 = vpop.xlane.xlu1 %2953  ;;  %3177 = vadd.xlane.f32.xlu1 %v4271_v6 }
 0x5c4   :  { %v4273_v39 = vpop.eup %4272  ;;  %4282 = vpow2.f32 %v3085_v13  ;;  %v3095_v5 = vmul.f32 1.442695, %v3021_v16  ;;  %v3022_v63 = vsub.f32 %v5670_v34, %v6006_v17 }
 0x5c5   :  { %3171 = vadd.xlane.f32.xlu0 %v4273_v39  ;;  %v6010_v41 = vpop.xlane.xlu0 %2947 }
 0x5c6   :  { %v4275_v38 = vpop.eup %4274  ;;  %4284 = vpow2.f32 %v3095_v5  ;;  %v3097_v14 = vmul.f32 1.442695, %v3022_v63  ;;  %v3019_v51 = vsub.f32 %v5678_v52, %v6010_v41 }
 0x5c7   :  { %v6014_v45 = vpop.xlane.xlu1 %2949  ;;  %3173 = vadd.xlane.f32.xlu1 %v4275_v38 }
 0x5c8   :  { %v4277_v0 = vpop.eup %4276  ;;  %4286 = vpow2.f32 %v3097_v14  ;;  %v3091_v59 = vmul.f32 1.442695, %v3019_v51  ;;  %v3020_v28 = vsub.f32 %v5689_v18, %v6014_v45 }
 0x5c9   :  { %3183 = vadd.xlane.f32.xlu0 %v4277_v0  ;;  %v6018_v34 = vpop.xlane.xlu0 %2959 }
 0x5ca   :  { %v4279_v6 = vpop.eup %4278  ;;  %4288 = vpow2.f32 %v3091_v59  ;;  %v3093_v13 = vmul.f32 1.442695, %v3020_v28  ;;  %v3025_v16 = vsub.f32 %v5703_v61, %v6018_v34 }
 0x5cb   :  { %v6022_v39 = vpop.xlane.xlu1 %2961  ;;  %3185 = vadd.xlane.f32.xlu1 %v4279_v6 }
 0x5cc   :  { %v4281_v52 = vpop.eup %4280  ;;  %4290 = vpow2.f32 %v3093_v13  ;;  %v3103_v5 = vmul.f32 1.442695, %v3025_v16  ;;  %v3026_v63 = vsub.f32 %v5714_v10, %v6022_v39 }
 0x5cd   :  { %3179 = vadd.xlane.f32.xlu0 %v4281_v52  ;;  %v6026_v18 = vpop.xlane.xlu0 %2955 }
 0x5ce   :  { %v4283_v38 = vpop.eup %4282  ;;  %4292 = vpow2.f32 %v3103_v5  ;;  %v3105_v14 = vmul.f32 1.442695, %v3026_v63  ;;  %v3023_v51 = vsub.f32 %v5722_v20, %v6026_v18 }
 0x5cf   :  { %v6030_v0 = vpop.xlane.xlu1 %2957  ;;  %3181 = vadd.xlane.f32.xlu1 %v4283_v38 }
 0x5d0   :  { %v4285_v61 = vpop.eup %4284  ;;  %4294 = vpow2.f32 %v3105_v14  ;;  %v3099_v59 = vmul.f32 1.442695, %v3023_v51  ;;  %v3024_v28 = vsub.f32 %v5733_v50, %v6030_v0 }
 0x5d1   :  { %3191 = vadd.xlane.f32.xlu0 %v4285_v61  ;;  %v6034_v10 = vpop.xlane.xlu0 %2967 }
 0x5d2   :  { %v4287_v6 = vpop.eup %4286  ;;  %4296 = vpow2.f32 %v3099_v59  ;;  %v3101_v13 = vmul.f32 1.442695, %v3024_v28  ;;  %v3029_v16 = vsub.f32 %v5747_v42, %v6034_v10 }
 0x5d3   :  { %v6038_v52 = vpop.xlane.xlu1 %2969  ;;  %3193 = vadd.xlane.f32.xlu1 %v4287_v6 }
 0x5d4   :  { %v4289_v20 = vpop.eup %4288  ;;  %4298 = vpow2.f32 %v3101_v13  ;;  %v3111_v5 = vmul.f32 1.442695, %v3029_v16  ;;  %v3030_v63 = vsub.f32 %v5758_v23, %v6038_v52 }
 0x5d5   :  { %3187 = vadd.xlane.f32.xlu0 %v4289_v20  ;;  %v6042_v50 = vpop.xlane.xlu0 %2963 }
 0x5d6   :  { %v4291_v38 = vpop.eup %4290  ;;  %4300 = vpow2.f32 %v3111_v5  ;;  %v3113_v14 = vmul.f32 1.442695, %v3030_v63  ;;  %v3027_v51 = vsub.f32 %v5766_v29, %v6042_v50 }
 0x5d7   :  { %v6046_v61 = vpop.xlane.xlu1 %2965  ;;  %3189 = vadd.xlane.f32.xlu1 %v4291_v38 }
 0x5d8   :  { %v4293_v42 = vpop.eup %4292  ;;  %4302 = vpow2.f32 %v3113_v14  ;;  %v3107_v59 = vmul.f32 1.442695, %v3027_v51  ;;  %v3028_v28 = vsub.f32 %v5777_v4, %v6046_v61 }
 0x5d9   :  { %3199 = vadd.xlane.f32.xlu0 %v4293_v42  ;;  %v6050_v23 = vpop.xlane.xlu0 %2975 }
 0x5da   :  { %v4295_v6 = vpop.eup %4294  ;;  %4304 = vpow2.f32 %v3107_v59  ;;  %v3109_v13 = vmul.f32 1.442695, %v3028_v28  ;;  %v3033_v16 = vsub.f32 %v5791_v44, %v6050_v23 }
 0x5db   :  { %v6054_v20 = vpop.xlane.xlu1 %2977  ;;  %3201 = vadd.xlane.f32.xlu1 %v4295_v6 }
 0x5dc   :  { %v4297_v29 = vpop.eup %4296  ;;  %4306 = vpow2.f32 %v3109_v13  ;;  %v3119_v5 = vmul.f32 1.442695, %v3033_v16  ;;  %v3034_v63 = vsub.f32 %v5802_v7, %v6054_v20 }
 0x5dd   :  { %3195 = vadd.xlane.f32.xlu0 %v4297_v29  ;;  %v6058_v4 = vpop.xlane.xlu0 %2971 }
 0x5de   :  { %v4299_v38 = vpop.eup %4298  ;;  %4308 = vpow2.f32 %v3119_v5  ;;  %v3121_v14 = vmul.f32 1.442695, %v3034_v63  ;;  %v3031_v51 = vsub.f32 %v5810_v60, %v6058_v4 }
 0x5df   :  { %v6062_v42 = vpop.xlane.xlu1 %2973  ;;  %3197 = vadd.xlane.f32.xlu1 %v4299_v38 }
 0x5e0   :  { %v4301_v44 = vpop.eup %4300  ;;  %4310 = vpow2.f32 %v3121_v14  ;;  %v3115_v59 = vmul.f32 1.442695, %v3031_v51  ;;  %v3032_v28 = vsub.f32 %v5821_v3, %v6062_v42 }
 0x5e1   :  { %3207 = vadd.xlane.f32.xlu0 %v4301_v44  ;;  %v6066_v7 = vpop.xlane.xlu0 %2983 }
 0x5e2   :  { %v4303_v6 = vpop.eup %4302  ;;  %4312 = vpow2.f32 %v3115_v59  ;;  %v3117_v13 = vmul.f32 1.442695, %v3032_v28  ;;  %v3037_v16 = vsub.f32 %v5835_v35, %v6066_v7 }
 0x5e3   :  { %v6070_v29 = vpop.xlane.xlu1 %2985  ;;  %3209 = vadd.xlane.f32.xlu1 %v4303_v6 }
 0x5e4   :  { %v4305_v60 = vpop.eup %4304  ;;  %4314 = vpow2.f32 %v3117_v13  ;;  %v3127_v5 = vmul.f32 1.442695, %v3037_v16  ;;  %v3038_v63 = vsub.f32 %v5846_v48, %v6070_v29 }
 0x5e5   :  { %3203 = vadd.xlane.f32.xlu0 %v4305_v60  ;;  %v6074_v3 = vpop.xlane.xlu0 %2979 }
 0x5e6   :  { %v4307_v38 = vpop.eup %4306  ;;  %4316 = vpow2.f32 %v3127_v5  ;;  %v3129_v14 = vmul.f32 1.442695, %v3038_v63  ;;  %v3035_v51 = vsub.f32 %v5854_v62, %v6074_v3 }
 0x5e7   :  { %v6078_v44 = vpop.xlane.xlu1 %2981  ;;  %3205 = vadd.xlane.f32.xlu1 %v4307_v38 }
 0x5e8   :  { %v4309_v35 = vpop.eup %4308  ;;  %4318 = vpow2.f32 %v3129_v14  ;;  %v3123_v59 = vmul.f32 1.442695, %v3035_v51  ;;  %v3036_v28 = vsub.f32 %v5865_v46, %v6078_v44 }
 0x5e9   :  { %3215 = vadd.xlane.f32.xlu0 %v4309_v35  ;;  %v6082_v48 = vpop.xlane.xlu0 %2991 }
 0x5ea   :  { %v4311_v6 = vpop.eup %4310  ;;  %4320 = vpow2.f32 %v3123_v59  ;;  %v3125_v13 = vmul.f32 1.442695, %v3036_v28  ;;  %v3041_v63 = vsub.f32 %v5879_v47, %v6082_v48 }
 0x5eb   :  { %v6084_v16 = vpop.xlane.xlu1 %2993  ;;  %3217 = vadd.xlane.f32.xlu1 %v4311_v6 }
 0x5ec   :  { %6446 = vst [vmem:[#allocation60_spill] sm:$0xff] %v6084_v16  ;;  %v4313_v60 = vpop.eup %4312  ;;  %4322 = vpow2.f32 %v3125_v13  ;;  %v3042_v51 = vsub.f32 %v5890_v53, %v6084_v16  ;;  %v3135_v6 = vmul.f32 1.442695, %v3041_v63 }
 0x5ed   :  { %3211 = vadd.xlane.f32.xlu0 %v4313_v60  ;;  %v6086_v62 = vpop.xlane.xlu0 %2987 }
 0x5ee   :  { %v4315_v5 = vpop.eup %4314  ;;  %v3039_v46 = vsub.f32 %v5897_v8, %v6086_v62  ;;  %v3137_v60 = vmul.f32 1.442695, %v3042_v51 }
 0x5ef   :  { %v6092_v38 = vpop.xlane.xlu1 %2989  ;;  %3213 = vadd.xlane.f32.xlu1 %v4315_v5 }
 0x5f0   :  { %v4317_v14 = vpop.eup %4316  ;;  %v3131_v35 = vmul.f32 1.442695, %v3039_v46  ;;  %v3040_v59 = vsub.f32 %v5903_v32, %v6092_v38 }
 0x5f1   :  { %3223 = vadd.xlane.f32.xlu0 %v4317_v14 }
 0x5f2   :  { %v4319_v28 = vpop.eup %4318  ;;  %4324 = vpow2.f32 %v3131_v35  ;;  %v3133_v13 = vmul.f32 1.442695, %v3040_v59 }
 0x5f3   :  { %3225 = vadd.xlane.f32.xlu1 %v4319_v28 }
 0x5f4   :  { %v4321_v47 = vpop.eup %4320  ;;  %4326 = vpow2.f32 %v3133_v13 }
 0x5f5   :  { %3219 = vadd.xlane.f32.xlu0 %v4321_v47  ;;  %4328 = vpow2.f32 %v3135_v6 }
 0x5f6   :  { %v4323_v8 = vpop.eup %4322  ;;  %4330 = vpow2.f32 %v3137_v60 }
 0x5f7   :  { %3221 = vadd.xlane.f32.xlu1 %v4323_v8 }
 0x5fc   :  { %v4325_v5 = vpop.eup %4324 }
 0x5fd   :  { %3227 = vadd.xlane.f32.xlu0 %v4325_v5 }
 0x5fe   :  { %v4327_v53 = vpop.eup %4326 }
 0x5ff   :  { %3229 = vadd.xlane.f32.xlu1 %v4327_v53  ;;  %v4329_v46 = vpop.eup %4328 }
 0x600   :  { %v4331_v32 = vpop.eup %4330 }
 0x601   :  { %3231 = vadd.xlane.f32.xlu0 %v4329_v46 }
 0x603   :  { %3233 = vadd.xlane.f32.xlu1 %v4331_v32 }
 0x604   :  { %4556 = shalt.err (!%p4553_p12)
}
 0x605   :  { %s4557_s0 = scalar_lea.hbm %s6345_s10, 6144 }
 0x606   :  { %p4558_p13 = scmp.ne.s32.totalorder %s6345_s10, %s4557_s0  ;;  %p4561_p0 = scmp.lt.u32.totalorder %s4557_s0, %s6345_s10 }
 0x608   :  { %p4563_p1 = pnand %p4561_p0, %p4558_p13 }
 0x60a   :  { %4566 = shalt.err (!%p4563_p1)
}
 0x60b   :  { %s4623_s21 = smov 128   ;;  %s4624_s22 = smov 8  }
 0x60c   :  { %3546 = dma.vmem_to_hbm [thread:$0]  %s3541_s7, 6144, %s6345_s10, [#allocation7], %s4623_s21, %s4623_s21, %s4624_s22  }
 0x60d   :  { %s4567_s25 = scalar_lea.vmem %s3529_s14, 6144  ;;  %p4572_p3 = scmp.lt.s32.totalorder %s3529_s14, %s3529_s14 }
 0x60e   :  { %p4568_p2 = scmp.ne.s32.totalorder %s3529_s14, %s4567_s25  ;;  %p4573_p4 = scmp.lt.s32.totalorder %s4567_s25, %s4567_s25 }
 0x610   :  { %p4574_p5 = por %p4573_p4, %p4572_p3 }
 0x612   :  { %p4575_p6 = pnand %p4574_p5, %p4568_p2 }
 0x614   :  { %4578 = shalt.err (!%p4575_p6)
}
 0x615   :  { %s4579_s28 = scalar_lea.hbm %s6344_s9, 6144 }
 0x616   :  { %p4580_p7 = scmp.ne.s32.totalorder %s6344_s9, %s4579_s28  ;;  %p4583_p8 = scmp.lt.u32.totalorder %s4579_s28, %s6344_s9 }
 0x618   :  { %p4585_p9 = pnand %p4583_p8, %p4580_p7 }
 0x61a   :  { %4588 = shalt.err (!%p4585_p9)
}
 0x61b   :  { %3534 = dma.vmem_to_hbm [thread:$0]  %s3529_s14, 6144, %s6344_s9, [#allocation4], %s4623_s21, %s4623_s21, %s4624_s22   ;;  %v6447_v6 = vld [vmem:[#allocation13_spill] sm:$0xff]  ;;  %v6448_v32 = vld [vmem:[#allocation15_spill] sm:$0xff] }
 0x61c   :  { %v3237_v13 = vsub.f32 %v6447_v6, %v5906_v37  ;;  %s4625_s9 = smov [#allocation8]  }
 0x61d   :  { %s3552_s12 = sshll.u32 %s4625_s9, 4  ;;  %s3553_s12 = int_to_ptr.vmem [resolvable:$true] %s3552_s12 }
 0x61e   :  { %s4589_s1 = scalar_lea.vmem %s3553_s12, 6144  ;;  %p4594_p11 = scmp.lt.s32.totalorder %s3553_s12, %s3553_s12 }
 0x61f   :  { %p4590_p10 = scmp.ne.s32.totalorder %s3553_s12, %s4589_s1  ;;  %p4595_p12 = scmp.lt.s32.totalorder %s4589_s1, %s4589_s1 }
 0x621   :  { %p4596_p13 = por %p4595_p12, %p4594_p11 }
 0x623   :  { %p4597_p0 = pnand %p4596_p13, %p4590_p10 }
 0x627   :  { %v3144_v63 = vpop.xlane.xlu0 %3143 }
 0x628   :  { %4332 = vlog2.f32 %v3144_v63  ;;  %v3238_v63 = vsub.f32 %v6448_v32, %v5914_v43 }
 0x62b   :  { %v3146_v14 = vpop.xlane.xlu1 %3145  ;;  %v3140_v51 = vpop.xlane.xlu0 %3139 }
 0x62c   :  { %4334 = vlog2.f32 %v3146_v14 }
 0x62d   :  { %4336 = vlog2.f32 %v3140_v51 }
 0x62f   :  { %v3142_v35 = vpop.xlane.xlu1 %3141 }
 0x630   :  { %4338 = vlog2.f32 %v3142_v35  ;;  %v3152_v59 = vpop.xlane.xlu0 %3151 }
 0x631   :  { %4340 = vlog2.f32 %v3152_v59  ;;  %v6449_v59 = vld [vmem:[#allocation14_spill] sm:$0xff] }
 0x632   :  { %v4333_v28 = vpop.eup %4332  ;;  %v3235_v16 = vsub.f32 %v6449_v59, %v5910_v54  ;;  %v3241_v54 = vsub.f32 %v5405_v1, %v5922_v57  ;;  %v6451_v59 = vld [vmem:[#allocation18_spill] sm:$0xff] }
 0x633   :  { %v3288_v47 = vmul.f32 0.6931472, %v4333_v28  ;;  %v3154_v60 = vpop.xlane.xlu1 %3153 }
 0x634   :  { %4342 = vlog2.f32 %v3154_v60  ;;  %v3148_v8 = vpop.xlane.xlu0 %3147 }
 0x635   :  { %v3381_v5 = vsub.f32 %v3237_v13, %v3288_v47  ;;  %4344 = vlog2.f32 %v3148_v8  ;;  %v6450_v8 = vld [vmem:[#allocation16_spill] sm:$0xff] }
 0x636   :  { %v4335_v53 = vpop.eup %4334  ;;  %v3236_v43 = vsub.f32 %v6450_v8, %v5918_v49 }
 0x637   :  { %v4337_v46 = vpop.eup %4336  ;;  %v3429_v14 = vsel %vm2850_vm1, %v3381_v5, 0.0  ;;  %v3290_v51 = vmul.f32 0.6931472, %v4335_v53  ;;  %v3150_v35 = vpop.xlane.xlu1 %3149 }
 0x638   :  { %3477 = vst [vmem:[#allocation8 + $0x10] sm:$0xff] %v3429_v14  ;;  %v3284_v37 = vmul.f32 0.6931472, %v4337_v46  ;;  %4346 = vlog2.f32 %v3150_v35  ;;  %v3160_v28 = vpop.xlane.xlu0 %3159 }
 0x639   :  { %v3382_v6 = vsub.f32 %v3238_v63, %v3290_v51  ;;  %4348 = vlog2.f32 %v3160_v28 }
 0x63a   :  { %v4339_v13 = vpop.eup %4338  ;;  %v3379_v47 = vsub.f32 %v3235_v16, %v3284_v37  ;;  %v3242_v37 = vsub.f32 %v6451_v59, %v5926_v22  ;;  %v6453_v22 = vld [vmem:[#allocation19_spill] sm:$0xff] }
 0x63b   :  { %v4341_v60 = vpop.eup %4340  ;;  %v3430_v5 = vsel %vm2850_vm1, %v3382_v6, 0.0  ;;  %v3286_v53 = vmul.f32 0.6931472, %v4339_v13  ;;  %v3162_v32 = vpop.xlane.xlu1 %3161  ;;  %v6452_v6 = vld [vmem:[#allocation17_spill] sm:$0xff] }
 0x63c   :  { %3478 = vst [vmem:[#allocation8 + $0x18] sm:$0xff] %v3430_v5  ;;  %v3427_v46 = vsel %vm2850_vm1, %v3379_v47, 0.0  ;;  %v3296_v63 = vmul.f32 0.6931472, %v4341_v60  ;;  %4350 = vlog2.f32 %v3162_v32  ;;  %v3156_v14 = vpop.xlane.xlu0 %3155  ;;  %v3239_v13 = vsub.f32 %v6452_v6, %v5930_v21  ;;  %v6455_v21 = vld [vmem:[#allocation20_spill] sm:$0xff] }
 0x63d   :  { %3475 = vst [vmem:[#allocation8] sm:$0xff] %v3427_v46  ;;  %v3380_v16 = vsub.f32 %v3236_v43, %v3286_v53  ;;  %4352 = vlog2.f32 %v3156_v14  ;;  %v3240_v32 = vsub.f32 %v6453_v22, %v5934_v12  ;;  %v6456_v12 = vld [vmem:[#allocation22_spill] sm:$0xff] }
 0x63e   :  { %v4343_v51 = vpop.eup %4342  ;;  %v3385_v49 = vsub.f32 %v3241_v54, %v3296_v63  ;;  %v6454_v63 = vld [vmem:[#allocation59_spill] sm:$0xff] }
 0x63f   :  { %v4345_v35 = vpop.eup %4344  ;;  %v3428_v28 = vsel %vm2850_vm1, %v3380_v16, 0.0  ;;  %v3298_v1 = vmul.f32 0.6931472, %v4343_v51  ;;  %v3158_v57 = vpop.xlane.xlu1 %3157  ;;  %v3245_v14 = vsub.f32 %v6455_v21, %v6454_v63 }
 0x640   :  { %3476 = vst [vmem:[#allocation8 + $0x8] sm:$0xff] %v3428_v28  ;;  %v3433_v47 = vsel %vm2850_vm1, %v3385_v49, 0.0  ;;  %v3292_v60 = vmul.f32 0.6931472, %v4345_v35  ;;  %4354 = vlog2.f32 %v3158_v57 }
 0x641   :  { %3481 = vst [vmem:[#allocation8 + $0x30] sm:$0xff] %v3433_v47  ;;  %v3386_v8 = vsub.f32 %v3242_v37, %v3298_v1  ;;  %v3246_v1 = vsub.f32 %v6456_v12, %v5942_v27 }
 0x642   :  { %v4347_v43 = vpop.eup %4346  ;;  %v3383_v5 = vsub.f32 %v3239_v13, %v3292_v60  ;;  %v6457_v13 = vld [vmem:[#allocation21_spill] sm:$0xff] }
 0x643   :  { %v4349_v53 = vpop.eup %4348  ;;  %v3434_v54 = vsel %vm2850_vm1, %v3386_v8, 0.0  ;;  %v3294_v46 = vmul.f32 0.6931472, %v4347_v43  ;;  %v3243_v47 = vsub.f32 %v6457_v13, %v5946_v55 }
 0x644   :  { %3482 = vst [vmem:[#allocation8 + $0x38] sm:$0xff] %v3434_v54  ;;  %v3431_v16 = vsel %vm2850_vm1, %v3383_v5, 0.0  ;;  %v3304_v51 = vmul.f32 0.6931472, %v4349_v53 }
 0x645   :  { %3479 = vst [vmem:[#allocation8 + $0x20] sm:$0xff] %v3431_v16  ;;  %v3384_v49 = vsub.f32 %v3240_v32, %v3294_v46  ;;  %v6458_v32 = vld [vmem:[#allocation23_spill] sm:$0xff] }
 0x646   :  { %v4351_v35 = vpop.eup %4350  ;;  %v3389_v59 = vsub.f32 %v3245_v14, %v3304_v51  ;;  %v3168_v37 = vpop.xlane.xlu0 %3167  ;;  %v3244_v54 = vsub.f32 %v6458_v32, %v5950_v40  ;;  %v6462_v32 = vld [vmem:[#allocation27_spill] sm:$0xff] }
 0x647   :  { %v4353_v28 = vpop.eup %4352  ;;  %v3432_v57 = vsel %vm2850_vm1, %v3384_v49, 0.0  ;;  %v3306_v6 = vmul.f32 0.6931472, %v4351_v35  ;;  %4356 = vlog2.f32 %v3168_v37  ;;  %v6459_v35 = vld [vmem:[#allocation24_spill] sm:$0xff] }
 0x648   :  { %3480 = vst [vmem:[#allocation8 + $0x28] sm:$0xff] %v3432_v57  ;;  %v3437_v60 = vsel %vm2850_vm1, %v3389_v59, 0.0  ;;  %v3300_v8 = vmul.f32 0.6931472, %v4353_v28  ;;  %v3170_v43 = vpop.xlane.xlu1 %3169  ;;  %v3249_v59 = vsub.f32 %v6459_v35, %v5954_v33 }
 0x649   :  { %3485 = vst [vmem:[#allocation8 + $0x50] sm:$0xff] %v3437_v60  ;;  %v3390_v5 = vsub.f32 %v3246_v1, %v3306_v6  ;;  %4358 = vlog2.f32 %v3170_v43  ;;  %v6460_v1 = vld [vmem:[#allocation26_spill] sm:$0xff] }
 0x64a   :  { %v4355_v53 = vpop.eup %4354  ;;  %v3387_v22 = vsub.f32 %v3243_v47, %v3300_v8  ;;  %v3164_v27 = vpop.xlane.xlu0 %3163  ;;  %v3250_v57 = vsub.f32 %v6460_v1, %v5958_v58  ;;  %v6461_v8 = vld [vmem:[#allocation25_spill] sm:$0xff]  ;;  %v3248_v58 = vsub.f32 %v6462_v32, %v5966_v25  ;;  %v6464_v25 = vld [vmem:[#allocation30_spill] sm:$0xff] }
 0x64b   :  { %v3438_v46 = vsel %vm2850_vm1, %v3390_v5, 0.0  ;;  %v3302_v63 = vmul.f32 0.6931472, %v4355_v53  ;;  %4360 = vlog2.f32 %v3164_v27  ;;  %v3247_v43 = vsub.f32 %v6461_v8, %v5962_v31  ;;  %v6463_v31 = vld [vmem:[#allocation28_spill] sm:$0xff] }
 0x64c   :  { %3486 = vst [vmem:[#allocation8 + $0x58] sm:$0xff] %v3438_v46  ;;  %v3435_v55 = vsel %vm2850_vm1, %v3387_v22, 0.0  ;;  %v3166_v21 = vpop.xlane.xlu1 %3165 }
 0x64d   :  { %3483 = vst [vmem:[#allocation8 + $0x40] sm:$0xff] %v3435_v55  ;;  %v3388_v14 = vsub.f32 %v3244_v54, %v3302_v63  ;;  %4362 = vlog2.f32 %v3166_v21 }
 0x64e   :  { %v3176_v16 = vpop.xlane.xlu0 %3175 }
 0x64f   :  { %v3436_v51 = vsel %vm2850_vm1, %v3388_v14, 0.0  ;;  %4364 = vlog2.f32 %v3176_v16  ;;  %v3253_v14 = vsub.f32 %v6463_v31, %v5970_v56  ;;  %v6465_v56 = vld [vmem:[#allocation29_spill] sm:$0xff] }
 0x650   :  { %3484 = vst [vmem:[#allocation8 + $0x48] sm:$0xff] %v3436_v51  ;;  %v3178_v40 = vpop.xlane.xlu1 %3177 }
 0x651   :  { %v4357_v49 = vpop.eup %4356  ;;  %4366 = vlog2.f32 %v3178_v40 }
 0x652   :  { %v3312_v37 = vmul.f32 0.6931472, %v4357_v49  ;;  %v3172_v28 = vpop.xlane.xlu0 %3171 }
 0x653   :  { %v4359_v12 = vpop.eup %4358  ;;  %4368 = vlog2.f32 %v3172_v28 }
 0x654   :  { %v3393_v6 = vsub.f32 %v3249_v59, %v3312_v37  ;;  %v3314_v13 = vmul.f32 0.6931472, %v4359_v12  ;;  %v3174_v47 = vpop.xlane.xlu1 %3173  ;;  %v3254_v59 = vsub.f32 %v6464_v25, %v5974_v9  ;;  %v6466_v9 = vld [vmem:[#allocation31_spill] sm:$0xff] }
 0x655   :  { %v4361_v60 = vpop.eup %4360  ;;  %4370 = vlog2.f32 %v3174_v47 }
 0x656   :  { %v3441_v5 = vsel %vm2850_vm1, %v3393_v6, 0.0  ;;  %v3394_v53 = vsub.f32 %v3250_v57, %v3314_v13  ;;  %v3308_v33 = vmul.f32 0.6931472, %v4361_v60  ;;  %v3184_v22 = vpop.xlane.xlu0 %3183  ;;  %v3251_v6 = vsub.f32 %v6465_v56, %v5978_v19  ;;  %v6467_v19 = vld [vmem:[#allocation32_spill] sm:$0xff] }
 0x657   :  { %v4363_v27 = vpop.eup %4362  ;;  %3489 = vst [vmem:[#allocation8 + $0x70] sm:$0xff] %v3441_v5  ;;  %4372 = vlog2.f32 %v3184_v22  ;;  %v3252_v5 = vsub.f32 %v6466_v9, %v5982_v24  ;;  %v6468_v24 = vld [vmem:[#allocation34_spill] sm:$0xff] }
 0x658   :  { %v3442_v54 = vsel %vm2850_vm1, %v3394_v53, 0.0  ;;  %v3391_v46 = vsub.f32 %v3247_v43, %v3308_v33  ;;  %v3310_v63 = vmul.f32 0.6931472, %v4363_v27  ;;  %v3186_v55 = vpop.xlane.xlu1 %3185  ;;  %v3258_v31 = vsub.f32 %v6468_v24, %v5990_v15  ;;  %v6470_v15 = vld [vmem:[#allocation35_spill] sm:$0xff] }
 0x659   :  { %v4365_v21 = vpop.eup %4364  ;;  %3490 = vst [vmem:[#allocation8 + $0x78] sm:$0xff] %v3442_v54  ;;  %4374 = vlog2.f32 %v3186_v55 }
 0x65a   :  { %v3439_v16 = vsel %vm2850_vm1, %v3391_v46, 0.0  ;;  %v3392_v51 = vsub.f32 %v3248_v58, %v3310_v63  ;;  %v3320_v40 = vmul.f32 0.6931472, %v4365_v21  ;;  %v3180_v49 = vpop.xlane.xlu0 %3179  ;;  %v3257_v58 = vsub.f32 %v6467_v19, %v5986_v30  ;;  %v6469_v30 = vld [vmem:[#allocation33_spill] sm:$0xff] }
 0x65b   :  { %v4367_v35 = vpop.eup %4366  ;;  %3487 = vst [vmem:[#allocation8 + $0x60] sm:$0xff] %v3439_v16  ;;  %4376 = vlog2.f32 %v3180_v49 }
 0x65c   :  { %v3440_v37 = vsel %vm2850_vm1, %v3392_v51, 0.0  ;;  %v3397_v28 = vsub.f32 %v3253_v14, %v3320_v40  ;;  %v3322_v12 = vmul.f32 0.6931472, %v4367_v35  ;;  %v3182_v1 = vpop.xlane.xlu1 %3181  ;;  %v3255_v35 = vsub.f32 %v6469_v30, %v5994_v11  ;;  %v6471_v11 = vld [vmem:[#allocation36_spill] sm:$0xff] }
 0x65d   :  { %v4369_v57 = vpop.eup %4368  ;;  %3488 = vst [vmem:[#allocation8 + $0x68] sm:$0xff] %v3440_v37  ;;  %4378 = vlog2.f32 %v3182_v1  ;;  %v3256_v1 = vsub.f32 %v6470_v15, %v5998_v26  ;;  %v6472_v26 = vld [vmem:[#allocation38_spill] sm:$0xff] }
 0x65e   :  { %v3445_v13 = vsel %vm2850_vm1, %v3397_v28, 0.0  ;;  %v3398_v47 = vsub.f32 %v3254_v59, %v3322_v12  ;;  %v3316_v60 = vmul.f32 0.6931472, %v4369_v57  ;;  %v3192_v8 = vpop.xlane.xlu0 %3191 }
 0x65f   :  { %v4371_v43 = vpop.eup %4370  ;;  %3493 = vst [vmem:[#allocation8 + $0x90] sm:$0xff] %v3445_v13  ;;  %4380 = vlog2.f32 %v3192_v8 }
 0x660   :  { %v3446_v53 = vsel %vm2850_vm1, %v3398_v47, 0.0  ;;  %v3395_v33 = vsub.f32 %v3251_v6, %v3316_v60  ;;  %v3318_v22 = vmul.f32 0.6931472, %v4371_v43  ;;  %v3194_v27 = vpop.xlane.xlu1 %3193  ;;  %v3261_v60 = vsub.f32 %v6471_v11, %v6002_v2  ;;  %v6473_v2 = vld [vmem:[#allocation37_spill] sm:$0xff] }
 0x661   :  { %v4373_v32 = vpop.eup %4372  ;;  %3494 = vst [vmem:[#allocation8 + $0x98] sm:$0xff] %v3446_v53  ;;  %4382 = vlog2.f32 %v3194_v27 }
 0x662   :  { %v3443_v54 = vsel %vm2850_vm1, %v3395_v33, 0.0  ;;  %v3396_v46 = vsub.f32 %v3252_v5, %v3318_v22  ;;  %v3328_v63 = vmul.f32 0.6931472, %v4373_v32  ;;  %v3188_v55 = vpop.xlane.xlu0 %3187  ;;  %v3262_v33 = vsub.f32 %v6472_v26, %v6006_v17  ;;  %v6474_v17 = vld [vmem:[#allocation39_spill] sm:$0xff] }
 0x663   :  { %v4375_v21 = vpop.eup %4374  ;;  %3491 = vst [vmem:[#allocation8 + $0x80] sm:$0xff] %v3443_v54  ;;  %4384 = vlog2.f32 %v3188_v55  ;;  %v3259_v54 = vsub.f32 %v6473_v2, %v6010_v41  ;;  %v6475_v41 = vld [vmem:[#allocation40_spill] sm:$0xff] }
 0x664   :  { %v3444_v14 = vsel %vm2850_vm1, %v3396_v46, 0.0  ;;  %v3401_v16 = vsub.f32 %v3257_v58, %v3328_v63  ;;  %v3330_v51 = vmul.f32 0.6931472, %v4375_v21  ;;  %v3190_v40 = vpop.xlane.xlu1 %3189  ;;  %v3265_v30 = vsub.f32 %v6475_v41, %v6018_v34  ;;  %v6477_v34 = vld [vmem:[#allocation41_spill] sm:$0xff] }
 0x665   :  { %v4377_v49 = vpop.eup %4376  ;;  %3492 = vst [vmem:[#allocation8 + $0x88] sm:$0xff] %v3444_v14  ;;  %4386 = vlog2.f32 %v3190_v40 }
 0x666   :  { %v3449_v25 = vsel %vm2850_vm1, %v3401_v16, 0.0  ;;  %v3402_v59 = vsub.f32 %v3258_v31, %v3330_v51  ;;  %v3324_v37 = vmul.f32 0.6931472, %v4377_v49  ;;  %v3200_v28 = vpop.xlane.xlu0 %3199  ;;  %v3260_v31 = vsub.f32 %v6474_v17, %v6014_v45  ;;  %v6476_v45 = vld [vmem:[#allocation42_spill] sm:$0xff] }
 0x667   :  { %v4379_v12 = vpop.eup %4378  ;;  %3497 = vst [vmem:[#allocation8 + $0xb0] sm:$0xff] %v3449_v25  ;;  %4388 = vlog2.f32 %v3200_v28 }
 0x668   :  { %v3450_v57 = vsel %vm2850_vm1, %v3402_v59, 0.0  ;;  %v3399_v56 = vsub.f32 %v3255_v35, %v3324_v37  ;;  %v3326_v6 = vmul.f32 0.6931472, %v4379_v12  ;;  %v3202_v13 = vpop.xlane.xlu1 %3201  ;;  %v3266_v12 = vsub.f32 %v6476_v45, %v6022_v39  ;;  %v6478_v39 = vld [vmem:[#allocation43_spill] sm:$0xff] }
 0x669   :  { %v4381_v47 = vpop.eup %4380  ;;  %3498 = vst [vmem:[#allocation8 + $0xb8] sm:$0xff] %v3450_v57  ;;  %4390 = vlog2.f32 %v3202_v13  ;;  %v3263_v13 = vsub.f32 %v6477_v34, %v6026_v18  ;;  %v6479_v18 = vld [vmem:[#allocation44_spill] sm:$0xff] }
 0x66a   :  { %v3447_v8 = vsel %vm2850_vm1, %v3399_v56, 0.0  ;;  %v3400_v43 = vsub.f32 %v3256_v1, %v3326_v6  ;;  %v3336_v9 = vmul.f32 0.6931472, %v4381_v47  ;;  %v3196_v5 = vpop.xlane.xlu0 %3195 }
 0x66b   :  { %v4383_v53 = vpop.eup %4382  ;;  %3495 = vst [vmem:[#allocation8 + $0xa0] sm:$0xff] %v3447_v8  ;;  %4392 = vlog2.f32 %v3196_v5 }
 0x66c   :  { %v3448_v22 = vsel %vm2850_vm1, %v3400_v43, 0.0  ;;  %v3405_v27 = vsub.f32 %v3261_v60, %v3336_v9  ;;  %v3338_v32 = vmul.f32 0.6931472, %v4383_v53  ;;  %v3198_v19 = vpop.xlane.xlu1 %3197  ;;  %v3264_v9 = vsub.f32 %v6478_v39, %v6030_v0  ;;  %v6480_v0 = vld [vmem:[#allocation46_spill] sm:$0xff] }
 0x66d   :  { %v4385_v58 = vpop.eup %4384  ;;  %3496 = vst [vmem:[#allocation8 + $0xa8] sm:$0xff] %v3448_v22  ;;  %4394 = vlog2.f32 %v3198_v19 }
 0x66e   :  { %v3453_v46 = vsel %vm2850_vm1, %v3405_v27, 0.0  ;;  %v3406_v63 = vsub.f32 %v3262_v33, %v3338_v32  ;;  %v3332_v55 = vmul.f32 0.6931472, %v4385_v58  ;;  %v3208_v21 = vpop.xlane.xlu0 %3207  ;;  %v3269_v27 = vsub.f32 %v6479_v18, %v6034_v10  ;;  %v6481_v10 = vld [vmem:[#allocation45_spill] sm:$0xff]  ;;  %v6487_v18 = vld [vmem:[#allocation51_spill] sm:$0xff] }
 0x66f   :  { %v4387_v24 = vpop.eup %4386  ;;  %3501 = vst [vmem:[#allocation8 + $0xd0] sm:$0xff] %v3453_v46  ;;  %4396 = vlog2.f32 %v3208_v21  ;;  %v3270_v46 = vsub.f32 %v6480_v0, %v6038_v52  ;;  %v6482_v52 = vld [vmem:[#allocation47_spill] sm:$0xff] }
 0x670   :  { %v3454_v14 = vsel %vm2850_vm1, %v3406_v63, 0.0  ;;  %v3403_v16 = vsub.f32 %v3259_v54, %v3332_v55  ;;  %v3334_v51 = vmul.f32 0.6931472, %v4387_v24  ;;  %v3210_v40 = vpop.xlane.xlu1 %3209  ;;  %v3268_v41 = vsub.f32 %v6482_v52, %v6046_v61  ;;  %v6484_v61 = vld [vmem:[#allocation50_spill] sm:$0xff] }
 0x671   :  { %v4389_v49 = vpop.eup %4388  ;;  %3502 = vst [vmem:[#allocation8 + $0xd8] sm:$0xff] %v3454_v14  ;;  %4398 = vlog2.f32 %v3210_v40 }
 0x672   :  { %v3451_v35 = vsel %vm2850_vm1, %v3403_v16, 0.0  ;;  %v3404_v25 = vsub.f32 %v3260_v31, %v3334_v51  ;;  %v3344_v59 = vmul.f32 0.6931472, %v4389_v49  ;;  %v3204_v37 = vpop.xlane.xlu0 %3203  ;;  %v3267_v31 = vsub.f32 %v6481_v10, %v6042_v50  ;;  %v6483_v50 = vld [vmem:[#allocation48_spill] sm:$0xff] }
 0x673   :  { %v4391_v28 = vpop.eup %4390  ;;  %3499 = vst [vmem:[#allocation8 + $0xc0] sm:$0xff] %v3451_v35  ;;  %4400 = vlog2.f32 %v3204_v37 }
 0x674   :  { %v3452_v15 = vsel %vm2850_vm1, %v3404_v25, 0.0  ;;  %v3409_v1 = vsub.f32 %v3265_v30, %v3344_v59  ;;  %v3346_v57 = vmul.f32 0.6931472, %v4391_v28  ;;  %v3206_v56 = vpop.xlane.xlu1 %3205  ;;  %v3273_v28 = vsub.f32 %v6483_v50, %v6050_v23  ;;  %v6485_v23 = vld [vmem:[#allocation49_spill] sm:$0xff] }
 0x675   :  { %v4393_v6 = vpop.eup %4392  ;;  %3500 = vst [vmem:[#allocation8 + $0xc8] sm:$0xff] %v3452_v15  ;;  %4402 = vlog2.f32 %v3206_v56  ;;  %v3274_v56 = vsub.f32 %v6484_v61, %v6054_v20  ;;  %v6486_v20 = vld [vmem:[#allocation12_spill] sm:$0xff] }
 0x676   :  { %v3457_v47 = vsel %vm2850_vm1, %v3409_v1, 0.0  ;;  %v3410_v11 = vsub.f32 %v3266_v12, %v3346_v57  ;;  %v3340_v60 = vmul.f32 0.6931472, %v4393_v6  ;;  %v3216_v8 = vpop.xlane.xlu0 %3215 }
 0x677   :  { %v4395_v43 = vpop.eup %4394  ;;  %3505 = vst [vmem:[#allocation8 + $0xf0] sm:$0xff] %v3457_v47  ;;  %4404 = vlog2.f32 %v3216_v8 }
 0x678   :  { %v3458_v5 = vsel %vm2850_vm1, %v3410_v11, 0.0  ;;  %v3407_v53 = vsub.f32 %v3263_v13, %v3340_v60  ;;  %v3342_v26 = vmul.f32 0.6931472, %v4395_v43  ;;  %v3218_v33 = vpop.xlane.xlu1 %3217  ;;  %v3271_v60 = vsub.f32 %v6485_v23, %v6058_v4 }
 0x679   :  { %v4397_v22 = vpop.eup %4396  ;;  %3506 = vst [vmem:[#allocation8 + $0xf8] sm:$0xff] %v3458_v5  ;;  %4406 = vlog2.f32 %v3218_v33  ;;  %v3272_v5 = vsub.f32 %v6486_v20, %v6062_v42  ;;  %v3277_v4 = vsub.f32 %v6487_v18, %v6066_v7  ;;  %v6488_v42 = vld [vmem:[#allocation53_spill] sm:$0xff]  ;;  %v6489_v7 = vld [vmem:[#allocation52_spill] sm:$0xff] }
 0x67a   :  { %v3455_v32 = vsel %vm2850_vm1, %v3407_v53, 0.0  ;;  %v3408_v19 = vsub.f32 %v3264_v9, %v3342_v26  ;;  %v3352_v58 = vmul.f32 0.6931472, %v4397_v22  ;;  %v3212_v2 = vpop.xlane.xlu0 %3211 }
 0x67b   :  { %v4399_v54 = vpop.eup %4398  ;;  %3503 = vst [vmem:[#allocation8 + $0xe0] sm:$0xff] %v3455_v32  ;;  %4408 = vlog2.f32 %v3212_v2 }
 0x67c   :  { %v3456_v63 = vsel %vm2850_vm1, %v3408_v19, 0.0  ;;  %v3413_v55 = vsub.f32 %v3269_v27, %v3352_v58  ;;  %v3354_v21 = vmul.f32 0.6931472, %v4399_v54  ;;  %v3214_v24 = vpop.xlane.xlu1 %3213  ;;  %v3278_v54 = vsub.f32 %v6488_v42, %v6070_v29  ;;  %v6490_v29 = vld [vmem:[#allocation54_spill] sm:$0xff] }
 0x67d   :  { %v4401_v17 = vpop.eup %4400  ;;  %3504 = vst [vmem:[#allocation8 + $0xe8] sm:$0xff] %v3456_v63  ;;  %4410 = vlog2.f32 %v3214_v24  ;;  %v3275_v24 = vsub.f32 %v6489_v7, %v6074_v3 }
 0x67e   :  { %v3461_v14 = vsel %vm2850_vm1, %v3413_v55, 0.0  ;;  %v3414_v16 = vsub.f32 %v3270_v46, %v3354_v21  ;;  %v3348_v51 = vmul.f32 0.6931472, %v4401_v17  ;;  %v3224_v40 = vpop.xlane.xlu0 %3223 }
 0x67f   :  { %v4403_v49 = vpop.eup %4402  ;;  %3509 = vst [vmem:[#allocation8 + $0x110] sm:$0xff] %v3461_v14  ;;  %4412 = vlog2.f32 %v3224_v40 }
 0x680   :  { %v3462_v30 = vsel %vm2850_vm1, %v3414_v16, 0.0  ;;  %v3411_v35 = vsub.f32 %v3267_v31, %v3348_v51  ;;  %v3350_v25 = vmul.f32 0.6931472, %v4403_v49  ;;  %v3226_v59 = vpop.xlane.xlu1 %3225  ;;  %v3276_v51 = vsub.f32 %v6490_v29, %v6078_v44  ;;  %v6491_v44 = vld [vmem:[#allocation56_spill] sm:$0xff] }
 0x681   :  { %v4405_v37 = vpop.eup %4404  ;;  %3510 = vst [vmem:[#allocation8 + $0x118] sm:$0xff] %v3462_v30  ;;  %4414 = vlog2.f32 %v3226_v59  ;;  %v3279_v59 = vsub.f32 %v6491_v44, %v6086_v62  ;;  %v6495_v62 = vld [vmem:[#allocation57_spill] sm:$0xff] }
 0x682   :  { %v3459_v45 = vsel %vm2850_vm1, %v3411_v35, 0.0  ;;  %v3412_v12 = vsub.f32 %v3268_v41, %v3350_v25  ;;  %v3360_v15 = vmul.f32 0.6931472, %v4405_v37  ;;  %v3220_v1 = vpop.xlane.xlu0 %3219 }
 0x683   :  { %v4407_v57 = vpop.eup %4406  ;;  %3507 = vst [vmem:[#allocation8 + $0x100] sm:$0xff] %v3459_v45  ;;  %4416 = vlog2.f32 %v3220_v1 }
 0x684   :  { %v3460_v6 = vsel %vm2850_vm1, %v3412_v12, 0.0  ;;  %v3417_v34 = vsub.f32 %v3273_v28, %v3360_v15  ;;  %v3362_v13 = vmul.f32 0.6931472, %v4407_v57  ;;  %v3222_v47 = vpop.xlane.xlu1 %3221  ;;  %v6492_v28 = vld [vmem:[#allocation58_spill] sm:$0xff]  ;;  %v6493_v57 = vld [vmem:[#allocation55_spill] sm:$0xff] }
 0x685   :  { %v4409_v11 = vpop.eup %4408  ;;  %3508 = vst [vmem:[#allocation8 + $0x108] sm:$0xff] %v3460_v6  ;;  %4418 = vlog2.f32 %v3222_v47  ;;  %v3280_v45 = vsub.f32 %v6492_v28, %v6092_v38  ;;  %v3281_v61 = vsub.f32 %v6493_v57, %v6082_v48  ;;  %v6494_v47 = vld [vmem:[#allocation60_spill] sm:$0xff] }
 0x686   :  { %v3465_v8 = vsel %vm2850_vm1, %v3417_v34, 0.0  ;;  %v3418_v43 = vsub.f32 %v3274_v56, %v3362_v13  ;;  %v3356_v39 = vmul.f32 0.6931472, %v4409_v11  ;;  %v3282_v11 = vsub.f32 %v6495_v62, %v6494_v47 }
 0x687   :  { %v4411_v9 = vpop.eup %4410  ;;  %3513 = vst [vmem:[#allocation8 + $0x130] sm:$0xff] %v3465_v8 }
 0x688   :  { %v3466_v53 = vsel %vm2850_vm1, %v3418_v43, 0.0  ;;  %v3415_v26 = vsub.f32 %v3271_v60, %v3356_v39  ;;  %v3358_v33 = vmul.f32 0.6931472, %v4411_v9 }
 0x689   :  { %v4413_v22 = vpop.eup %4412  ;;  %3514 = vst [vmem:[#allocation8 + $0x138] sm:$0xff] %v3466_v53 }
 0x68a   :  { %v3463_v27 = vsel %vm2850_vm1, %v3415_v26, 0.0  ;;  %v3416_v32 = vsub.f32 %v3272_v5, %v3358_v33  ;;  %v3368_v19 = vmul.f32 0.6931472, %v4413_v22  ;;  %v3228_v58 = vpop.xlane.xlu0 %3227 }
 0x68b   :  { %v4415_v2 = vpop.eup %4414  ;;  %3511 = vst [vmem:[#allocation8 + $0x120] sm:$0xff] %v3463_v27  ;;  %4420 = vlog2.f32 %v3228_v58 }
 0x68c   :  { %v3464_v0 = vsel %vm2850_vm1, %v3416_v32, 0.0  ;;  %v3421_v46 = vsub.f32 %v3277_v4, %v3368_v19  ;;  %v3370_v63 = vmul.f32 0.6931472, %v4415_v2  ;;  %v3230_v55 = vpop.xlane.xlu1 %3229 }
 0x68d   :  { %v4417_v21 = vpop.eup %4416  ;;  %3512 = vst [vmem:[#allocation8 + $0x128] sm:$0xff] %v3464_v0  ;;  %4422 = vlog2.f32 %v3230_v55 }
 0x68e   :  { %v3469_v17 = vsel %vm2850_vm1, %v3421_v46, 0.0  ;;  %v3422_v10 = vsub.f32 %v3278_v54, %v3370_v63  ;;  %v3364_v31 = vmul.f32 0.6931472, %v4417_v21  ;;  %v3232_v14 = vpop.xlane.xlu0 %3231 }
 0x68f   :  { %v4419_v16 = vpop.eup %4418  ;;  %3517 = vst [vmem:[#allocation8 + $0x150] sm:$0xff] %v3469_v17  ;;  %4424 = vlog2.f32 %v3232_v14 }
 0x690   :  { %v3470_v40 = vsel %vm2850_vm1, %v3422_v10, 0.0  ;;  %v3419_v49 = vsub.f32 %v3275_v24, %v3364_v31  ;;  %v3366_v52 = vmul.f32 0.6931472, %v4419_v16  ;;  %v3234_v41 = vpop.xlane.xlu1 %3233 }
 0x691   :  { %3518 = vst [vmem:[#allocation8 + $0x158] sm:$0xff] %v3470_v40  ;;  %4426 = vlog2.f32 %v3234_v41 }
 0x692   :  { %v3467_v3 = vsel %vm2850_vm1, %v3419_v49, 0.0  ;;  %v3420_v30 = vsub.f32 %v3276_v51, %v3366_v52 }
 0x693   :  { %3515 = vst [vmem:[#allocation8 + $0x140] sm:$0xff] %v3467_v3 }
 0x694   :  { %v3468_v35 = vsel %vm2850_vm1, %v3420_v30, 0.0 }
 0x695   :  { %v4421_v25 = vpop.eup %4420  ;;  %3516 = vst [vmem:[#allocation8 + $0x148] sm:$0xff] %v3468_v35 }
 0x696   :  { %v3372_v37 = vmul.f32 0.6931472, %v4421_v25 }
 0x697   :  { %v4423_v50 = vpop.eup %4422 }
 0x698   :  { %v3423_v12 = vsub.f32 %v3279_v59, %v3372_v37  ;;  %v3374_v15 = vmul.f32 0.6931472, %v4423_v50 }
 0x699   :  { %v4425_v1 = vpop.eup %4424 }
 0x69a   :  { %v3471_v56 = vsel %vm2850_vm1, %v3423_v12, 0.0  ;;  %v3424_v6 = vsub.f32 %v3280_v45, %v3374_v15  ;;  %v3376_v34 = vmul.f32 0.6931472, %v4425_v1 }
 0x69b   :  { %v4427_v13 = vpop.eup %4426  ;;  %3519 = vst [vmem:[#allocation8 + $0x160] sm:$0xff] %v3471_v56 }
 0x69c   :  { %v3472_v23 = vsel %vm2850_vm1, %v3424_v6, 0.0  ;;  %v3425_v38 = vsub.f32 %v3281_v61, %v3376_v34  ;;  %v3378_v60 = vmul.f32 0.6931472, %v4427_v13 }
 0x69d   :  { %3520 = vst [vmem:[#allocation8 + $0x168] sm:$0xff] %v3472_v23 }
 0x69e   :  { %v3473_v48 = vsel %vm2850_vm1, %v3425_v38, 0.0  ;;  %v3426_v8 = vsub.f32 %v3282_v11, %v3378_v60 }
 0x69f   :  { %3521 = vst [vmem:[#allocation8 + $0x170] sm:$0xff] %v3473_v48 }
 0x6a0   :  { %v3474_v43 = vsel %vm2850_vm1, %v3426_v8, 0.0 }
 0x6a1   :  { %3522 = vst [vmem:[#allocation8 + $0x178] sm:$0xff] %v3474_v43 }
 0x6a2   :  { %4600 = shalt.err (!%p4597_p0)
}
 0x6a3   :  { %s4601_s7 = scalar_lea.hbm %s6346_s11, 6144 }
 0x6a4   :  { %p4602_p1 = scmp.ne.s32.totalorder %s6346_s11, %s4601_s7  ;;  %p4605_p2 = scmp.lt.u32.totalorder %s4601_s7, %s6346_s11 }
 0x6a6   :  { %p4607_p3 = pnand %p4605_p2, %p4602_p1 }
 0x6a8   :  { %4610 = shalt.err (!%p4607_p3)
}
 0x6a9   :  { %3558 = dma.vmem_to_hbm [thread:$0]  %s3553_s12, 6144, %s6346_s11, [#allocation7], %s4623_s21, %s4623_s21, %s4624_s22  }
 0x6aa   :  { %4613 = dma.done.wait [#allocation4], 6144  }
 0x6ab   :  { %4614 = vsyncadd [#allocation4], 4294961152 }
 0x6ac   :  { %4615 = dma.done.wait [#allocation7], 12288  }
 0x6ad   :  { %4616 = vsyncadd [#allocation7], 4294955008 }
 0x6ae   :  { %3568 = vsyncpa [#allocation3], 1 }
 0x6af   :  { %3569 = vsyncpa [#allocation4], 1 }
 0x6b0   :  { %3570 = vsyncpa [#allocation7], 1 }

</bundles_post_ra>
